<compile_context>
chip_gen: v7x
topology: tpu7x:2x2x1
jax: 0.10.0
libtpu: 0.0.40
codegen_flags: <defaults>
</compile_context>

<pallas_src>
from functools import partial

import jax
import jax.numpy as jnp
from jax.experimental import pallas as pl
from jax.experimental.pallas import tpu as pltpu


# ------------------------------ budgets & helpers ------------------------------

def _vmem_limit_bytes():
    """Per-generation scoped-VMEM budget: ~half of physical, capped at 64 MiB
    (v5e/v6e: 128 MiB -> 64 MiB; v7x: 64 MiB/TC -> 32 MiB)."""
    try:
        cap = int(pltpu.get_tpu_info().vmem_capacity_bytes)
    except Exception:
        return 32 * 1024 * 1024
    if cap <= 0:
        return 32 * 1024 * 1024
    return int(min(cap // 2, 64 * 1024 * 1024))


def _cparams(sem):
    return pltpu.CompilerParams(dimension_semantics=sem,
                                vmem_limit_bytes=_vmem_limit_bytes())


def _pick_row_tile(rows, row_bytes, min_blocks=4):
    """Row tile: multiple of 8 dividing `rows` (else `rows` itself = full dim),
    sized from the VMEM budget while leaving >= min_blocks grid steps when the
    problem allows it (pipelining depth + v7x megacore)."""
    budget_rows = max(8, (_vmem_limit_bytes() // 8) // max(row_bytes, 1))
    cands = [t for t in range(8, rows + 1, 8) if rows % t == 0]
    if not cands:
        return rows
    for want in (min_blocks, 2, 1):
        ok = [t for t in cands if t <= budget_rows and rows // t >= want]
        if ok:
            return max(ok)
    return cands[0]


def _gelu_erf(x):
    # erf GELU via the A&S 7.1.26 polynomial.  The approximate EUP reciprocal
    # contributes ~1e-4 relative error to t (well inside the test tolerance)
    # and keeps the divide off the VALU; BN/GELU math stays f32 on all gens.
    a1, a2, a3, a4, a5 = 0.254829592, -0.284496736, 1.421413741, -1.453152027, 1.061405429
    p = 0.3275911
    z = x * 0.7071067811865476
    s = jnp.where(z >= 0.0, 1.0, -1.0)
    az = jnp.abs(z)
    t = pl.reciprocal(1.0 + p * az, approx=True)
    poly = ((((a5 * t + a4) * t + a3) * t + a2) * t + a1) * t
    erf = s * (1.0 - poly * jnp.exp(-az * az))
    return 0.5 * x * (1.0 + erf)


# --------------------- weight preprocessing (XLA, once per call) ----------------

def _band_weights(w_hwio, w_img):
    """(3,3,Cin,Cout) -> (3*W*Cin, W*Cout) banded matrix: a matmul of three
    row-shifted lane-dense input rows against this matrix IS the padded 3x3
    conv, with column padding absorbed into the band structure."""
    pp = jnp.arange(w_img)[:, None, None]
    jj = jnp.arange(w_img)[None, :, None]
    dd = jnp.arange(3)[None, None, :]
    sel = (pp == jj + dd - 1).astype(w_hwio.dtype)                  # (W, W, 3)
    band = jnp.einsum("pjx,yxio->ypijo", sel, w_hwio)               # (3,W,Ci,W,Co)
    cin, cout = w_hwio.shape[2], w_hwio.shape[3]
    return band.reshape(3 * w_img * cin, w_img * cout)


def _upsample_weights(w_pt, w_img):
    """(Cin,Cout,2,2) -> (W*Cin, 2*2W*Cout) block matrix whose matmul result is
    already ordered (dy, out_col, co): the 2x2 pixel shuffle becomes a reshape."""
    cin, cout = w_pt.shape[0], w_pt.shape[1]
    pp = jnp.arange(w_img)[:, None, None]
    qq = jnp.arange(2 * w_img)[None, :, None]
    dd = jnp.arange(2)[None, None, :]
    sel = (qq == 2 * pp + dd).astype(w_pt.dtype)                    # (W, 2W, 2)
    wup = jnp.einsum("pqx,iojx->pijqo", sel, w_pt)                  # (W,Ci,2,2W,Co)
    return wup.reshape(w_img * cin, 2 * 2 * w_img * cout)


def _bn_scale_shift(mean, var, gamma, beta, w_img, eps):
    inv = jax.lax.rsqrt(var + eps)
    scale = (gamma * inv).astype(jnp.float32)
    shift = (beta - mean * gamma * inv).astype(jnp.float32)
    return jnp.tile(scale, w_img)[None, :], jnp.tile(shift, w_img)[None, :]


# ------------------------- kernel: ConvTranspose2d(2,2) ------------------------

def _upsample_kernel(x_ref, w_ref, b_ref, o_ref, *, tr, out_w):
    x = x_ref[...].reshape(x_ref.shape[1], x_ref.shape[2])          # (tr, W*Cin)
    y = jnp.dot(x, w_ref[...], preferred_element_type=jnp.float32) + b_ref[...]
    # columns are (dy, out_col, co): the reshape IS the 2x2 pixel shuffle.
    o_ref[...] = y.reshape(1, 2 * tr, out_w).astype(o_ref.dtype)


def conv_transpose_2x2(x_lane, w_pt, bias, *, w_img, md):
    """x_lane: (N, H, W*Cin) lane-dense NHWC.  Returns (N, 2H, 2W*Cout)."""
    n, h, wcin = x_lane.shape
    cout = w_pt.shape[1]
    out_w = 2 * w_img * cout

    wup = _upsample_weights(w_pt, w_img).astype(md)
    b_t = jnp.tile(bias, 2 * 2 * w_img)[None, :].astype(jnp.float32)
    tr = _pick_row_tile(h, 4 * max(wcin, 2 * out_w))

    return pl.pallas_call(
        partial(_upsample_kernel, tr=tr, out_w=out_w),
        out_shape=jax.ShapeDtypeStruct((n, 2 * h, out_w), md),
        grid=(n, h // tr),
        in_specs=[
            pl.BlockSpec((1, tr, wcin), lambda i, r: (i, r, 0)),
            pl.BlockSpec((wcin, 2 * out_w), lambda i, r: (0, 0)),
            pl.BlockSpec((1, 2 * out_w), lambda i, r: (0, 0)),
        ],
        out_specs=pl.BlockSpec((1, 2 * tr, out_w), lambda i, r: (i, r, 0)),
        compiler_params=_cparams(("parallel", "parallel")),
    )(x_lane, wup, b_t)


# ---------------- kernels: banded 3x3 conv + partial BN stats -------------------

def _conv_stats_kernel(x_ref, w_ref, y_ref, st_ref, *, tr, wcout):
    r = pl.program_id(1)
    row0 = pl.multiple_of(r * tr, tr)
    wcin = x_ref.shape[-1]
    # Resident row-padded image; slice the (tr+2)-row halo for this tile.
    hx = x_ref[:, pl.ds(row0, tr + 2), :].reshape(tr + 2, wcin)
    patches = jnp.concatenate([hx[0:tr], hx[1:tr + 1], hx[2:tr + 2]], axis=1)
    acc = jnp.dot(patches, w_ref[...], preferred_element_type=jnp.float32)
    y_ref[...] = acc.reshape(1, tr, wcout).astype(y_ref.dtype)
    s1 = jnp.sum(acc, axis=0, keepdims=True)
    s2 = jnp.sum(acc * acc, axis=0, keepdims=True)
    st_ref[...] = jnp.concatenate([s1, s2], axis=0).reshape(1, 1, 2, wcout)


def _conv_stats_fused_kernel(x_ref, w_ref, sc_ref, sh_ref, y_ref, st_ref, *,
                             tr, wcout, h, md):
    # Input is the PREVIOUS stage's raw conv output (row padded); apply its
    # BN (scale/shift) + GELU here (fused), zeroing the out-of-image pad rows.
    r = pl.program_id(1)
    row0 = pl.multiple_of(r * tr, tr)
    wcin = x_ref.shape[-1]
    raw = x_ref[:, pl.ds(row0, tr + 2), :].reshape(tr + 2, wcin).astype(jnp.float32)
    rho = row0 + jax.lax.broadcasted_iota(jnp.int32, (tr + 2, 1), 0)
    inside = jnp.logical_and(rho >= 1, rho <= h)
    act = jnp.where(inside, _gelu_erf(raw * sc_ref[...] + sh_ref[...]), 0.0)
    act = act.astype(md)
    patches = jnp.concatenate([act[0:tr], act[1:tr + 1], act[2:tr + 2]], axis=1)
    acc = jnp.dot(patches, w_ref[...], preferred_element_type=jnp.float32)
    y_ref[...] = acc.reshape(1, tr, wcout).astype(y_ref.dtype)
    s1 = jnp.sum(acc, axis=0, keepdims=True)
    s2 = jnp.sum(acc * acc, axis=0, keepdims=True)
    st_ref[...] = jnp.concatenate([s1, s2], axis=0).reshape(1, 1, 2, wcout)


def _conv_bn_stats(x_lane, w_band, *, w_img, cout, md, prev=None):
    """3x3/stride1/pad1 conv (bias dropped: cancels in training-mode BN).

    x_lane: (N, H, W*Cin) lane-dense.  If prev is None it is an already
    activated input; otherwise prev=(scale_t, shift_t) and x_lane is the
    previous stage's RAW conv output (BN+GELU fused in here).
    Returns (y_raw (N,H,W*Cout) in md, batch mean (Cout,), biased var (Cout,)).
    """
    n, h, wcin = x_lane.shape
    wcout = w_img * cout
    xrp = jnp.pad(x_lane, ((0, 0), (1, 1), (0, 0)))           # row pad only
    tr = _pick_row_tile(h, 4 * max(wcin, wcout))
    r_steps = h // tr

    x_spec = pl.BlockSpec((1, h + 2, wcin), lambda i, r: (i, 0, 0))   # resident/img
    w_spec = pl.BlockSpec((3 * wcin, wcout), lambda i, r: (0, 0))
    vec_spec = pl.BlockSpec((1, wcin), lambda i, r: (0, 0))
    y_spec = pl.BlockSpec((1, tr, wcout), lambda i, r: (i, r, 0))
    st_spec = pl.BlockSpec((1, 1, 2, wcout), lambda i, r: (i, r, 0, 0))

    out_shape = (jax.ShapeDtypeStruct((n, h, wcout), md),
                 jax.ShapeDtypeStruct((n, r_steps, 2, wcout), jnp.float32))

    if prev is None:
        kern = partial(_conv_stats_kernel, tr=tr, wcout=wcout)
        in_specs = [x_spec, w_spec]
        args = (xrp, w_band)
    else:
        scale_t, shift_t = prev
        kern = partial(_conv_stats_fused_kernel, tr=tr, wcout=wcout, h=h, md=md)
        in_specs = [x_spec, w_spec, vec_spec, vec_spec]
        args = (xrp, w_band, scale_t, shift_t)

    y, stats = pl.pallas_call(
        kern,
        out_shape=out_shape,
        grid=(n, r_steps),
        in_specs=in_specs,
        out_specs=(y_spec, st_spec),
        compiler_params=_cparams(("parallel", "arbitrary")),
    )(*args)

    # Finalize BN batch stats on a length-2*Cout vector (biased variance, as
    # PyTorch training-mode BatchNorm2d).  All summed rows are real image rows.
    tot = jnp.sum(stats, axis=(0, 1)).reshape(2, w_img, cout).sum(axis=1)
    cnt = n * h * w_img
    mean = tot[0] / cnt
    var = jnp.maximum(tot[1] / cnt - mean * mean, 0.0)
    return y, mean, var


# ---------------- kernels: final BN apply + GELU (+ fused residual) -------------

def _bn_gelu_kernel(y_ref, sc_ref, sh_ref, o_ref):
    y = y_ref[...].astype(jnp.float32)
    o_ref[...] = _gelu_erf(y * sc_ref[...] + sh_ref[...]).astype(o_ref.dtype)


def _bn_gelu_res_kernel(y_ref, sc_ref, sh_ref, res_ref, o_ref):
    y = y_ref[...].astype(jnp.float32)
    out = _gelu_erf(y * sc_ref[...] + sh_ref[...]) + res_ref[...].astype(jnp.float32)
    o_ref[...] = out.astype(o_ref.dtype)


def _bn_gelu_apply(y_lane, scale_t, shift_t, residual_lane, *, md):
    n, h, wc = y_lane.shape
    rows = n * h
    tr = _pick_row_tile(rows, 4 * wc)
    yf = y_lane.reshape(rows, wc)

    row_spec = pl.BlockSpec((tr, wc), lambda i: (i, 0))
    vec_spec = pl.BlockSpec((1, wc), lambda i: (0, 0))
    args = [yf, scale_t, shift_t]
    specs = [row_spec, vec_spec, vec_spec]
    kern = _bn_gelu_kernel
    if residual_lane is not None:
        args.append(residual_lane.reshape(rows, wc))
        specs.append(row_spec)
        kern = _bn_gelu_res_kernel

    out = pl.pallas_call(
        kern,
        out_shape=jax.ShapeDtypeStruct((rows, wc), md),
        grid=(rows // tr,),
        in_specs=specs,
        out_specs=row_spec,
        compiler_params=_cparams(("parallel",)),
    )(*args)
    return out.reshape(n, h, wc)


# ----------------------------- module forward passes ---------------------------

def residual_conv_block(a_lane, w_img, p, *, is_res, eps=1e-5, md=jnp.float32):
    """ResidualConvBlock.forward on a lane-dense (N, H, W*C) activation."""
    n, h, wcin = a_lane.shape
    cin = wcin // w_img
    cout = p["w1"].shape[-1]
    same_channels = (cin == cout)

    band1 = _band_weights(p["w1"], w_img).astype(md)
    band2 = _band_weights(p["w2"], w_img).astype(md)

    # conv1 (+ partial BN1 stats).  Bias b1 cancels in training-mode BN.
    y1, m1, v1 = _conv_bn_stats(a_lane, band1, w_img=w_img, cout=cout, md=md)
    sc1, sh1 = _bn_scale_shift(m1, v1, p["g1"], p["be1"], w_img, eps)

    # conv2 with BN1-apply + GELU fused into its input load.
    y2, m2, v2 = _conv_bn_stats(y1, band2, w_img=w_img, cout=cout, md=md,
                                prev=(sc1, sh1))
    sc2, sh2 = _bn_scale_shift(m2, v2, p["g2"], p["be2"], w_img, eps)

    residual = None
    if is_res:
        if same_channels:
            residual = a_lane
        else:
            # x1 is otherwise never materialized; rare path (never hit in UNetUp).
            residual = _bn_gelu_apply(y1, sc1, sh1, None, md=md)
    return _bn_gelu_apply(y2, sc2, sh2, residual, md=md)


def unet_up(x_nchw, skip_nchw, params, *, is_res=False, eps=1e-5,
            matmul_dtype=jnp.float32):
    """UNetUp.forward: cat(x, skip) -> ConvTranspose2d(2,2) -> ResBlock x2 (NCHW)."""
    n, c, h, w = x_nchw.shape
    cat = jnp.concatenate([x_nchw, skip_nchw], axis=1)
    cin = cat.shape[1]
    x_lane = jnp.transpose(cat, (0, 2, 3, 1)).reshape(n, h, w * cin)
    x_lane = x_lane.astype(matmul_dtype)

    cout = params["up_w"].shape[1]
    up = conv_transpose_2x2(x_lane, params["up_w"], params["up_b"],
                            w_img=w, md=matmul_dtype)          # (N, 2H, 2W*Cout)
    h2, w2 = 2 * h, 2 * w
    a = residual_conv_block(up, w2, params["res1"], is_res=is_res, eps=eps,
                            md=matmul_dtype)
    a = residual_conv_block(a, w2, params["res2"], is_res=is_res, eps=eps,
                            md=matmul_dtype)
    out = a.astype(jnp.float32).reshape(n, h2, w2, cout)
    return jnp.transpose(out, (0, 3, 1, 2))                    # NCHW


# ------------------------------ pure-JAX reference -----------------------------

def _reference_unet_up(x_nchw, skip_nchw, params, *, is_res, eps=1e-5):
    xc = jnp.concatenate([x_nchw, skip_nchw], axis=1)
    x = jnp.transpose(xc, (0, 2, 3, 1)).astype(jnp.float32)

    # ConvTranspose2d(k=2, s=2) == input-dilated conv with the flipped kernel.
    wt = jnp.flip(jnp.transpose(params["up_w"], (2, 3, 0, 1)), axis=(0, 1))
    up = jax.lax.conv_general_dilated(
        x, wt, window_strides=(1, 1), padding=((1, 1), (1, 1)),
        lhs_dilation=(2, 2), dimension_numbers=("NHWC", "HWIO", "NHWC"))
    up = up + params["up_b"].reshape(1, 1, 1, -1)

    def conv_bn_gelu(z, w, b, g, be):
        y = jax.lax.conv_general_dilated(
            z, w, window_strides=(1, 1), padding=((1, 1), (1, 1)),
            dimension_numbers=("NHWC", "HWIO", "NHWC"))
        y = y + b.reshape(1, 1, 1, -1)   # bias kept here; cancels in training BN
        mean = jnp.mean(y, axis=(0, 1, 2), keepdims=True)
        var = jnp.mean((y - mean) ** 2, axis=(0, 1, 2), keepdims=True)
        y = (y - mean) / jnp.sqrt(var + eps)
        y = y * g.reshape(1, 1, 1, -1) + be.reshape(1, 1, 1, -1)
        return jax.nn.gelu(y, approximate=False)

    def resblock(z, p):
        x1 = conv_bn_gelu(z, p["w1"], p["b1"], p["g1"], p["be1"])
        x2 = conv_bn_gelu(x1, p["w2"], p["b2"], p["g2"], p["be2"])
        if is_res:
            return (z + x2) if z.shape[-1] == x2.shape[-1] else (x1 + x2)
        return x2

    h = resblock(up, params["res1"])
    h = resblock(h, params["res2"])
    return jnp.transpose(h, (0, 3, 1, 2))


# ----------------------------------- main --------------------------------------

def _make_params(key, cin, cout):
    ks = jax.random.split(key, 4)

    def res_params(kk):
        k = jax.random.split(kk, 8)
        return dict(
            w1=0.2 * jax.random.normal(k[0], (3, 3, cout, cout), jnp.float32),
            b1=0.1 * jax.random.normal(k[1], (cout,), jnp.float32),
            g1=1.0 + 0.1 * jax.random.normal(k[2], (cout,), jnp.float32),
            be1=0.1 * jax.random.normal(k[3], (cout,), jnp.float32),
            w2=0.2 * jax.random.normal(k[4], (3, 3, cout, cout), jnp.float32),
            b2=0.1 * jax.random.normal(k[5], (cout,), jnp.float32),
            g2=1.0 + 0.1 * jax.random.normal(k[6], (cout,), jnp.float32),
            be2=0.1 * jax.random.normal(k[7], (cout,), jnp.float32),
        )

    return dict(
        up_w=0.3 * jax.random.normal(ks[0], (cin, cout, 2, 2), jnp.float32),
        up_b=0.1 * jax.random.normal(ks[1], (cout,), jnp.float32),
        res1=res_params(ks[2]),
        res2=res_params(ks[3]),
    )


if __name__ == "__main__":
    key = jax.random.PRNGKey(0)
    kx, ksk, kp = jax.random.split(key, 3)

    N, C, H, W = 2, 4, 16, 16               # x and skip each (2, 4, 16, 16)
    CIN, COUT = 2 * C, 8                    # concat -> 8 ch; output (2, 8, 32, 32)
    x = jax.random.normal(kx, (N, C, H, W), jnp.float32)
    skip = jax.random.normal(ksk, (N, C, H, W), jnp.float32)
    params = _make_params(kp, CIN, COUT)

    # Config A: is_res=True, f32 matmul inputs (tight check).
    run_f32 = jax.jit(partial(unet_up, is_res=True, matmul_dtype=jnp.float32))
    out = jax.block_until_ready(run_f32(x, skip, params))
    ref = _reference_unet_up(x, skip, params, is_res=True)
    assert out.shape == (N, COUT, 2 * H, 2 * W)
    err = float(jnp.max(jnp.abs(out - ref)))
    assert err < 5e-2, f"f32 mismatch: {err}"

    # Config B: is_res=False, bf16 MXU operands + bf16 activation round-trips
    # (f32 accumulation / BN / GELU) -- loose check.
    run_bf16 = jax.jit(partial(unet_up, is_res=False, matmul_dtype=jnp.bfloat16))
    out_bf = jax.block_until_ready(run_bf16(x, skip, params))
    ref_bf = _reference_unet_up(x, skip, params, is_res=False)
    err_bf = float(jnp.max(jnp.abs(out_bf - ref_bf)))
    assert err_bf < 0.45, f"bf16 mismatch: {err_bf}"

    print("KERNEL_OK")
</pallas_src>

<mosaic_0001>
module attributes {stable_mosaic.version = 11 : i64} {
  func.func @_upsample_kernel(%arg0: i32, %arg1: i32, %arg2: memref<1x8x128xf32, #tpu.memory_space<vmem>>, %arg3: memref<128x512xf32, #tpu.memory_space<vmem>>, %arg4: memref<1x512xf32, #tpu.memory_space<vmem>>, %arg5: memref<1x16x256xf32, #tpu.memory_space<vmem>>) attributes {dimension_semantics = [#tpu.dimension_semantics<parallel>, #tpu.dimension_semantics<parallel>], iteration_bounds = array<i64: 2, 2>, scalar_prefetch = 0 : i64, scratch_operands = 0 : i64, tpu.core_type = #tpu.core_type<tc>, window_params = [{transform_indices = @transform_0, window_bounds = array<i64: 1, 8, 128>}, {pipeline_mode = #tpu.pipeline_mode<synchronous>, transform_indices = @transform_1, window_bounds = array<i64: 128, 512>}, {pipeline_mode = #tpu.pipeline_mode<synchronous>, transform_indices = @transform_2, window_bounds = array<i64: 1, 512>}, {transform_indices = @transform_3, window_bounds = array<i64: 1, 16, 256>}]} {
    %c0 = arith.constant 0 : index
    %c0_0 = arith.constant 0 : index
    %c0_1 = arith.constant 0 : index
    %0 = vector.load %arg2[%c0, %c0_0, %c0_1] : memref<1x8x128xf32, #tpu.memory_space<vmem>>, vector<1x8x128xf32>
    %1 = vector.shape_cast %0 : vector<1x8x128xf32> to vector<8x128xf32>
    %c0_2 = arith.constant 0 : index
    %c0_3 = arith.constant 0 : index
    %2 = vector.load %arg3[%c0_2, %c0_3] : memref<128x512xf32, #tpu.memory_space<vmem>>, vector<128x512xf32>
    %cst = arith.constant dense<0.000000e+00> : vector<8x512xf32>
    %3 = tpu.matmul %1, %2, %cst {dimension_numbers = #tpu.dot_dimension_numbers<[1], [0], [0], [1], [0, 0, 1, 1], [], []>} : vector<8x128xf32>, vector<128x512xf32>, vector<8x512xf32> -> vector<8x512xf32>
    %c0_4 = arith.constant 0 : index
    %c0_5 = arith.constant 0 : index
    %4 = vector.load %arg4[%c0_4, %c0_5] : memref<1x512xf32, #tpu.memory_space<vmem>>, vector<1x512xf32>
    %5 = vector.broadcast %4 : vector<1x512xf32> to vector<8x512xf32>
    %6 = arith.addf %3, %5 : vector<8x512xf32>
    %7 = vector.shape_cast %6 : vector<8x512xf32> to vector<1x16x256xf32>
    %c0_6 = arith.constant 0 : index
    %c0_7 = arith.constant 0 : index
    %c0_8 = arith.constant 0 : index
    %8 = vector.load %arg5[%c0_6, %c0_7, %c0_8] : memref<1x16x256xf32, #tpu.memory_space<vmem>>, vector<1x16x256xf32>
    tpu.vector_store %arg5[%c0_6, %c0_7, %c0_8], %7 {strides = array<i32>} : memref<1x16x256xf32, #tpu.memory_space<vmem>>, vector<1x16x256xf32>,
    return
  }
  func.func @transform_0(%arg0: i32, %arg1: i32) -> (i32, i32, i32) {
    %c0_i32 = arith.constant 0 : i32
    %c0_i32_0 = arith.constant 0 : i32
    return %arg0, %arg1, %c0_i32 : i32, i32, i32
  }
  func.func @transform_1(%arg0: i32, %arg1: i32) -> (i32, i32) {
    %c0_i32 = arith.constant 0 : i32
    %c0_i32_0 = arith.constant 0 : i32
    %c0_i32_1 = arith.constant 0 : i32
    return %c0_i32, %c0_i32_0 : i32, i32
  }
  func.func @transform_2(%arg0: i32, %arg1: i32) -> (i32, i32) {
    %c0_i32 = arith.constant 0 : i32
    %c0_i32_0 = arith.constant 0 : i32
    %c0_i32_1 = arith.constant 0 : i32
    return %c0_i32, %c0_i32_0 : i32, i32
  }
  func.func @transform_3(%arg0: i32, %arg1: i32) -> (i32, i32, i32) {
    %c0_i32 = arith.constant 0 : i32
    %c0_i32_0 = arith.constant 0 : i32
    return %arg0, %arg1, %c0_i32 : i32, i32, i32
  }
}

module attributes {stable_mosaic.version = 11 : i64} {
  func.func @_conv_stats_kernel(%arg0: i32, %arg1: i32, %arg2: memref<1x34x256xf32, #tpu.memory_space<vmem>>, %arg3: memref<768x256xf32, #tpu.memory_space<vmem>>, %arg4: memref<1x8x256xf32, #tpu.memory_space<vmem>>, %arg5: memref<1x1x2x256xf32, #tpu.memory_space<vmem>>) attributes {dimension_semantics = [#tpu.dimension_semantics<parallel>, #tpu.dimension_semantics<arbitrary>], iteration_bounds = array<i64: 2, 4>, scalar_prefetch = 0 : i64, scratch_operands = 0 : i64, tpu.core_type = #tpu.core_type<tc>, window_params = [{transform_indices = @transform_0, window_bounds = array<i64: 1, 34, 256>}, {pipeline_mode = #tpu.pipeline_mode<synchronous>, transform_indices = @transform_1, window_bounds = array<i64: 768, 256>}, {transform_indices = @transform_2, window_bounds = array<i64: 1, 8, 256>}, {transform_indices = @transform_3, window_bounds = array<i64: 1, 1, 2, 256>}]} {
    %c8_i32 = arith.constant 8 : i32
    %0 = arith.muli %arg1, %c8_i32 : i32
    %1 = tpu.assume_multiple %0, 8 : i32
    %c0 = arith.constant 0 : index
    %2 = arith.index_cast %1 : i32 to index
    %c0_0 = arith.constant 0 : index
    %3 = vector.load %arg2[%c0, %2, %c0_0] : memref<1x34x256xf32, #tpu.memory_space<vmem>>, vector<1x10x256xf32>
    %4 = vector.shape_cast %3 : vector<1x10x256xf32> to vector<10x256xf32>
    %5 = vector.extract_strided_slice %4 {offsets = [0, 0], sizes = [8, 256], strides = [1, 1]} : vector<10x256xf32> to vector<8x256xf32>
    %6 = vector.extract_strided_slice %4 {offsets = [1, 0], sizes = [8, 256], strides = [1, 1]} : vector<10x256xf32> to vector<8x256xf32>
    %7 = vector.extract_strided_slice %4 {offsets = [2, 0], sizes = [8, 256], strides = [1, 1]} : vector<10x256xf32> to vector<8x256xf32>
    %8 = tpu.concatenate %5, %6, %7 in 1 : vector<8x256xf32>, vector<8x256xf32>, vector<8x256xf32> -> vector<8x768xf32>
    %c0_1 = arith.constant 0 : index
    %c0_2 = arith.constant 0 : index
    %9 = vector.load %arg3[%c0_1, %c0_2] : memref<768x256xf32, #tpu.memory_space<vmem>>, vector<768x256xf32>
    %cst = arith.constant dense<0.000000e+00> : vector<8x256xf32>
    %10 = tpu.matmul %8, %9, %cst {dimension_numbers = #tpu.dot_dimension_numbers<[1], [0], [0], [1], [0, 0, 1, 1], [], []>} : vector<8x768xf32>, vector<768x256xf32>, vector<8x256xf32> -> vector<8x256xf32>
    %11 = vector.shape_cast %10 : vector<8x256xf32> to vector<1x8x256xf32>
    %c0_3 = arith.constant 0 : index
    %c0_4 = arith.constant 0 : index
    %c0_5 = arith.constant 0 : index
    %12 = vector.load %arg4[%c0_3, %c0_4, %c0_5] : memref<1x8x256xf32, #tpu.memory_space<vmem>>, vector<1x8x256xf32>
    tpu.vector_store %arg4[%c0_3, %c0_4, %c0_5], %11 {strides = array<i32>} : memref<1x8x256xf32, #tpu.memory_space<vmem>>, vector<1x8x256xf32>,
    %cst_6 = arith.constant dense<0.000000e+00> : vector<256xf32>
    %13 = vector.multi_reduction <add>, %10, %cst_6 [0] : vector<8x256xf32> to vector<256xf32>
    %14 = vector.shape_cast %13 : vector<256xf32> to vector<1x256xf32>
    %15 = arith.mulf %10, %10 : vector<8x256xf32>
    %cst_7 = arith.constant dense<0.000000e+00> : vector<256xf32>
    %16 = vector.multi_reduction <add>, %15, %cst_7 [0] : vector<8x256xf32> to vector<256xf32>
    %17 = vector.shape_cast %16 : vector<256xf32> to vector<1x256xf32>
    %18 = tpu.concatenate %14, %17 in 0 : vector<1x256xf32>, vector<1x256xf32> -> vector<2x256xf32>
    %19 = vector.shape_cast %18 : vector<2x256xf32> to vector<1x1x2x256xf32>
    %c0_8 = arith.constant 0 : index
    %c0_9 = arith.constant 0 : index
    %c0_10 = arith.constant 0 : index
    %c0_11 = arith.constant 0 : index
    %20 = vector.load %arg5[%c0_8, %c0_9, %c0_10, %c0_11] : memref<1x1x2x256xf32, #tpu.memory_space<vmem>>, vector<1x1x2x256xf32>
    tpu.vector_store %arg5[%c0_8, %c0_9, %c0_10, %c0_11], %19 {strides = array<i32>} : memref<1x1x2x256xf32, #tpu.memory_space<vmem>>, vector<1x1x2x256xf32>,
    return
  }
  func.func @transform_0(%arg0: i32, %arg1: i32) -> (i32, i32, i32) {
    %c0_i32 = arith.constant 0 : i32
    %c0_i32_0 = arith.constant 0 : i32
    %c0_i32_1 = arith.constant 0 : i32
    return %arg0, %c0_i32, %c0_i32_0 : i32, i32, i32
  }
  func.func @transform_1(%arg0: i32, %arg1: i32) -> (i32, i32) {
    %c0_i32 = arith.constant 0 : i32
    %c0_i32_0 = arith.constant 0 : i32
    %c0_i32_1 = arith.constant 0 : i32
    return %c0_i32, %c0_i32_0 : i32, i32
  }
  func.func @transform_2(%arg0: i32, %arg1: i32) -> (i32, i32, i32) {
    %c0_i32 = arith.constant 0 : i32
    %c0_i32_0 = arith.constant 0 : i32
    return %arg0, %arg1, %c0_i32 : i32, i32, i32
  }
  func.func @transform_3(%arg0: i32, %arg1: i32) -> (i32, i32, i32, i32) {
    %c0_i32 = arith.constant 0 : i32
    %c0_i32_0 = arith.constant 0 : i32
    %c0_i32_1 = arith.constant 0 : i32
    return %arg0, %arg1, %c0_i32, %c0_i32_0 : i32, i32, i32, i32
  }
}

module attributes {stable_mosaic.version = 11 : i64} {
  func.func @_conv_stats_fused_kernel(%arg0: i32, %arg1: i32, %arg2: memref<1x34x256xf32, #tpu.memory_space<vmem>>, %arg3: memref<768x256xf32, #tpu.memory_space<vmem>>, %arg4: memref<1x256xf32, #tpu.memory_space<vmem>>, %arg5: memref<1x256xf32, #tpu.memory_space<vmem>>, %arg6: memref<1x8x256xf32, #tpu.memory_space<vmem>>, %arg7: memref<1x1x2x256xf32, #tpu.memory_space<vmem>>) attributes {dimension_semantics = [#tpu.dimension_semantics<parallel>, #tpu.dimension_semantics<arbitrary>], iteration_bounds = array<i64: 2, 4>, scalar_prefetch = 0 : i64, scratch_operands = 0 : i64, tpu.core_type = #tpu.core_type<tc>, window_params = [{transform_indices = @transform_0, window_bounds = array<i64: 1, 34, 256>}, {pipeline_mode = #tpu.pipeline_mode<synchronous>, transform_indices = @transform_1, window_bounds = array<i64: 768, 256>}, {pipeline_mode = #tpu.pipeline_mode<synchronous>, transform_indices = @transform_2, window_bounds = array<i64: 1, 256>}, {pipeline_mode = #tpu.pipeline_mode<synchronous>, transform_indices = @transform_3, window_bounds = array<i64: 1, 256>}, {transform_indices = @transform_4, window_bounds = array<i64: 1, 8, 256>}, {transform_indices = @transform_5, window_bounds = array<i64: 1, 1, 2, 256>}]} {
    %c8_i32 = arith.constant 8 : i32
    %0 = arith.muli %arg1, %c8_i32 : i32
    %1 = tpu.assume_multiple %0, 8 : i32
    %c0 = arith.constant 0 : index
    %2 = arith.index_cast %1 : i32 to index
    %c0_0 = arith.constant 0 : index
    %3 = vector.load %arg2[%c0, %2, %c0_0] : memref<1x34x256xf32, #tpu.memory_space<vmem>>, vector<1x10x256xf32>
    %4 = vector.shape_cast %3 : vector<1x10x256xf32> to vector<10x256xf32>
    %5 = tpu.iota {dimensions = array<i32: 0>} : vector<10x1xi32>
    %6 = vector.broadcast %1 : i32 to vector<10x1xi32>
    %7 = arith.addi %6, %5 : vector<10x1xi32>
    %c1_i32 = arith.constant 1 : i32
    %8 = vector.broadcast %c1_i32 : i32 to vector<10x1xi32>
    %9 = arith.cmpi sge, %7, %8 : vector<10x1xi32>
    %c32_i32 = arith.constant 32 : i32
    %10 = vector.broadcast %c32_i32 : i32 to vector<10x1xi32>
    %11 = arith.cmpi sle, %7, %10 : vector<10x1xi32>
    %12 = arith.andi %9, %11 : vector<10x1xi1>
    %c0_1 = arith.constant 0 : index
    %c0_2 = arith.constant 0 : index
    %13 = vector.load %arg4[%c0_1, %c0_2] : memref<1x256xf32, #tpu.memory_space<vmem>>, vector<1x256xf32>
    %14 = vector.broadcast %13 : vector<1x256xf32> to vector<10x256xf32>
    %15 = arith.mulf %4, %14 : vector<10x256xf32>
    %c0_3 = arith.constant 0 : index
    %c0_4 = arith.constant 0 : index
    %16 = vector.load %arg5[%c0_3, %c0_4] : memref<1x256xf32, #tpu.memory_space<vmem>>, vector<1x256xf32>
    %17 = vector.broadcast %16 : vector<1x256xf32> to vector<10x256xf32>
    %18 = arith.addf %15, %17 : vector<10x256xf32>
    %cst = arith.constant 0.707106769 : f32
    %19 = vector.broadcast %cst : f32 to vector<10x256xf32>
    %20 = arith.mulf %18, %19 : vector<10x256xf32>
    %cst_5 = arith.constant 0.000000e+00 : f32
    %21 = vector.broadcast %cst_5 : f32 to vector<10x256xf32>
    %22 = arith.cmpf oge, %20, %21 : vector<10x256xf32>
    %cst_6 = arith.constant 1.000000e+00 : f32
    %cst_7 = arith.constant -1.000000e+00 : f32
    %23 = vector.broadcast %cst_6 : f32 to vector<10x256xf32>
    %24 = vector.broadcast %cst_7 : f32 to vector<10x256xf32>
    %25 = arith.select %22, %23, %24 : vector<10x256xi1>, vector<10x256xf32>
    %26 = math.absf %20 : vector<10x256xf32>
    %cst_8 = arith.constant 0.327591091 : f32
    %27 = vector.broadcast %cst_8 : f32 to vector<10x256xf32>
    %28 = arith.mulf %27, %26 : vector<10x256xf32>
    %cst_9 = arith.constant 1.000000e+00 : f32
    %29 = vector.broadcast %cst_9 : f32 to vector<10x256xf32>
    %30 = arith.addf %29, %28 : vector<10x256xf32>
    %31 = tpu.reciprocal %30 {approx = true} : vector<10x256xf32> -> vector<10x256xf32>
    %cst_10 = arith.constant 1.06140542 : f32
    %32 = vector.broadcast %cst_10 : f32 to vector<10x256xf32>
    %33 = arith.mulf %32, %31 : vector<10x256xf32>
    %cst_11 = arith.constant -1.45315206 : f32
    %34 = vector.broadcast %cst_11 : f32 to vector<10x256xf32>
    %35 = arith.addf %33, %34 : vector<10x256xf32>
    %36 = arith.mulf %35, %31 : vector<10x256xf32>
    %cst_12 = arith.constant 1.42141378 : f32
    %37 = vector.broadcast %cst_12 : f32 to vector<10x256xf32>
    %38 = arith.addf %36, %37 : vector<10x256xf32>
    %39 = arith.mulf %38, %31 : vector<10x256xf32>
    %cst_13 = arith.constant -0.284496725 : f32
    %40 = vector.broadcast %cst_13 : f32 to vector<10x256xf32>
    %41 = arith.addf %39, %40 : vector<10x256xf32>
    %42 = arith.mulf %41, %31 : vector<10x256xf32>
    %cst_14 = arith.constant 0.254829586 : f32
    %43 = vector.broadcast %cst_14 : f32 to vector<10x256xf32>
    %44 = arith.addf %42, %43 : vector<10x256xf32>
    %45 = arith.mulf %44, %31 : vector<10x256xf32>
    %cst_15 = arith.constant 0.000000e+00 : f32
    %46 = vector.broadcast %cst_15 : f32 to vector<10x256xf32>
    %47 = arith.subf %46, %26 : vector<10x256xf32>
    %48 = arith.mulf %47, %26 : vector<10x256xf32>
    %49 = math.exp %48 : vector<10x256xf32>
    %50 = arith.mulf %45, %49 : vector<10x256xf32>
    %cst_16 = arith.constant 1.000000e+00 : f32
    %51 = vector.broadcast %cst_16 : f32 to vector<10x256xf32>
    %52 = arith.subf %51, %50 : vector<10x256xf32>
    %53 = arith.mulf %25, %52 : vector<10x256xf32>
    %cst_17 = arith.constant 5.000000e-01 : f32
    %54 = vector.broadcast %cst_17 : f32 to vector<10x256xf32>
    %55 = arith.mulf %54, %18 : vector<10x256xf32>
    %cst_18 = arith.constant 1.000000e+00 : f32
    %56 = vector.broadcast %cst_18 : f32 to vector<10x256xf32>
    %57 = arith.addf %56, %53 : vector<10x256xf32>
    %58 = arith.mulf %55, %57 : vector<10x256xf32>
    %cst_19 = arith.constant 0.000000e+00 : f32
    %59 = vector.shape_cast %12 : vector<10x1xi1> to vector<10x1xi1>
    %60 = vector.broadcast %59 : vector<10x1xi1> to vector<10x256xi1>
    %61 = vector.broadcast %cst_19 : f32 to vector<10x256xf32>
    %62 = arith.select %60, %58, %61 : vector<10x256xi1>, vector<10x256xf32>
    %63 = vector.extract_strided_slice %62 {offsets = [0, 0], sizes = [8, 256], strides = [1, 1]} : vector<10x256xf32> to vector<8x256xf32>
    %64 = vector.extract_strided_slice %62 {offsets = [1, 0], sizes = [8, 256], strides = [1, 1]} : vector<10x256xf32> to vector<8x256xf32>
    %65 = vector.extract_strided_slice %62 {offsets = [2, 0], sizes = [8, 256], strides = [1, 1]} : vector<10x256xf32> to vector<8x256xf32>
    %66 = tpu.concatenate %63, %64, %65 in 1 : vector<8x256xf32>, vector<8x256xf32>, vector<8x256xf32> -> vector<8x768xf32>
    %c0_20 = arith.constant 0 : index
    %c0_21 = arith.constant 0 : index
    %67 = vector.load %arg3[%c0_20, %c0_21] : memref<768x256xf32, #tpu.memory_space<vmem>>, vector<768x256xf32>
    %cst_22 = arith.constant dense<0.000000e+00> : vector<8x256xf32>
    %68 = tpu.matmul %66, %67, %cst_22 {dimension_numbers = #tpu.dot_dimension_numbers<[1], [0], [0], [1], [0, 0, 1, 1], [], []>} : vector<8x768xf32>, vector<768x256xf32>, vector<8x256xf32> -> vector<8x256xf32>
    %69 = vector.shape_cast %68 : vector<8x256xf32> to vector<1x8x256xf32>
    %c0_23 = arith.constant 0 : index
    %c0_24 = arith.constant 0 : index
    %c0_25 = arith.constant 0 : index
    %70 = vector.load %arg6[%c0_23, %c0_24, %c0_25] : memref<1x8x256xf32, #tpu.memory_space<vmem>>, vector<1x8x256xf32>
    tpu.vector_store %arg6[%c0_23, %c0_24, %c0_25], %69 {strides = array<i32>} : memref<1x8x256xf32, #tpu.memory_space<vmem>>, vector<1x8x256xf32>,
    %cst_26 = arith.constant dense<0.000000e+00> : vector<256xf32>
    %71 = vector.multi_reduction <add>, %68, %cst_26 [0] : vector<8x256xf32> to vector<256xf32>
    %72 = vector.shape_cast %71 : vector<256xf32> to vector<1x256xf32>
    %73 = arith.mulf %68, %68 : vector<8x256xf32>
    %cst_27 = arith.constant dense<0.000000e+00> : vector<256xf32>
    %74 = vector.multi_reduction <add>, %73, %cst_27 [0] : vector<8x256xf32> to vector<256xf32>
    %75 = vector.shape_cast %74 : vector<256xf32> to vector<1x256xf32>
    %76 = tpu.concatenate %72, %75 in 0 : vector<1x256xf32>, vector<1x256xf32> -> vector<2x256xf32>
    %77 = vector.shape_cast %76 : vector<2x256xf32> to vector<1x1x2x256xf32>
    %c0_28 = arith.constant 0 : index
    %c0_29 = arith.constant 0 : index
    %c0_30 = arith.constant 0 : index
    %c0_31 = arith.constant 0 : index
    %78 = vector.load %arg7[%c0_28, %c0_29, %c0_30, %c0_31] : memref<1x1x2x256xf32, #tpu.memory_space<vmem>>, vector<1x1x2x256xf32>
    tpu.vector_store %arg7[%c0_28, %c0_29, %c0_30, %c0_31], %77 {strides = array<i32>} : memref<1x1x2x256xf32, #tpu.memory_space<vmem>>, vector<1x1x2x256xf32>,
    return
  }
  func.func @transform_0(%arg0: i32, %arg1: i32) -> (i32, i32, i32) {
    %c0_i32 = arith.constant 0 : i32
    %c0_i32_0 = arith.constant 0 : i32
    %c0_i32_1 = arith.constant 0 : i32
    return %arg0, %c0_i32, %c0_i32_0 : i32, i32, i32
  }
  func.func @transform_1(%arg0: i32, %arg1: i32) -> (i32, i32) {
    %c0_i32 = arith.constant 0 : i32
    %c0_i32_0 = arith.constant 0 : i32
    %c0_i32_1 = arith.constant 0 : i32
    return %c0_i32, %c0_i32_0 : i32, i32
  }
  func.func @transform_2(%arg0: i32, %arg1: i32) -> (i32, i32) {
    %c0_i32 = arith.constant 0 : i32
    %c0_i32_0 = arith.constant 0 : i32
    %c0_i32_1 = arith.constant 0 : i32
    return %c0_i32, %c0_i32_0 : i32, i32
  }
  func.func @transform_3(%arg0: i32, %arg1: i32) -> (i32, i32) {
    %c0_i32 = arith.constant 0 : i32
    %c0_i32_0 = arith.constant 0 : i32
    %c0_i32_1 = arith.constant 0 : i32
    return %c0_i32, %c0_i32_0 : i32, i32
  }
  func.func @transform_4(%arg0: i32, %arg1: i32) -> (i32, i32, i32) {
    %c0_i32 = arith.constant 0 : i32
    %c0_i32_0 = arith.constant 0 : i32
    return %arg0, %arg1, %c0_i32 : i32, i32, i32
  }
  func.func @transform_5(%arg0: i32, %arg1: i32) -> (i32, i32, i32, i32) {
    %c0_i32 = arith.constant 0 : i32
    %c0_i32_0 = arith.constant 0 : i32
    %c0_i32_1 = arith.constant 0 : i32
    return %arg0, %arg1, %c0_i32, %c0_i32_0 : i32, i32, i32, i32
  }
}

module attributes {stable_mosaic.version = 11 : i64} {
  func.func @_bn_gelu_res_kernel(%arg0: i32, %arg1: memref<16x256xf32, #tpu.memory_space<vmem>>, %arg2: memref<1x256xf32, #tpu.memory_space<vmem>>, %arg3: memref<1x256xf32, #tpu.memory_space<vmem>>, %arg4: memref<16x256xf32, #tpu.memory_space<vmem>>, %arg5: memref<16x256xf32, #tpu.memory_space<vmem>>) attributes {dimension_semantics = [#tpu.dimension_semantics<parallel>], iteration_bounds = array<i64: 4>, scalar_prefetch = 0 : i64, scratch_operands = 0 : i64, tpu.core_type = #tpu.core_type<tc>, window_params = [{transform_indices = @transform_0, window_bounds = array<i64: 16, 256>}, {pipeline_mode = #tpu.pipeline_mode<synchronous>, transform_indices = @transform_1, window_bounds = array<i64: 1, 256>}, {pipeline_mode = #tpu.pipeline_mode<synchronous>, transform_indices = @transform_2, window_bounds = array<i64: 1, 256>}, {transform_indices = @transform_3, window_bounds = array<i64: 16, 256>}, {transform_indices = @transform_4, window_bounds = array<i64: 16, 256>}]} {
    %c0 = arith.constant 0 : index
    %c0_0 = arith.constant 0 : index
    %0 = vector.load %arg1[%c0, %c0_0] : memref<16x256xf32, #tpu.memory_space<vmem>>, vector<16x256xf32>
    %c0_1 = arith.constant 0 : index
    %c0_2 = arith.constant 0 : index
    %1 = vector.load %arg2[%c0_1, %c0_2] : memref<1x256xf32, #tpu.memory_space<vmem>>, vector<1x256xf32>
    %2 = vector.broadcast %1 : vector<1x256xf32> to vector<16x256xf32>
    %3 = arith.mulf %0, %2 : vector<16x256xf32>
    %c0_3 = arith.constant 0 : index
    %c0_4 = arith.constant 0 : index
    %4 = vector.load %arg3[%c0_3, %c0_4] : memref<1x256xf32, #tpu.memory_space<vmem>>, vector<1x256xf32>
    %5 = vector.broadcast %4 : vector<1x256xf32> to vector<16x256xf32>
    %6 = arith.addf %3, %5 : vector<16x256xf32>
    %cst = arith.constant 0.707106769 : f32
    %7 = vector.broadcast %cst : f32 to vector<16x256xf32>
    %8 = arith.mulf %6, %7 : vector<16x256xf32>
    %cst_5 = arith.constant 0.000000e+00 : f32
    %9 = vector.broadcast %cst_5 : f32 to vector<16x256xf32>
    %10 = arith.cmpf oge, %8, %9 : vector<16x256xf32>
    %cst_6 = arith.constant 1.000000e+00 : f32
    %cst_7 = arith.constant -1.000000e+00 : f32
    %11 = vector.broadcast %cst_6 : f32 to vector<16x256xf32>
    %12 = vector.broadcast %cst_7 : f32 to vector<16x256xf32>
    %13 = arith.select %10, %11, %12 : vector<16x256xi1>, vector<16x256xf32>
    %14 = math.absf %8 : vector<16x256xf32>
    %cst_8 = arith.constant 0.327591091 : f32
    %15 = vector.broadcast %cst_8 : f32 to vector<16x256xf32>
    %16 = arith.mulf %15, %14 : vector<16x256xf32>
    %cst_9 = arith.constant 1.000000e+00 : f32
    %17 = vector.broadcast %cst_9 : f32 to vector<16x256xf32>
    %18 = arith.addf %17, %16 : vector<16x256xf32>
    %19 = tpu.reciprocal %18 {approx = true} : vector<16x256xf32> -> vector<16x256xf32>
    %cst_10 = arith.constant 1.06140542 : f32
    %20 = vector.broadcast %cst_10 : f32 to vector<16x256xf32>
    %21 = arith.mulf %20, %19 : vector<16x256xf32>
    %cst_11 = arith.constant -1.45315206 : f32
    %22 = vector.broadcast %cst_11 : f32 to vector<16x256xf32>
    %23 = arith.addf %21, %22 : vector<16x256xf32>
    %24 = arith.mulf %23, %19 : vector<16x256xf32>
    %cst_12 = arith.constant 1.42141378 : f32
    %25 = vector.broadcast %cst_12 : f32 to vector<16x256xf32>
    %26 = arith.addf %24, %25 : vector<16x256xf32>
    %27 = arith.mulf %26, %19 : vector<16x256xf32>
    %cst_13 = arith.constant -0.284496725 : f32
    %28 = vector.broadcast %cst_13 : f32 to vector<16x256xf32>
    %29 = arith.addf %27, %28 : vector<16x256xf32>
    %30 = arith.mulf %29, %19 : vector<16x256xf32>
    %cst_14 = arith.constant 0.254829586 : f32
    %31 = vector.broadcast %cst_14 : f32 to vector<16x256xf32>
    %32 = arith.addf %30, %31 : vector<16x256xf32>
    %33 = arith.mulf %32, %19 : vector<16x256xf32>
    %cst_15 = arith.constant 0.000000e+00 : f32
    %34 = vector.broadcast %cst_15 : f32 to vector<16x256xf32>
    %35 = arith.subf %34, %14 : vector<16x256xf32>
    %36 = arith.mulf %35, %14 : vector<16x256xf32>
    %37 = math.exp %36 : vector<16x256xf32>
    %38 = arith.mulf %33, %37 : vector<16x256xf32>
    %cst_16 = arith.constant 1.000000e+00 : f32
    %39 = vector.broadcast %cst_16 : f32 to vector<16x256xf32>
    %40 = arith.subf %39, %38 : vector<16x256xf32>
    %41 = arith.mulf %13, %40 : vector<16x256xf32>
    %cst_17 = arith.constant 5.000000e-01 : f32
    %42 = vector.broadcast %cst_17 : f32 to vector<16x256xf32>
    %43 = arith.mulf %42, %6 : vector<16x256xf32>
    %cst_18 = arith.constant 1.000000e+00 : f32
    %44 = vector.broadcast %cst_18 : f32 to vector<16x256xf32>
    %45 = arith.addf %44, %41 : vector<16x256xf32>
    %46 = arith.mulf %43, %45 : vector<16x256xf32>
    %c0_19 = arith.constant 0 : index
    %c0_20 = arith.constant 0 : index
    %47 = vector.load %arg4[%c0_19, %c0_20] : memref<16x256xf32, #tpu.memory_space<vmem>>, vector<16x256xf32>
    %48 = arith.addf %46, %47 : vector<16x256xf32>
    %c0_21 = arith.constant 0 : index
    %c0_22 = arith.constant 0 : index
    %49 = vector.load %arg5[%c0_21, %c0_22] : memref<16x256xf32, #tpu.memory_space<vmem>>, vector<16x256xf32>
    tpu.vector_store %arg5[%c0_21, %c0_22], %48 {strides = array<i32>} : memref<16x256xf32, #tpu.memory_space<vmem>>, vector<16x256xf32>,
    return
  }
  func.func @transform_0(%arg0: i32) -> (i32, i32) {
    %c0_i32 = arith.constant 0 : i32
    %c0_i32_0 = arith.constant 0 : i32
    return %arg0, %c0_i32 : i32, i32
  }
  func.func @transform_1(%arg0: i32) -> (i32, i32) {
    %c0_i32 = arith.constant 0 : i32
    %c0_i32_0 = arith.constant 0 : i32
    %c0_i32_1 = arith.constant 0 : i32
    return %c0_i32, %c0_i32_0 : i32, i32
  }
  func.func @transform_2(%arg0: i32) -> (i32, i32) {
    %c0_i32 = arith.constant 0 : i32
    %c0_i32_0 = arith.constant 0 : i32
    %c0_i32_1 = arith.constant 0 : i32
    return %c0_i32, %c0_i32_0 : i32, i32
  }
  func.func @transform_3(%arg0: i32) -> (i32, i32) {
    %c0_i32 = arith.constant 0 : i32
    %c0_i32_0 = arith.constant 0 : i32
    return %arg0, %c0_i32 : i32, i32
  }
  func.func @transform_4(%arg0: i32) -> (i32, i32) {
    %c0_i32 = arith.constant 0 : i32
    %c0_i32_0 = arith.constant 0 : i32
    return %arg0, %c0_i32 : i32, i32
  }
}

</mosaic_0001>

<bundles_post_ra>
// kernel: tile.48
= control target key start
LH: loop header
LB: loop body
LE: loop exit
PB: predicated region body
PF: predicated region fallthrough
CT: control target
= control target key end

     0   :  { %s64_s0 = inlined_call_operand.vmem [shape: f32[8], index: 0, kind: input, shape index: {}]   ;;  %s65_s1 = inlined_call_operand.vmem [shape: f32[64,8], index: 1, kind: output, shape index: {}]  }
   0x1   :  { %v4_v0 = vld [vmem:[%s64_s0] ss:$0 sm:$0xff] }
   0x2   :  { %5 = vst [vmem:[%s65_s1] sm:$0xff] %v4_v0  ;;  %20 = vst [vmem:[%s65_s1 + $0x8] sm:$0xff] %v4_v0 }
   0x3   :  { %21 = vst [vmem:[%s65_s1 + $0x10] sm:$0xff] %v4_v0  ;;  %22 = vst [vmem:[%s65_s1 + $0x18] sm:$0xff] %v4_v0 }
   0x4   :  { %23 = vst [vmem:[%s65_s1 + $0x20] sm:$0xff] %v4_v0  ;;  %24 = vst [vmem:[%s65_s1 + $0x28] sm:$0xff] %v4_v0 }
   0x5   :  { %25 = vst [vmem:[%s65_s1 + $0x30] sm:$0xff] %v4_v0  ;;  %26 = vst [vmem:[%s65_s1 + $0x38] sm:$0xff] %v4_v0 }

// kernel: tile.49
= control target key start
LH: loop header
LB: loop body
LE: loop exit
PB: predicated region body
PF: predicated region fallthrough
CT: control target
= control target key end

     0   :  { %vm6_vm0 = vcmask 1043458   ;;  %s11_s6 = smov 3  ;;  %s14_s7 = smov 12  ;;  %vm8_vm1 = vcmask 64512   ;;  %vm20_vm2 = vcmask 1048512   ;;  %vm32_vm3 = vcmask 982912   ;;  %s412_s0 = inlined_call_operand.vmem [shape: f32[64,8], index: 0, kind: input, shape index: {}]   ;;  %s413_s1 = inlined_call_operand.vmem [shape: f32[1,512], index: 1, kind: output, shape index: {}]  }
   0x1   :  { %v215_v0 = vld [vmem:[%s412_s0 + $0xf] ss:$16 sm:%s11_s6]   ;;  %s35_s12 = smov 3  ;;  %s38_s15 = smov 12  ;;  %vm44_vm4 = vcmask 917312   ;;  %vm56_vm5 = vcmask 851712  }
   0x2   :  { %v216_v1 = vld [vmem:[%s412_s0 + $0xf] ss:$16 sm:%s14_s7]   ;;  %v219_v3 = vld [vmem:[%s412_s0 + $0xd] ss:$16 sm:%s35_s12]   ;;  %s263_s16 = smov 120   ;;  %s23_s19 = smov 3 }
   0x3   :  { %v17_v2 = vsel %vm6_vm0, %v216_v1, %v215_v0  ;;  %v220_v4 = vld [vmem:[%s412_s0 + $0xd] ss:$16 sm:%s38_s15]   ;;  %s26_s20 = smov 12  ;;  %v217_v6 = vld [vmem:[%s412_s0 + $0xe] ss:$16 sm:%s23_s19]   ;;  %s47_s25 = smov 3 }
   0x4   :  { %18 = vrot.lane.b32.xlu0 %v17_v2, %s263_s16  ;;  %v41_v5 = vsel %vm6_vm0, %v220_v4, %v219_v3  ;;  %v218_v7 = vld [vmem:[%s412_s0 + $0xe] ss:$16 sm:%s26_s20]   ;;  %s264_s26 = smov 104   ;;  %s50_s29 = smov 12  ;;  %vm68_vm6 = vcmask 786112   ;;  %vm80_vm7 = vcmask 720512  }
   0x5   :  { %42 = vrot.lane.b32.xlu1 %v41_v5, %s264_s26  ;;  %v29_v8 = vsel %vm6_vm0, %v218_v7, %v217_v6  ;;  %v221_v9 = vld [vmem:[%s412_s0 + $0xc] ss:$16 sm:%s47_s25]   ;;  %s59_s3 = smov 3  ;;  %s62_s4 = smov 12  ;;  %vm92_vm8 = vcmask 654912   ;;  %vm104_vm9 = vcmask 589312  }
   0x6   :  { %v222_v10 = vld [vmem:[%s412_s0 + $0xc] ss:$16 sm:%s50_s29]   ;;  %s265_s5 = smov 112   ;;  %v223_v12 = vld [vmem:[%s412_s0 + $0xb] ss:$16 sm:%s59_s3]   ;;  %s71_s8 = smov 3 }
   0x7   :  { %v53_v11 = vsel %vm6_vm0, %v222_v10, %v221_v9  ;;  %v224_v13 = vld [vmem:[%s412_s0 + $0xb] ss:$16 sm:%s62_s4]   ;;  %v225_v14 = vld [vmem:[%s412_s0 + $0xa] ss:$16 sm:%s71_s8]   ;;  %s74_s13 = smov 12  ;;  %s266_s14 = smov 96  }
   0x8   :  { %30 = vrot.lane.b32.xlu0 %v29_v8, %s265_s5  ;;  %v65_v15 = vsel %vm6_vm0, %v224_v13, %v223_v12  ;;  %v226_v16 = vld [vmem:[%s412_s0 + $0xa] ss:$16 sm:%s74_s13]   ;;  %s83_s17 = smov 3  ;;  %s86_s18 = smov 12  ;;  %vm116_vm10 = vcmask 523712   ;;  %vm128_vm11 = vcmask 458112  }
   0x9   :  { %54 = vrot.lane.b32.xlu1 %v53_v11, %s266_s14  ;;  %v77_v17 = vsel %vm6_vm0, %v226_v16, %v225_v14  ;;  %v227_v18 = vld [vmem:[%s412_s0 + $0x9] ss:$16 sm:%s83_s17]   ;;  %s95_s23 = smov 3  ;;  %s267_s24 = smov 88   ;;  %vm140_vm12 = vcmask 392512   ;;  %vm152_vm13 = vcmask 326912  }
   0xa   :  { %v228_v19 = vld [vmem:[%s412_s0 + $0x9] ss:$16 sm:%s86_s18]   ;;  %v229_v20 = vld [vmem:[%s412_s0 + $0x8] ss:$16 sm:%s95_s23]   ;;  %s98_s27 = smov 12  ;;  %s107_s30 = smov 3 }
   0xb   :  { %v89_v21 = vsel %vm6_vm0, %v228_v19, %v227_v18  ;;  %v230_v22 = vld [vmem:[%s412_s0 + $0x8] ss:$16 sm:%s98_s27]   ;;  %s110_s2 = smov 12  ;;  %s268_s3 = smov 80   ;;  %v231_v23 = vld [vmem:[%s412_s0 + $0x7] ss:$16 sm:%s107_s30]  }
   0xc   :  { %66 = vrot.lane.b32.xlu0 %v65_v15, %s267_s24  ;;  %s119_s6 = smov 3  ;;  %v101_v24 = vsel %vm6_vm0, %v230_v22, %v229_v20  ;;  %v232_v25 = vld [vmem:[%s412_s0 + $0x7] ss:$16 sm:%s110_s2]   ;;  %s122_s11 = smov 12  ;;  %vm164_vm14 = vcmask 261312   ;;  %vm176_vm15 = vcmask 195712  }
   0xd   :  { %78 = vrot.lane.b32.xlu1 %v77_v17, %s268_s3  ;;  %v233_v26 = vld [vmem:[%s412_s0 + $0x6] ss:$16 sm:%s119_s6]   ;;  %s269_s12 = smov 72   ;;  %s131_s15 = smov 3  ;;  %v113_v28 = vsel %vm6_vm0, %v232_v25, %v231_v23 }
   0xe   :  { %v234_v27 = vld [vmem:[%s412_s0 + $0x6] ss:$16 sm:%s122_s11]   ;;  %s134_s16 = smov 12  ;;  %v235_v29 = vld [vmem:[%s412_s0 + $0x5] ss:$16 sm:%s131_s15]   ;;  %s143_s19 = smov 3 }
   0xf   :  { %s270_s20 = smov 64   ;;  %v236_v30 = vld [vmem:[%s412_s0 + $0x5] ss:$16 sm:%s134_s16]   ;;  %s146_s23 = smov 12  ;;  %v125_v31 = vsel %vm6_vm0, %v234_v27, %v233_v26  ;;  %v237_v32 = vld [vmem:[%s412_s0 + $0x4] ss:$16 sm:%s143_s19]  }
  0x10   :  { %90 = vrot.lane.b32.xlu0 %v89_v21, %s269_s12  ;;  %s155_s26 = smov 3  ;;  %s158_s27 = smov 12  ;;  %v238_v33 = vld [vmem:[%s412_s0 + $0x4] ss:$16 sm:%s146_s23]   ;;  %v137_v34 = vsel %vm6_vm0, %v236_v30, %v235_v29 }
  0x11   :  { %102 = vrot.lane.b32.xlu1 %v101_v24, %s270_s20  ;;  %s271_s28 = smov 56   ;;  %s167_s2 = smov 3  ;;  %v239_v35 = vld [vmem:[%s412_s0 + $0x3] ss:$16 sm:%s155_s26]   ;;  %v149_v37 = vsel %vm6_vm0, %v238_v33, %v237_v32 }
  0x12   :  { %s170_s5 = smov 12  ;;  %s272_s6 = smov 48   ;;  %v240_v36 = vld [vmem:[%s412_s0 + $0x3] ss:$16 sm:%s158_s27]   ;;  %v241_v38 = vld [vmem:[%s412_s0 + $0x2] ss:$16 sm:%s167_s2]  }
  0x13   :  { %s179_s9 = smov 3  ;;  %v242_v39 = vld [vmem:[%s412_s0 + $0x2] ss:$16 sm:%s170_s5]   ;;  %s182_s14 = smov 12  ;;  %v161_v41 = vsel %vm6_vm0, %v240_v36, %v239_v35 }
  0x14   :  { %114 = vrot.lane.b32.xlu0 %v113_v28, %s271_s28  ;;  %s2_s15 = smov 3  ;;  %s273_s16 = smov 40   ;;  %v243_v42 = vld [vmem:[%s412_s0 + $0x1] ss:$16 sm:%s179_s9]   ;;  %v173_v46 = vsel %vm6_vm0, %v242_v39, %v241_v38 }
  0x15   :  { %126 = vrot.lane.b32.xlu1 %v125_v31, %s272_s6  ;;  %v3_v40 = vld [vmem:[%s412_s0] ss:$16 sm:%s2_s15]   ;;  %s4_s19 = smov 12  ;;  %s274_s24 = smov 32  }
  0x16   :  { %v5_v43 = vld [vmem:[%s412_s0] ss:$16 sm:%s4_s19]   ;;  %v244_v44 = vld [vmem:[%s412_s0 + $0x1] ss:$16 sm:%s182_s14]   ;;  %s275_s0 = smov 24   ;;  %s276_s27 = smov 16  }
  0x17   :  { %v7_v45 = vsel %vm6_vm0, %v5_v43, %v3_v40  ;;  %v185_v47 = vsel %vm6_vm0, %v244_v44, %v243_v42  ;;  %s277_s28 = smov 8   ;;  %vm188_vm0 = vcmask 130112  }
  0x18   :  { %138 = vrot.lane.b32.xlu0 %v137_v34, %s273_s16  ;;  %9 = vst.msk [vmem:[#allocation0] ss:$8 sm:$0xf] %vm8_vm1, %v7_v45  }
  0x19   :  { %150 = vrot.lane.b32.xlu1 %v149_v37, %s274_s24 }
  0x1c   :  { %162 = vrot.lane.b32.xlu0 %v161_v41, %s275_s0 }
  0x1d   :  { %174 = vrot.lane.b32.xlu1 %v173_v46, %s276_s27 }
  0x20   :  { %186 = vrot.lane.b32.xlu0 %v185_v47, %s277_s28 }
  0x76   :  { %v19_v48 = vpop.permute.xlu0 %18  }
  0x77   :  { %21 = vst.msk [vmem:[#allocation0] ss:$8 sm:$0xf] %vm20_vm2, %v19_v48   ;;  %v43_v49 = vpop.permute.xlu1 %42  }
  0x7a   :  { %v31_v50 = vpop.permute.xlu0 %30  }
  0x7b   :  { %33 = vst.msk [vmem:[#allocation0] ss:$8 sm:$0xf] %vm32_vm3, %v31_v50   ;;  %v55_v51 = vpop.permute.xlu1 %54  }
  0x7c   :  { %45 = vst.msk [vmem:[#allocation0] ss:$8 sm:$0xf] %vm44_vm4, %v43_v49  }
  0x7d   :  { %57 = vst.msk [vmem:[#allocation0] ss:$8 sm:$0xf] %vm56_vm5, %v55_v51  }
  0x7e   :  { %v67_v52 = vpop.permute.xlu0 %66  }
  0x7f   :  { %69 = vst.msk [vmem:[#allocation0] ss:$8 sm:$0xf] %vm68_vm6, %v67_v52   ;;  %v79_v53 = vpop.permute.xlu1 %78  }
  0x80   :  { %81 = vst.msk [vmem:[#allocation0] ss:$8 sm:$0xf] %vm80_vm7, %v79_v53  }
  0x82   :  { %v91_v54 = vpop.permute.xlu0 %90  }
  0x83   :  { %93 = vst.msk [vmem:[#allocation0] ss:$8 sm:$0xf] %vm92_vm8, %v91_v54   ;;  %v103_v55 = vpop.permute.xlu1 %102  }
  0x84   :  { %105 = vst.msk [vmem:[#allocation0] ss:$8 sm:$0xf] %vm104_vm9, %v103_v55  }
  0x86   :  { %v115_v56 = vpop.permute.xlu0 %114  }
  0x87   :  { %117 = vst.msk [vmem:[#allocation0] ss:$8 sm:$0xf] %vm116_vm10, %v115_v56   ;;  %v127_v57 = vpop.permute.xlu1 %126  }
  0x88   :  { %129 = vst.msk [vmem:[#allocation0] ss:$8 sm:$0xf] %vm128_vm11, %v127_v57  }
  0x8a   :  { %v139_v58 = vpop.permute.xlu0 %138  }
  0x8b   :  { %141 = vst.msk [vmem:[#allocation0] ss:$8 sm:$0xf] %vm140_vm12, %v139_v58   ;;  %v151_v59 = vpop.permute.xlu1 %150  }
  0x8c   :  { %153 = vst.msk [vmem:[#allocation0] ss:$8 sm:$0xf] %vm152_vm13, %v151_v59  }
  0x8e   :  { %v163_v60 = vpop.permute.xlu0 %162  }
  0x8f   :  { %165 = vst.msk [vmem:[#allocation0] ss:$8 sm:$0xf] %vm164_vm14, %v163_v60   ;;  %v175_v61 = vpop.permute.xlu1 %174  }
  0x90   :  { %177 = vst.msk [vmem:[#allocation0] ss:$8 sm:$0xf] %vm176_vm15, %v175_v61  }
  0x92   :  { %v187_v62 = vpop.permute.xlu0 %186  }
  0x93   :  { %189 = vst.msk [vmem:[#allocation0] ss:$8 sm:$0xf] %vm188_vm0, %v187_v62  }
  0x9a   :  { %v193_v63 = vld [vmem:[#allocation0] sm:$0x1]  ;;  %v197_v0 = vld [vmem:[#allocation0 + $0x8] sm:$0x1]  ;;  %v202_v1 = vld [vmem:[#allocation0 + $0x10] sm:$0x1] }
  0x9b   :  { %195 = vst [vmem:[%s413_s1] sm:$0x1] %v193_v63  ;;  %245 = vst [vmem:[%s413_s1 + $0x1] sm:$0x1] %v197_v0  ;;  %v208_v2 = vld [vmem:[#allocation0 + $0x18] sm:$0x1] }
  0x9c   :  { %246 = vst [vmem:[%s413_s1 + $0x2] sm:$0x1] %v202_v1  ;;  %247 = vst [vmem:[%s413_s1 + $0x3] sm:$0x1] %v208_v2 }

// kernel: unet_up.7
= control target key start
LH: loop header
LB: loop body
LE: loop exit
PB: predicated region body
PF: predicated region fallthrough
CT: control target
= control target key end

     0   :  { %s803_s12 = smov 0   ;;  %s805_s13 = smov 0   ;;  %s1066_s0 = inlined_call_operand.vmem [shape: f32[2,16,128], index: 0, kind: input, shape index: {}]   ;;  %s1067_s1 = inlined_call_operand.vmem [shape: f32[128,512], index: 1, kind: input, shape index: {}]   ;;  %s1068_s2 = inlined_call_operand.vmem [shape: f32[1,512], index: 2, kind: input, shape index: {}]   ;;  %s1069_s3 = inlined_call_operand.vmem [shape: f32[2,32,256], index: 3, kind: output, shape index: {}]  }
   0x1   :  { %s807_s14 = smov 0   ;;  %s809_s15 = smov 0  }
   0x2   :  { %s811_s16 = smov 0  }
   0x3 LB: > { %s22_s17 = sadd.s32 1, %s770_s14  ;;  %s25_s18 = sadd.s32 1, %s774_s15  ;;  %s778_s16 = sphi %s811_s16, %s13_s16   ;;  %s774_s15 = sphi %s809_s15, %s1073_s15   ;;  %s770_s14 = sphi %s807_s14, %s1072_s14   ;;  %s766_s13 = sphi %s805_s13, %s1071_s13   ;;  %s762_s12 = sphi %s803_s12, %s1070_s12  }
   0x4   : > { %p23_p0 = scmp.ge.s32.totalorder %s22_s17, 2  ;;  %p624_p1 = scmp.ge.s32.totalorder %s778_s16, 1 }
   0x5   : > { %p156_p2 = scmp.lt.s32.totalorder %s778_s16, 5 }
   0x6   : > { %s1075_s17 = smov (%p23_p0, %s22_s17), 0  ;;  %s1077_s18 = smov (!%p23_p0, %s25_s18), %s774_s15 }
   0x7   : > { %p157_p3 = pnand %p624_p1, %p156_p2  ;;  %p27_p4 = scmp.ge.s32.totalorder %s1077_s18, 2 }
   0x8   : > { %v209_v0 = vld [vmem:[%s1067_s1 + $0x8] sm:$0xff] (!%p157_p3)  ;;  %v211_v2 = vld [vmem:[%s1067_s1 + $0x18] sm:$0xff] (!%p157_p3)  ;;  %v208_v5 = vld [vmem:[%s1067_s1] sm:$0xff] (!%p157_p3)  ;;  %v780_v7 = vmov (!%p157_p3), 0.0   ;;  %p188_p5 = scmp.lt.s32.totalorder (!%p157_p3), %s766_s13, 1  ;;  %p190_p6 = scmp.lt.s32.totalorder (!%p157_p3), %s762_s12, 1 }
   0x9   : > { %s1079_s18 = smov (%p27_p4, %s1077_s18), 0  ;;  %160 = sbr.rel (%p157_p3) target bundleno = 273 (0x111), region = 32 }
   0xa   : > { %v213_v1 = vld [vmem:[%s1067_s1 + $0x28] sm:$0xff] (!%p157_p3)  ;;  %v215_v4 = vld [vmem:[%s1067_s1 + $0x38] sm:$0xff] (!%p157_p3)  ;;  %v212_v6 = vld [vmem:[%s1067_s1 + $0x20] sm:$0xff] (!%p157_p3)  ;;  %358 = vmatprep.mubr.f32.mxu0 (!%p157_p3), %v780_v7  ;;  %429 = vmatprep.mubr.f32.mxu1 (!%p157_p3), %v780_v7  ;;  %s627_s7 = sshll.u32 (!%p157_p3), %s762_s12, 1 }
   0xb   : > { %v633_v3 = vpack.c.bf16 (!%p157_p3), %v213_v1, %v209_v0  ;;  %v665_v8 = vpack.c.bf16 (!%p157_p3), %v215_v4, %v211_v2  ;;  %v635_v9 = vpack.c.bf16 (!%p157_p3), %v212_v6, %v208_v5  ;;  %v210_v10 = vld [vmem:[%s1067_s1 + $0x10] sm:$0xff] (!%p157_p3)  ;;  %v217_v12 = vld [vmem:[%s1067_s1 + $0x48] sm:$0xff] (!%p157_p3)  ;;  %v219_v15 = vld [vmem:[%s1067_s1 + $0x58] sm:$0xff] (!%p157_p3)  ;;  %p199_p7 = scmp.lt.s32.totalorder (!%p157_p3), %s627_s7, 3 }
   0xc   : > { %v214_v11 = vld [vmem:[%s1067_s1 + $0x30] sm:$0xff] (!%p157_p3)  ;;  %v221_v14 = vld [vmem:[%s1067_s1 + $0x68] sm:$0xff] (!%p157_p3)  ;;  %v223_v16 = vld [vmem:[%s1067_s1 + $0x78] sm:$0xff] (!%p157_p3) }
   0xd   : > { %634 = vmatprep.subr.bf16.mxu0 (!%p157_p3), %v633_v3  ;;  %v667_v13 = vpack.c.bf16 (!%p157_p3), %v214_v11, %v210_v10  ;;  %666 = vmatprep.subr.bf16.mxu1 (!%p157_p3), %v665_v8  ;;  %v637_v17 = vpack.c.bf16 (!%p157_p3), %v221_v14, %v217_v12  ;;  %v669_v18 = vpack.c.bf16 (!%p157_p3), %v223_v16, %v219_v15  ;;  %v216_v19 = vld [vmem:[%s1067_s1 + $0x40] sm:$0xff] (!%p157_p3)  ;;  %v218_v21 = vld [vmem:[%s1067_s1 + $0x50] sm:$0xff] (!%p157_p3)  ;;  %v225_v24 = vld [vmem:[%s1067_s1 + $0x88] sm:$0xff] (!%p157_p3) }
   0xe   : > { %636 = vmatpush1.bf16.msra.mxu0 (!%p157_p3), %v635_v9  ;;  %v220_v20 = vld [vmem:[%s1067_s1 + $0x60] sm:$0xff] (!%p157_p3)  ;;  %v222_v23 = vld [vmem:[%s1067_s1 + $0x70] sm:$0xff] (!%p157_p3)  ;;  %v229_v25 = vld [vmem:[%s1067_s1 + $0xa8] sm:$0xff] (!%p157_p3) }
   0xf   : > { %668 = vmatpush1.bf16.msra.mxu1 (!%p157_p3), %v667_v13  ;;  %v639_v22 = vpack.c.bf16 (!%p157_p3), %v220_v20, %v216_v19  ;;  %638 = vmatprep.subr.bf16.mxu0 (!%p157_p3), %v637_v17  ;;  %v671_v26 = vpack.c.bf16 (!%p157_p3), %v222_v23, %v218_v21  ;;  %v641_v27 = vpack.c.bf16 (!%p157_p3), %v229_v25, %v225_v24  ;;  %v227_v28 = vld [vmem:[%s1067_s1 + $0x98] sm:$0xff] (!%p157_p3)  ;;  %v224_v30 = vld [vmem:[%s1067_s1 + $0x80] sm:$0xff] (!%p157_p3)  ;;  %v226_v33 = vld [vmem:[%s1067_s1 + $0x90] sm:$0xff] (!%p157_p3) }
  0x10   : > { %670 = vmatprep.subr.bf16.mxu1 %v669_v18  ;;  %v231_v29 = vld [vmem:[%s1067_s1 + $0xb8] sm:$0xff]  ;;  %v228_v32 = vld [vmem:[%s1067_s1 + $0xa0] sm:$0xff]  ;;  %v230_v34 = vld [vmem:[%s1067_s1 + $0xb0] sm:$0xff]  ;;  %s1081_s13 = smov (!%p188_p5, %s766_s13), 1  ;;  %s1083_s7 = smov (!%p199_p7, %s627_s7), 3 }
  0x11   : > { %v673_v31 = vpack.c.bf16 %v231_v29, %v227_v28  ;;  %v643_v35 = vpack.c.bf16 %v228_v32, %v224_v30  ;;  %v233_v36 = vld [vmem:[%s1067_s1 + $0xc8] sm:$0xff]  ;;  %v235_v38 = vld [vmem:[%s1067_s1 + $0xd8] sm:$0xff]  ;;  %v675_v39 = vpack.c.bf16 %v230_v34, %v226_v33  ;;  %v232_v42 = vld [vmem:[%s1067_s1 + $0xc0] sm:$0xff]  ;;  %s191_s23 = scalar_select %p190_p6, %s762_s12, 1  ;;  %v274_v34 = vlaneseq }
  0x12   : > { %640 = vmatpush1.bf16.msra.mxu0 %v639_v22  ;;  %v237_v37 = vld [vmem:[%s1067_s1 + $0xe8] sm:$0xff]  ;;  %v239_v41 = vld [vmem:[%s1067_s1 + $0xf8] sm:$0xff]  ;;  %v236_v43 = vld [vmem:[%s1067_s1 + $0xe0] sm:$0xff]  ;;  %s625_s24 = sshll.u32 %s1081_s13, 1  ;;  %s628_s12 = sshll.u32 %s1083_s7, 1 }
  0x13   : > { %672 = vmatpush1.bf16.msra.mxu1 %v671_v26  ;;  %642 = vmatprep.subr.bf16.mxu0 %v641_v27  ;;  %v645_v40 = vpack.c.bf16 %v237_v37, %v233_v36  ;;  %v677_v44 = vpack.c.bf16 %v239_v41, %v235_v38  ;;  %v234_v45 = vld [vmem:[%s1067_s1 + $0xd0] sm:$0xff]  ;;  %v241_v47 = vld [vmem:[%s1067_s1 + $0x108] sm:$0xff]  ;;  %v243_v49 = vld [vmem:[%s1067_s1 + $0x118] sm:$0xff]  ;;  %v647_v51 = vpack.c.bf16 %v236_v43, %v232_v42  ;;  %s193_s21 = sadd.s32 %s625_s24, %s191_s23  ;;  %s629_s10 = sshll.u32 %s1081_s13, 3 }
  0x14   : > { %674 = vmatprep.subr.bf16.mxu1 %v673_v31  ;;  %v238_v46 = vld [vmem:[%s1067_s1 + $0xf0] sm:$0xff]  ;;  %v245_v48 = vld [vmem:[%s1067_s1 + $0x128] sm:$0xff]  ;;  %v247_v50 = vld [vmem:[%s1067_s1 + $0x138] sm:$0xff]  ;;  %s626_s30 = sshll.u32 %s193_s21, 3  ;;  %s203_s11 = sadd.s32 %s629_s10, %s628_s12 }
  0x15   : > { %v679_v52 = vpack.c.bf16 %v238_v46, %v234_v45  ;;  %v649_v53 = vpack.c.bf16 %v245_v48, %v241_v47  ;;  %v240_v54 = vld [vmem:[%s1067_s1 + $0x100] sm:$0xff]  ;;  %v242_v56 = vld [vmem:[%s1067_s1 + $0x110] sm:$0xff]  ;;  %v681_v57 = vpack.c.bf16 %v247_v50, %v243_v49  ;;  %v249_v59 = vld [vmem:[%s1067_s1 + $0x148] sm:$0xff]  ;;  %s195_s6 = scalar_lea.vmem %s1066_s0, %s626_s30  ;;  %v782_v48 = vmov 1935823168   ;;  %s630_s19 = sshll.u32 %s203_s11, 3 }
  0x16   : > { %644 = vmatpush1.bf16.msra.mxu0 %v643_v35  ;;  %v244_v55 = vld [vmem:[%s1067_s1 + $0x120] sm:$0xff]  ;;  %v246_v58 = vld [vmem:[%s1067_s1 + $0x130] sm:$0xff]  ;;  %v253_v60 = vld [vmem:[%s1067_s1 + $0x168] sm:$0xff]  ;;  %v275_v35 = vshrl.u32 %v274_v34, 7  ;;  %v481_v49 = vunpack.c.l.s4 %v782_v48  ;;  %s205_s21 = scalar_lea.vmem %s1069_s3, %s630_s19 }
  0x17   : > { %676 = vmatpush1.bf16.msra.mxu1 %v675_v39  ;;  %646 = vmatprep.subr.bf16.mxu0 %v645_v40  ;;  %v251_v61 = vld [vmem:[%s1067_s1 + $0x158] sm:$0xff]  ;;  %v651_v63 = vpack.c.bf16 %v244_v55, %v240_v54  ;;  %v683_v0 = vpack.c.bf16 %v246_v58, %v242_v56  ;;  %v653_v1 = vpack.c.bf16 %v253_v60, %v249_v59  ;;  %v248_v2 = vld [vmem:[%s1067_s1 + $0x140] sm:$0xff]  ;;  %v250_v4 = vld [vmem:[%s1067_s1 + $0x150] sm:$0xff]  ;;  %v781_v40 = vmov 1983009808  }
  0x18   : > { %678 = vmatprep.subr.bf16.mxu1 %v677_v44  ;;  %v255_v62 = vld [vmem:[%s1067_s1 + $0x178] sm:$0xff]  ;;  %v252_v3 = vld [vmem:[%s1067_s1 + $0x160] sm:$0xff]  ;;  %v254_v6 = vld [vmem:[%s1067_s1 + $0x170] sm:$0xff]  ;;  %v276_v36 = vsub.s32 0, %v275_v35  ;;  %v284_v38 = vsub.s32 2, %v275_v35  ;;  %v280_v39 = vsub.s32 1, %v275_v35  ;;  %v445_v41 = vunpack.c.l.s4 %v781_v40 }
  0x19   : > { %v685_v5 = vpack.c.bf16 %v255_v62, %v251_v61  ;;  %v257_v7 = vld [vmem:[%s1067_s1 + $0x188] sm:$0xff]  ;;  %v259_v9 = vld [vmem:[%s1067_s1 + $0x198] sm:$0xff]  ;;  %v655_v11 = vpack.c.bf16 %v252_v3, %v248_v2  ;;  %v687_v12 = vpack.c.bf16 %v254_v6, %v250_v4  ;;  %v256_v14 = vld [vmem:[%s1067_s1 + $0x180] sm:$0xff]  ;;  %v288_v42 = vsub.s32 3, %v275_v35 }
  0x1a   : > { %648 = vmatpush1.bf16.msra.mxu0 %v647_v51  ;;  %v261_v8 = vld [vmem:[%s1067_s1 + $0x1a8] sm:$0xff]  ;;  %v263_v10 = vld [vmem:[%s1067_s1 + $0x1b8] sm:$0xff]  ;;  %v260_v15 = vld [vmem:[%s1067_s1 + $0x1a0] sm:$0xff]  ;;  %v446_v46 = vunpack.c.0.s8 %v445_v41  ;;  %v482_v59 = vunpack.c.0.s8 %v481_v49 }
  0x1b   : > { %680 = vmatpush1.bf16.msra.mxu1 %v679_v52  ;;  %650 = vmatprep.subr.bf16.mxu0 %v649_v53  ;;  %v657_v13 = vpack.c.bf16 %v261_v8, %v257_v7  ;;  %v258_v16 = vld [vmem:[%s1067_s1 + $0x190] sm:$0xff]  ;;  %v689_v17 = vpack.c.bf16 %v263_v10, %v259_v9  ;;  %v265_v19 = vld [vmem:[%s1067_s1 + $0x1c8] sm:$0xff]  ;;  %v267_v21 = vld [vmem:[%s1067_s1 + $0x1d8] sm:$0xff]  ;;  %v659_v23 = vpack.c.bf16 %v260_v15, %v256_v14 }
  0x1c   : > { %682 = vmatprep.subr.bf16.mxu1 %v681_v57  ;;  %v262_v18 = vld [vmem:[%s1067_s1 + $0x1b0] sm:$0xff]  ;;  %v269_v20 = vld [vmem:[%s1067_s1 + $0x1e8] sm:$0xff]  ;;  %v271_v22 = vld [vmem:[%s1067_s1 + $0x1f8] sm:$0xff]  ;;  %v449_v56 = vsub.s32 %v446_v46, %v275_v35  ;;  %v485_v4 = vsub.s32 %v482_v59, %v275_v35 }
  0x1d   : > { %v691_v24 = vpack.c.bf16 %v262_v18, %v258_v16  ;;  %v661_v25 = vpack.c.bf16 %v269_v20, %v265_v19  ;;  %v264_v26 = vld [vmem:[%s1067_s1 + $0x1c0] sm:$0xff]  ;;  %v693_v28 = vpack.c.bf16 %v271_v22, %v267_v21  ;;  %v266_v29 = vld [vmem:[%s1067_s1 + $0x1d0] sm:$0xff] }
  0x1e   : > { %652 = vmatpush1.bf16.msra.mxu0 %v651_v63  ;;  %v268_v27 = vld [vmem:[%s1067_s1 + $0x1e0] sm:$0xff]  ;;  %v270_v30 = vld [vmem:[%s1067_s1 + $0x1f0] sm:$0xff] }
  0x1f   : > { %684 = vmatpush1.bf16.msra.mxu1 %v683_v0  ;;  %654 = vmatprep.subr.bf16.mxu0 %v653_v1  ;;  %v663_v31 = vpack.c.bf16 %v268_v27, %v264_v26  ;;  %v695_v32 = vpack.c.bf16 %v270_v30, %v266_v29  ;;  %v207_v33 = vld [vmem:[%s195_s6] sm:$0xff] }
  0x20   : > { %686 = vmatprep.subr.bf16.mxu1 %v685_v5  ;;  %v272_v37 = vld [vmem:[%s1068_s2] sm:$0xf] }
  0x21   : > { %v277_v43 = vrot.slane %v272_v37, %v276_v36  ;;  %v285_v44 = vrot.slane %v272_v37, %v284_v38  ;;  %v281_v45 = vrot.slane %v272_v37, %v280_v39  ;;  %v289_v47 = vrot.slane %v272_v37, %v288_v42 }
  0x22   : > { %656 = vmatpush1.bf16.msra.mxu0 %v655_v11 }
  0x23   : > { %688 = vmatpush1.bf16.msra.mxu1 %v687_v12  ;;  %658 = vmatprep.subr.bf16.mxu0 %v657_v13 }
  0x24   : > { %690 = vmatprep.subr.bf16.mxu1 %v689_v17 }
  0x26   : > { %660 = vmatpush1.bf16.msra.mxu0 %v659_v23 }
  0x27   : > { %692 = vmatpush1.bf16.msra.mxu1 %v691_v24  ;;  %662 = vmatprep.subr.bf16.mxu0 %v661_v25 }
  0x28   : > { %694 = vmatprep.subr.bf16.mxu1 %v693_v28 }
  0x2a   : > { %664 = vmatpush1.bf16.msra.mxu0 %v663_v31 }
  0x2b   : > { %696 = vmatpush1.bf16.msra.mxu1 %v695_v32 }
  0x2d   : > { %359 = vmatmul.mubr.f32.vlgmr.msra.gmra.mrb[0].mxu0 %v207_v33 }
  0x2e   : > { %430 = vmatmul.mubr.f32.vlgmr.msra.gmra.mrb[0].mxu1 %v207_v33 }
 0x100   : > { %v360_v50 = vpop.f32.mrb[0].mxu0 }
 0x101   : > { %v361_v51 = vadd.f32 %v360_v50, %v277_v43  ;;  %v431_v52 = vpop.f32.mrb[0].mxu1  ;;  %v362_v53 = vpop.f32.mrb[1].mxu0 }
 0x102   : > { %v432_v54 = vadd.f32 %v431_v52, %v285_v44  ;;  %v363_v55 = vadd.f32 %v362_v53, %v281_v45  ;;  %v433_v57 = vpop.f32.mrb[1].mxu1 }
 0x103   : > { %v434_v58 = vadd.f32 %v433_v57, %v289_v47 }
 0x104   : > { %v440_v60 = vcombine.low %v361_v51, %v363_v55  ;;  %v441_v61 = vcombine.high %v361_v51, %v363_v55 }
 0x105   : > { %v442_v62 = vcombine.low %v432_v54, %v434_v58  ;;  %v443_v63 = vcombine.high %v432_v54, %v434_v58 }
 0x106   : > { %v450_v0 = vrot.slane %v440_v60, %v449_v56  ;;  %v457_v1 = vrot.slane %v441_v61, %v449_v56 }
 0x107   : > { %v464_v2 = vrot.slane %v442_v62, %v449_v56  ;;  %v471_v3 = vrot.slane %v443_v63, %v449_v56 }
 0x109   : > { %v472_v5 = vcombine.low %v450_v0, %v464_v2  ;;  %v473_v6 = vcombine.high %v450_v0, %v464_v2  ;;  %v474_v7 = vcombine.low %v457_v1, %v471_v3  ;;  %v475_v8 = vcombine.high %v457_v1, %v471_v3 }
 0x10b   : > { %v486_v9 = vrot.slane %v472_v5, %v485_v4  ;;  %v493_v10 = vrot.slane %v473_v6, %v485_v4  ;;  %v500_v11 = vrot.slane %v474_v7, %v485_v4  ;;  %v507_v12 = vrot.slane %v475_v8, %v485_v4 }
 0x10d   : > { %v512_v13 = vcombine.low %v486_v9, %v493_v10  ;;  %v513_v14 = vcombine.high %v486_v9, %v493_v10  ;;  %v514_v15 = vcombine.low %v500_v11, %v507_v12  ;;  %v515_v16 = vcombine.high %v500_v11, %v507_v12 }
 0x10f   : > { %520 = vst [vmem:[%s205_s21] sm:$0xff] %v512_v13  ;;  %521 = vst [vmem:[%s205_s21 + $0x8] sm:$0xff] %v513_v14 }
 0x110   : > { %522 = vst [vmem:[%s205_s21 + $0x10] sm:$0xff] %v514_v15  ;;  %523 = vst [vmem:[%s205_s21 + $0x18] sm:$0xff] %v515_v16 }
 0x111 PF: > { %s13_s16 = sadd.s32 1, %s778_s16   ;;  %s1070_s12 = smov %s770_s14 }
 0x112   : > { %p10_p8 = scmp.ge.s32.totalorder %s13_s16, 6   ;;  %s1071_s13 = smov %s774_s15 }
 0x113   : > { %s1072_s14 = smov %s1075_s17  ;;  %s1073_s15 = smov %s1079_s18 }
 0x114   :  { %12 = sbr.rel (!%p10_p8) target bundleno = 3 (0x3), region = 62 }

// kernel: mul.19
= control target key start
LH: loop header
LB: loop body
LE: loop exit
PB: predicated region body
PF: predicated region fallthrough
CT: control target
= control target key end

     0   :  { %s34_s0 = inlined_call_operand.vmem [shape: f32[8], index: 0, kind: input, shape index: {}]   ;;  %s35_s1 = inlined_call_operand.vmem [shape: f32[8], index: 1, kind: input, shape index: {}]   ;;  %s36_s2 = inlined_call_operand.vmem [shape: f32[8], index: 2, kind: output, shape index: {}]  }
   0x1   :  { %v3_v0 = vld [vmem:[%s34_s0] sm:$0x1] }
   0x2   :  { %v4_v1 = vld [vmem:[%s35_s1] sm:$0x1] }
   0x3   :  { %v7_v2 = vmul.f32 %v4_v1, %v3_v0 }
   0x5   :  { %9 = vst [vmem:[%s36_s2] sm:$0x1] %v7_v2 }

// kernel: tile.53
= control target key start
LH: loop header
LB: loop body
LE: loop exit
PB: predicated region body
PF: predicated region fallthrough
CT: control target
= control target key end

     0   :  { %s40_s0 = inlined_call_operand.vmem [shape: f32[8], index: 0, kind: input, shape index: {}]   ;;  %s41_s1 = inlined_call_operand.vmem [shape: f32[32,8], index: 1, kind: output, shape index: {}]  }
   0x1   :  { %v4_v0 = vld [vmem:[%s40_s0] ss:$0 sm:$0xff] }
   0x2   :  { %5 = vst [vmem:[%s41_s1] sm:$0xff] %v4_v0  ;;  %12 = vst [vmem:[%s41_s1 + $0x8] sm:$0xff] %v4_v0 }
   0x3   :  { %13 = vst [vmem:[%s41_s1 + $0x10] sm:$0xff] %v4_v0  ;;  %14 = vst [vmem:[%s41_s1 + $0x18] sm:$0xff] %v4_v0 }

// kernel: tile.54
= control target key start
LH: loop header
LB: loop body
LE: loop exit
PB: predicated region body
PF: predicated region fallthrough
CT: control target
= control target key end

     0   :  { %s7_s6 = smov 3  ;;  %s21_s9 = smov 3  ;;  %vm4_vm0 = vcmask 64512   ;;  %vm11_vm1 = vcmask 1048512   ;;  %vm18_vm2 = vcmask 982912   ;;  %vm25_vm3 = vcmask 917312   ;;  %s232_s0 = inlined_call_operand.vmem [shape: f32[32,8], index: 0, kind: input, shape index: {}]   ;;  %s233_s1 = inlined_call_operand.vmem [shape: f32[1,256], index: 1, kind: output, shape index: {}]  }
   0x1   :  { %v122_v0 = vld [vmem:[%s232_s0 + $0xf] ss:$16 sm:%s7_s6]   ;;  %s153_s10 = smov 120   ;;  %v124_v1 = vld [vmem:[%s232_s0 + $0xd] ss:$16 sm:%s21_s9]   ;;  %s14_s13 = smov 3 }
   0x2   :  { %9 = vrot.lane.b32.xlu0 %v122_v0, %s153_s10  ;;  %s154_s14 = smov 104   ;;  %v123_v2 = vld [vmem:[%s232_s0 + $0xe] ss:$16 sm:%s14_s13]   ;;  %s28_s17 = smov 3  ;;  %vm32_vm4 = vcmask 851712   ;;  %vm39_vm5 = vcmask 786112  }
   0x3   :  { %23 = vrot.lane.b32.xlu1 %v124_v1, %s154_s14  ;;  %v125_v3 = vld [vmem:[%s232_s0 + $0xc] ss:$16 sm:%s28_s17]   ;;  %s35_s20 = smov 3  ;;  %s42_s21 = smov 3  ;;  %vm46_vm6 = vcmask 720512   ;;  %vm53_vm7 = vcmask 654912  }
   0x4   :  { %s155_s22 = smov 112   ;;  %s156_s23 = smov 96   ;;  %v126_v4 = vld [vmem:[%s232_s0 + $0xb] ss:$16 sm:%s35_s20]   ;;  %v127_v5 = vld [vmem:[%s232_s0 + $0xa] ss:$16 sm:%s42_s21]  }
   0x5   :  { %s49_s28 = smov 3  ;;  %s56_s29 = smov 3  ;;  %vm60_vm8 = vcmask 589312   ;;  %vm67_vm9 = vcmask 523712   ;;  %vm74_vm10 = vcmask 458112   ;;  %vm81_vm11 = vcmask 392512  }
   0x6   :  { %16 = vrot.lane.b32.xlu0 %v123_v2, %s155_s22  ;;  %s157_s30 = smov 88   ;;  %s158_s2 = smov 80   ;;  %v128_v6 = vld [vmem:[%s232_s0 + $0x9] ss:$16 sm:%s49_s28]   ;;  %vm88_vm12 = vcmask 326912   ;;  %vm95_vm13 = vcmask 261312  }
   0x7   :  { %30 = vrot.lane.b32.xlu1 %v125_v3, %s156_s23  ;;  %v129_v7 = vld [vmem:[%s232_s0 + $0x8] ss:$16 sm:%s56_s29]   ;;  %s63_s7 = smov 3  ;;  %s70_s8 = smov 3  ;;  %vm102_vm14 = vcmask 195712   ;;  %vm109_vm15 = vcmask 130112  }
   0x8   :  { %s159_s9 = smov 72   ;;  %s160_s10 = smov 64   ;;  %v130_v8 = vld [vmem:[%s232_s0 + $0x7] ss:$16 sm:%s63_s7]   ;;  %v131_v9 = vld [vmem:[%s232_s0 + $0x6] ss:$16 sm:%s70_s8]  }
   0x9   :  { %s2_s13 = smov 3  ;;  %s77_s16 = smov 3 }
   0xa   :  { %37 = vrot.lane.b32.xlu0 %v126_v4, %s157_s30  ;;  %v3_v10 = vld [vmem:[%s232_s0] ss:$16 sm:%s2_s13]   ;;  %s84_s19 = smov 3  ;;  %s161_s20 = smov 56  }
   0xb   :  { %44 = vrot.lane.b32.xlu1 %v127_v5, %s158_s2  ;;  %5 = vst.msk [vmem:[#allocation0] ss:$8 sm:$0x3] %vm4_vm0, %v3_v10   ;;  %s162_s21 = smov 48   ;;  %v132_v11 = vld [vmem:[%s232_s0 + $0x5] ss:$16 sm:%s77_s16]  }
   0xc   :  { %v133_v12 = vld [vmem:[%s232_s0 + $0x4] ss:$16 sm:%s84_s19]   ;;  %s91_s26 = smov 3  ;;  %s98_s27 = smov 3 }
   0xd   :  { %s163_s28 = smov 40   ;;  %s164_s29 = smov 32   ;;  %v134_v13 = vld [vmem:[%s232_s0 + $0x3] ss:$16 sm:%s91_s26]   ;;  %v135_v14 = vld [vmem:[%s232_s0 + $0x2] ss:$16 sm:%s98_s27]  }
   0xe   :  { %51 = vrot.lane.b32.xlu0 %v128_v6, %s159_s9  ;;  %s105_s5 = smov 3  ;;  %s165_s6 = smov 24  }
   0xf   :  { %58 = vrot.lane.b32.xlu1 %v129_v7, %s160_s10  ;;  %s166_s7 = smov 16   ;;  %v136_v15 = vld [vmem:[%s232_s0 + $0x1] ss:$16 sm:%s105_s5]   ;;  %s167_s0 = smov 8  }
  0x12   :  { %65 = vrot.lane.b32.xlu0 %v130_v8, %s161_s20 }
  0x13   :  { %72 = vrot.lane.b32.xlu1 %v131_v9, %s162_s21 }
  0x16   :  { %79 = vrot.lane.b32.xlu0 %v132_v11, %s163_s28 }
  0x17   :  { %86 = vrot.lane.b32.xlu1 %v133_v12, %s164_s29 }
  0x1a   :  { %93 = vrot.lane.b32.xlu0 %v134_v13, %s165_s6 }
  0x1b   :  { %100 = vrot.lane.b32.xlu1 %v135_v14, %s166_s7 }
  0x1e   :  { %107 = vrot.lane.b32.xlu0 %v136_v15, %s167_s0 }
  0x74   :  { %v10_v16 = vpop.permute.xlu0 %9  }
  0x75   :  { %12 = vst.msk [vmem:[#allocation0] ss:$8 sm:$0x3] %vm11_vm1, %v10_v16   ;;  %v24_v17 = vpop.permute.xlu1 %23  }
  0x78   :  { %v17_v18 = vpop.permute.xlu0 %16  }
  0x79   :  { %19 = vst.msk [vmem:[#allocation0] ss:$8 sm:$0x3] %vm18_vm2, %v17_v18   ;;  %v31_v19 = vpop.permute.xlu1 %30  }
  0x7a   :  { %26 = vst.msk [vmem:[#allocation0] ss:$8 sm:$0x3] %vm25_vm3, %v24_v17  }
  0x7b   :  { %33 = vst.msk [vmem:[#allocation0] ss:$8 sm:$0x3] %vm32_vm4, %v31_v19  }
  0x7c   :  { %v38_v20 = vpop.permute.xlu0 %37  }
  0x7d   :  { %40 = vst.msk [vmem:[#allocation0] ss:$8 sm:$0x3] %vm39_vm5, %v38_v20   ;;  %v45_v21 = vpop.permute.xlu1 %44  }
  0x7e   :  { %47 = vst.msk [vmem:[#allocation0] ss:$8 sm:$0x3] %vm46_vm6, %v45_v21  }
  0x80   :  { %v52_v22 = vpop.permute.xlu0 %51  }
  0x81   :  { %54 = vst.msk [vmem:[#allocation0] ss:$8 sm:$0x3] %vm53_vm7, %v52_v22   ;;  %v59_v23 = vpop.permute.xlu1 %58  }
  0x82   :  { %61 = vst.msk [vmem:[#allocation0] ss:$8 sm:$0x3] %vm60_vm8, %v59_v23  }
  0x84   :  { %v66_v24 = vpop.permute.xlu0 %65  }
  0x85   :  { %68 = vst.msk [vmem:[#allocation0] ss:$8 sm:$0x3] %vm67_vm9, %v66_v24   ;;  %v73_v25 = vpop.permute.xlu1 %72  }
  0x86   :  { %75 = vst.msk [vmem:[#allocation0] ss:$8 sm:$0x3] %vm74_vm10, %v73_v25  }
  0x88   :  { %v80_v26 = vpop.permute.xlu0 %79  }
  0x89   :  { %82 = vst.msk [vmem:[#allocation0] ss:$8 sm:$0x3] %vm81_vm11, %v80_v26   ;;  %v87_v27 = vpop.permute.xlu1 %86  }
  0x8a   :  { %89 = vst.msk [vmem:[#allocation0] ss:$8 sm:$0x3] %vm88_vm12, %v87_v27  }
  0x8c   :  { %v94_v28 = vpop.permute.xlu0 %93  }
  0x8d   :  { %96 = vst.msk [vmem:[#allocation0] ss:$8 sm:$0x3] %vm95_vm13, %v94_v28   ;;  %v101_v29 = vpop.permute.xlu1 %100  }
  0x8e   :  { %103 = vst.msk [vmem:[#allocation0] ss:$8 sm:$0x3] %vm102_vm14, %v101_v29  }
  0x90   :  { %v108_v30 = vpop.permute.xlu0 %107  }
  0x91   :  { %110 = vst.msk [vmem:[#allocation0] ss:$8 sm:$0x3] %vm109_vm15, %v108_v30  }
  0x98   :  { %v114_v31 = vld [vmem:[#allocation0] sm:$0x1]  ;;  %v118_v32 = vld [vmem:[#allocation0 + $0x8] sm:$0x1] }
  0x99   :  { %116 = vst [vmem:[%s233_s1] sm:$0x1] %v114_v31  ;;  %137 = vst [vmem:[%s233_s1 + $0x1] sm:$0x1] %v118_v32 }

// kernel: unet_up.8
= control target key start
LH: loop header
LB: loop body
LE: loop exit
PB: predicated region body
PF: predicated region fallthrough
CT: control target
= control target key end

     0   :  { %s1153_s12 = smov 0   ;;  %s1155_s13 = smov 0   ;;  %s1831_s0 = inlined_call_operand.vmem [shape: f32[2,34,256], index: 0, kind: input, shape index: {}]   ;;  %s1832_s1 = inlined_call_operand.vmem [shape: f32[768,256], index: 1, kind: input, shape index: {}]   ;;  %s1833_s2 = inlined_call_operand.vmem [shape: f32[2,32,256], index: 2, kind: output, shape index: {0}]   ;;  %s1834_s3 = inlined_call_operand.vmem [shape: f32[2,4,2,256], index: 3, kind: output, shape index: {1}]  }
   0x1   :  { %s1157_s14 = smov 0   ;;  %s1159_s15 = smov 0  }
   0x2   :  { %s1161_s16 = smov 0  }
   0x3 LB: > { %s23_s17 = sadd.s32 1, %s1123_s14  ;;  %s26_s18 = sadd.s32 1, %s1127_s15  ;;  %s1131_s16 = sphi %s1161_s16, %s14_s16   ;;  %s1127_s15 = sphi %s1159_s15, %s1838_s15   ;;  %s1123_s14 = sphi %s1157_s14, %s1837_s14   ;;  %s1119_s13 = sphi %s1155_s13, %s1836_s13   ;;  %s1115_s12 = sphi %s1153_s12, %s1835_s12  }
   0x4   : > { %p24_p0 = scmp.ge.s32.totalorder %s23_s17, 4  ;;  %p841_p1 = scmp.ge.s32.totalorder %s1131_s16, 1 }
   0x5   : > { %p156_p2 = scmp.lt.s32.totalorder %s1131_s16, 9 }
   0x6   : > { %s1840_s17 = smov (%p24_p0, %s23_s17), 0  ;;  %s1842_s18 = smov (!%p24_p0, %s26_s18), %s1127_s15 }
   0x7   : > { %p157_p3 = pnand %p841_p1, %p156_p2  ;;  %p28_p4 = scmp.ge.s32.totalorder %s1842_s18, 2 }
   0x8   : > { %v313_v0 = vld [vmem:[%s1832_s1 + $0x208] sm:$0xff] (!%p157_p3)  ;;  %v315_v1 = vld [vmem:[%s1832_s1 + $0x218] sm:$0xff] (!%p157_p3)  ;;  %v312_v2 = vld [vmem:[%s1832_s1 + $0x200] sm:$0xff] (!%p157_p3)  ;;  %p193_p5 = scmp.lt.s32.totalorder (!%p157_p3), %s1119_s13, 1  ;;  %s849_s8 = sshll.u32 (!%p157_p3), %s1115_s12, 3  ;;  %vm230_vm0 = vcmask (!%p157_p3), 1046528  }
   0x9   : > { %s1844_s18 = smov (%p28_p4, %s1842_s18), 0  ;;  %160 = sbr.rel (%p157_p3) target bundleno = 373 (0x175), region = 28 }
   0xa   : > { %v920_v3 = vpack.c.bf16 (!%p157_p3), %v315_v1, %v313_v0  ;;  %v314_v4 = vld [vmem:[%s1832_s1 + $0x210] sm:$0xff] (!%p157_p3)  ;;  %v317_v5 = vld [vmem:[%s1832_s1 + $0x228] sm:$0xff] (!%p157_p3)  ;;  %v319_v6 = vld [vmem:[%s1832_s1 + $0x238] sm:$0xff] (!%p157_p3)  ;;  %s217_s21 = sshra.s32 (!%p157_p3), %s849_s8, 3  ;;  %vm239_vm1 = vcmask (!%p157_p3), 1045504   ;;  %p200_p6 = scmp.lt.s32.totalorder (!%p157_p3), %s1115_s12, 3 }
   0xb   : > { %v922_v7 = vpack.c.bf16 (!%p157_p3), %v314_v4, %v312_v2  ;;  %v924_v8 = vpack.c.bf16 (!%p157_p3), %v319_v6, %v317_v5  ;;  %v316_v9 = vld [vmem:[%s1832_s1 + $0x220] sm:$0xff] (!%p157_p3)  ;;  %v318_v10 = vld [vmem:[%s1832_s1 + $0x230] sm:$0xff] (!%p157_p3)  ;;  %v321_v11 = vld [vmem:[%s1832_s1 + $0x248] sm:$0xff] (!%p157_p3)  ;;  %s855_s29 = sshll.u32 (!%p157_p3), %s217_s21, 4  ;;  %vm681_vm2 = vcmask (!%p157_p3), 1040384  }
   0xc   : > { %921 = vmatprep.subr.bf16.mxu0 (!%p157_p3), %v920_v3  ;;  %v323_v12 = vld [vmem:[%s1832_s1 + $0x258] sm:$0xff] (!%p157_p3)  ;;  %v926_v13 = vpack.c.bf16 (!%p157_p3), %v318_v10, %v316_v9  ;;  %v320_v15 = vld [vmem:[%s1832_s1 + $0x240] sm:$0xff] (!%p157_p3)  ;;  %v322_v16 = vld [vmem:[%s1832_s1 + $0x250] sm:$0xff] (!%p157_p3) }
   0xd   : > { %923 = vmatpush1.bf16.msra.mxu0 (!%p157_p3), %v922_v7  ;;  %v928_v14 = vpack.c.bf16 (!%p157_p3), %v323_v12, %v321_v11  ;;  %v325_v17 = vld [vmem:[%s1832_s1 + $0x268] sm:$0xff] (!%p157_p3)  ;;  %v327_v18 = vld [vmem:[%s1832_s1 + $0x278] sm:$0xff] (!%p157_p3)  ;;  %v930_v19 = vpack.c.bf16 (!%p157_p3), %v322_v16, %v320_v15  ;;  %v324_v21 = vld [vmem:[%s1832_s1 + $0x260] sm:$0xff] (!%p157_p3) }
   0xe   : > { %925 = vmatprep.subr.bf16.mxu0 (!%p157_p3), %v924_v8  ;;  %v932_v20 = vpack.c.bf16 (!%p157_p3), %v327_v18, %v325_v17  ;;  %v326_v22 = vld [vmem:[%s1832_s1 + $0x270] sm:$0xff] (!%p157_p3)  ;;  %v329_v23 = vld [vmem:[%s1832_s1 + $0x288] sm:$0xff] (!%p157_p3)  ;;  %v331_v24 = vld [vmem:[%s1832_s1 + $0x298] sm:$0xff] (!%p157_p3) }
   0xf   : > { %v934_v25 = vpack.c.bf16 (!%p157_p3), %v326_v22, %v324_v21  ;;  %v936_v26 = vpack.c.bf16 (!%p157_p3), %v331_v24, %v329_v23  ;;  %v328_v27 = vld [vmem:[%s1832_s1 + $0x280] sm:$0xff] (!%p157_p3)  ;;  %v330_v28 = vld [vmem:[%s1832_s1 + $0x290] sm:$0xff] (!%p157_p3)  ;;  %v333_v29 = vld [vmem:[%s1832_s1 + $0x2a8] sm:$0xff] (!%p157_p3) }
  0x10   : > { %s1846_s13 = smov (!%p193_p5, %s1119_s13), 1  ;;  %v335_v30 = vld [vmem:[%s1832_s1 + $0x2b8] sm:$0xff]  ;;  %v938_v31 = vpack.c.bf16 %v330_v28, %v328_v27  ;;  %v332_v33 = vld [vmem:[%s1832_s1 + $0x2a0] sm:$0xff]  ;;  %v334_v34 = vld [vmem:[%s1832_s1 + $0x2b0] sm:$0xff]  ;;  %s1848_s12 = smov (!%p200_p6, %s1115_s12), 3 }
  0x11   : > { %927 = vmatpush1.bf16.msra.mxu0 %v926_v13  ;;  %s1052_s9 = smul.u32 80, %s1846_s13  ;;  %v940_v32 = vpack.c.bf16 %v335_v30, %v333_v29  ;;  %v337_v35 = vld [vmem:[%s1832_s1 + $0x2c8] sm:$0xff]  ;;  %v339_v36 = vld [vmem:[%s1832_s1 + $0x2d8] sm:$0xff]  ;;  %v942_v37 = vpack.c.bf16 %v334_v34, %v332_v33  ;;  %v336_v38 = vld [vmem:[%s1832_s1 + $0x2c0] sm:$0xff]  ;;  %s843_s5 = sshll.u32 %s1848_s12, 1 }
  0x12   : > { %929 = vmatprep.subr.bf16.mxu0 %v928_v14  ;;  %v338_v39 = vld [vmem:[%s1832_s1 + $0x2d0] sm:$0xff]  ;;  %v341_v40 = vld [vmem:[%s1832_s1 + $0x2e8] sm:$0xff]  ;;  %v944_v41 = vpack.c.bf16 %v339_v36, %v337_v35  ;;  %v343_v42 = vld [vmem:[%s1832_s1 + $0x2f8] sm:$0xff] }
  0x13   : > { %s197_s28 = scalar_lea.vmem %s1831_s0, %s1052_s9  ;;  %v249_v43 = vld [vmem:[%s1832_s1 + $0x8] sm:$0xff]  ;;  %v251_v44 = vld [vmem:[%s1832_s1 + $0x18] sm:$0xff]  ;;  %v248_v46 = vld [vmem:[%s1832_s1] sm:$0xff]  ;;  %v946_v53 = vpack.c.bf16 %v338_v39, %v336_v38  ;;  %v948_v58 = vpack.c.bf16 %v343_v42, %v341_v40 }
  0x14   : > { %s1274_s9 = scalar_lea.vmem %s197_s28, %s855_s29  ;;  %v856_v45 = vpack.c.bf16 %v251_v44, %v249_v43  ;;  %v250_v47 = vld [vmem:[%s1832_s1 + $0x10] sm:$0xff]  ;;  %v340_v49 = vld [vmem:[%s1832_s1 + $0x2e0] sm:$0xff]  ;;  %v345_v55 = vld [vmem:[%s1832_s1 + $0x308] sm:$0xff] }
  0x15   : > { %931 = vmatpush1.bf16.msra.mxu0 %v930_v19  ;;  %v1301_v48 = vld [vmem:[%s1274_s9 + $0x8] sm:$0xff]  ;;  %v858_v50 = vpack.c.bf16 %v250_v47, %v248_v46  ;;  %v1307_v51 = vld [vmem:[%s1274_s9 + $0x18] sm:$0x3]  ;;  %v342_v54 = vld [vmem:[%s1832_s1 + $0x2f0] sm:$0xff] }
  0x16   : > { %933 = vmatprep.subr.bf16.mxu0 %v932_v20  ;;  %v234_v52 = vrot.slane %v1301_v48, 1  ;;  %504 = vmatprep.mubr.f32.mxu1 %v1301_v48  ;;  %v235_v56 = vrot.slane %v1307_v51, 1  ;;  %v1319_v57 = vld [vmem:[%s1274_s9] sm:$0xff]  ;;  %v347_v59 = vld [vmem:[%s1832_s1 + $0x318] sm:$0xff]  ;;  %v253_v60 = vld [vmem:[%s1832_s1 + $0x28] sm:$0xff]  ;;  %v950_v6 = vpack.c.bf16 %v342_v54, %v340_v49 }
  0x17   : > { %857 = vmatprep.subr.bf16.mxu1 %v856_v45  ;;  %v255_v61 = vld [vmem:[%s1832_s1 + $0x38] sm:$0xff]  ;;  %v240_v62 = vrot.slane %v1319_v57, 2  ;;  %v1333_v0 = vld [vmem:[%s1274_s9 + $0x10] sm:$0x3]  ;;  %v252_v2 = vld [vmem:[%s1832_s1 + $0x20] sm:$0xff]  ;;  %v952_v10 = vpack.c.bf16 %v347_v59, %v345_v55  ;;  %s844_s9 = sshll.u32 %s1846_s13, 3 }
  0x18   : > { %859 = vmatpush1.bf16.msra.mxu1 %v858_v50  ;;  %v236_v63 = vsel %vm230_vm0, %v234_v52, %v235_v56  ;;  %v860_v1 = vpack.c.bf16 %v255_v61, %v253_v60  ;;  %v254_v3 = vld [vmem:[%s1832_s1 + $0x30] sm:$0xff]  ;;  %v241_v5 = vrot.slane %v1333_v0, 2  ;;  %v257_v7 = vld [vmem:[%s1832_s1 + $0x48] sm:$0xff]  ;;  %v259_v8 = vld [vmem:[%s1832_s1 + $0x58] sm:$0xff]  ;;  %s1806_s6 = sadd.s32 %s844_s9, %s843_s5 }
  0x19   : > { %935 = vmatpush1.bf16.msra.mxu0 %v934_v25  ;;  %575 = vmatprep.mubr.f32.mxu0 %v236_v63  ;;  %v862_v4 = vpack.c.bf16 %v254_v3, %v252_v2  ;;  %v256_v9 = vld [vmem:[%s1832_s1 + $0x40] sm:$0xff]  ;;  %v346_v12 = vld [vmem:[%s1832_s1 + $0x310] sm:$0xff]  ;;  %v864_v13 = vpack.c.bf16 %v259_v8, %v257_v7  ;;  %v349_v16 = vld [vmem:[%s1832_s1 + $0x328] sm:$0xff]  ;;  %s845_s7 = sshll.u32 %s1806_s6, 3  ;;  %s848_s12 = sshll.u32 %s1806_s6, 1 }
  0x1a   : > { %937 = vmatprep.subr.bf16.mxu0 %v936_v26  ;;  %861 = vmatprep.subr.bf16.mxu1 %v860_v1  ;;  %v344_v11 = vld [vmem:[%s1832_s1 + $0x300] sm:$0xff]  ;;  %v258_v14 = vld [vmem:[%s1832_s1 + $0x50] sm:$0xff]  ;;  %v1361_v15 = vsel %vm239_vm1, %v240_v62, %v241_v5  ;;  %v351_v17 = vld [vmem:[%s1832_s1 + $0x338] sm:$0xff]  ;;  %s206_s11 = scalar_lea.vmem %s1833_s2, %s845_s7  ;;  %s215_s20 = scalar_lea.vmem %s1834_s3, %s848_s12 }
  0x1b   : > { %v866_v18 = vpack.c.bf16 %v258_v14, %v256_v9  ;;  %v261_v19 = vld [vmem:[%s1832_s1 + $0x68] sm:$0xff]  ;;  %v263_v20 = vld [vmem:[%s1832_s1 + $0x78] sm:$0xff]  ;;  %v260_v21 = vld [vmem:[%s1832_s1 + $0x60] sm:$0xff]  ;;  %v954_v23 = vpack.c.bf16 %v346_v12, %v344_v11  ;;  %v956_v27 = vpack.c.bf16 %v351_v17, %v349_v16 }
  0x1c   : > { %863 = vmatpush1.bf16.msra.mxu1 %v862_v4  ;;  %v262_v22 = vld [vmem:[%s1832_s1 + $0x70] sm:$0xff]  ;;  %v348_v24 = vld [vmem:[%s1832_s1 + $0x320] sm:$0xff]  ;;  %v868_v26 = vpack.c.bf16 %v263_v20, %v261_v19  ;;  %v353_v28 = vld [vmem:[%s1832_s1 + $0x348] sm:$0xff] }
  0x1d   : > { %939 = vmatpush1.bf16.msra.mxu0 %v938_v31  ;;  %865 = vmatprep.subr.bf16.mxu1 %v864_v13  ;;  %v350_v25 = vld [vmem:[%s1832_s1 + $0x330] sm:$0xff]  ;;  %v870_v29 = vpack.c.bf16 %v262_v22, %v260_v21  ;;  %v265_v30 = vld [vmem:[%s1832_s1 + $0x88] sm:$0xff]  ;;  %v267_v31 = vld [vmem:[%s1832_s1 + $0x98] sm:$0xff] }
  0x1e   : > { %941 = vmatprep.subr.bf16.mxu0 %v940_v32  ;;  %v355_v32 = vld [vmem:[%s1832_s1 + $0x358] sm:$0xff]  ;;  %v872_v33 = vpack.c.bf16 %v267_v31, %v265_v30  ;;  %v264_v34 = vld [vmem:[%s1832_s1 + $0x80] sm:$0xff]  ;;  %v266_v35 = vld [vmem:[%s1832_s1 + $0x90] sm:$0xff]  ;;  %v958_v36 = vpack.c.bf16 %v350_v25, %v348_v24 }
  0x1f   : > { %v271_v38 = vld [vmem:[%s1832_s1 + $0xb8] sm:$0xff]  ;;  %v960_v39 = vpack.c.bf16 %v355_v32, %v353_v28  ;;  %v352_v40 = vld [vmem:[%s1832_s1 + $0x340] sm:$0xff]  ;;  %v357_v42 = vld [vmem:[%s1832_s1 + $0x368] sm:$0xff]  ;;  %v874_v43 = vpack.c.bf16 %v266_v35, %v264_v34 }
  0x20   : > { %867 = vmatpush1.bf16.msra.mxu1 %v866_v18  ;;  %v359_v44 = vld [vmem:[%s1832_s1 + $0x378] sm:$0xff]  ;;  %v268_v46 = vld [vmem:[%s1832_s1 + $0xa0] sm:$0xff]  ;;  %v270_v47 = vld [vmem:[%s1832_s1 + $0xb0] sm:$0xff] }
  0x21   : > { %943 = vmatpush1.bf16.msra.mxu0 %v942_v37  ;;  %869 = vmatprep.subr.bf16.mxu1 %v868_v26  ;;  %v269_v37 = vld [vmem:[%s1832_s1 + $0xa8] sm:$0xff]  ;;  %v275_v50 = vld [vmem:[%s1832_s1 + $0xd8] sm:$0xff]  ;;  %v356_v54 = vld [vmem:[%s1832_s1 + $0x360] sm:$0xff] }
  0x22   : > { %945 = vmatprep.subr.bf16.mxu0 %v944_v41  ;;  %v354_v41 = vld [vmem:[%s1832_s1 + $0x350] sm:$0xff]  ;;  %v876_v45 = vpack.c.bf16 %v271_v38, %v269_v37  ;;  %v273_v49 = vld [vmem:[%s1832_s1 + $0xc8] sm:$0xff]  ;;  %v363_v59 = vld [vmem:[%s1832_s1 + $0x398] sm:$0xff] }
  0x23   : > { %v962_v52 = vpack.c.bf16 %v354_v41, %v352_v40  ;;  %v358_v55 = vld [vmem:[%s1832_s1 + $0x370] sm:$0xff]  ;;  %v361_v56 = vld [vmem:[%s1832_s1 + $0x388] sm:$0xff]  ;;  %v880_v60 = vpack.c.bf16 %v275_v50, %v273_v49  ;;  %v272_v61 = vld [vmem:[%s1832_s1 + $0xc0] sm:$0xff] }
  0x24   : > { %871 = vmatpush1.bf16.msra.mxu1 %v870_v29  ;;  %v274_v62 = vld [vmem:[%s1832_s1 + $0xd0] sm:$0xff]  ;;  %v277_v63 = vld [vmem:[%s1832_s1 + $0xe8] sm:$0xff]  ;;  %v279_v1 = vld [vmem:[%s1832_s1 + $0xf8] sm:$0xff]  ;;  %v966_v2 = vpack.c.bf16 %v358_v55, %v356_v54  ;;  %v968_v3 = vpack.c.bf16 %v363_v59, %v361_v56  ;;  %v231_v54 = vrot.slane %v1319_v57, 1  ;;  %v232_v55 = vrot.slane %v1333_v0, 1 }
  0x25   : > { %947 = vmatpush1.bf16.msra.mxu0 %v946_v53  ;;  %873 = vmatprep.subr.bf16.mxu1 %v872_v33  ;;  %v964_v53 = vpack.c.bf16 %v359_v44, %v357_v42  ;;  %v360_v4 = vld [vmem:[%s1832_s1 + $0x380] sm:$0xff]  ;;  %v362_v5 = vld [vmem:[%s1832_s1 + $0x390] sm:$0xff]  ;;  %v882_v7 = vpack.c.bf16 %v274_v62, %v272_v61  ;;  %v367_v8 = vld [vmem:[%s1832_s1 + $0x3b8] sm:$0xff]  ;;  %v884_v9 = vpack.c.bf16 %v279_v1, %v277_v63  ;;  %v243_v62 = vrot.slane %v1301_v48, 2 }
  0x26   : > { %949 = vmatprep.subr.bf16.mxu0 %v948_v58  ;;  %v878_v58 = vpack.c.bf16 %v270_v47, %v268_v46  ;;  %v278_v11 = vld [vmem:[%s1832_s1 + $0xf0] sm:$0xff]  ;;  %v281_v12 = vld [vmem:[%s1832_s1 + $0x108] sm:$0xff]  ;;  %v283_v13 = vld [vmem:[%s1832_s1 + $0x118] sm:$0xff]  ;;  %v970_v14 = vpack.c.bf16 %v362_v5, %v360_v4  ;;  %v244_v0 = vrot.slane %v1307_v51, 2  ;;  %v233_v4 = vsel %vm230_vm0, %v231_v54, %v232_v55 }
  0x27   : > { %v364_v17 = vld [vmem:[%s1832_s1 + $0x3a0] sm:$0xff]  ;;  %v366_v18 = vld [vmem:[%s1832_s1 + $0x3b0] sm:$0xff]  ;;  %v369_v19 = vld [vmem:[%s1832_s1 + $0x3c8] sm:$0xff]  ;;  %v888_v22 = vpack.c.bf16 %v283_v13, %v281_v12 }
  0x28   : > { %875 = vmatpush1.bf16.msra.mxu1 %v874_v43  ;;  %v371_v21 = vld [vmem:[%s1832_s1 + $0x3d8] sm:$0xff]  ;;  %v282_v24 = vld [vmem:[%s1832_s1 + $0x110] sm:$0xff]  ;;  %v285_v25 = vld [vmem:[%s1832_s1 + $0x128] sm:$0xff] }
  0x29   : > { %951 = vmatpush1.bf16.msra.mxu0 %v950_v6  ;;  %877 = vmatprep.subr.bf16.mxu1 %v876_v45  ;;  %v365_v6 = vld [vmem:[%s1832_s1 + $0x3a8] sm:$0xff]  ;;  %v287_v26 = vld [vmem:[%s1832_s1 + $0x138] sm:$0xff]  ;;  %v976_v28 = vpack.c.bf16 %v371_v21, %v369_v19  ;;  %v368_v29 = vld [vmem:[%s1832_s1 + $0x3c0] sm:$0xff] }
  0x2a   : > { %953 = vmatprep.subr.bf16.mxu0 %v952_v10  ;;  %v276_v10 = vld [vmem:[%s1832_s1 + $0xe0] sm:$0xff]  ;;  %v972_v16 = vpack.c.bf16 %v367_v8, %v365_v6  ;;  %v370_v30 = vld [vmem:[%s1832_s1 + $0x3d0] sm:$0xff]  ;;  %v373_v31 = vld [vmem:[%s1832_s1 + $0x3e8] sm:$0xff]  ;;  %v892_v34 = vpack.c.bf16 %v287_v26, %v285_v25 }
  0x2b   : > { %v886_v20 = vpack.c.bf16 %v278_v11, %v276_v10  ;;  %v375_v33 = vld [vmem:[%s1832_s1 + $0x3f8] sm:$0xff]  ;;  %v284_v35 = vld [vmem:[%s1832_s1 + $0x120] sm:$0xff]  ;;  %v289_v37 = vld [vmem:[%s1832_s1 + $0x148] sm:$0xff]  ;;  %v245_v11 = vsel %vm239_vm1, %v243_v62, %v244_v0 }
  0x2c   : > { %879 = vmatpush1.bf16.msra.mxu1 %v878_v58  ;;  %v291_v38 = vld [vmem:[%s1832_s1 + $0x158] sm:$0xff]  ;;  %v980_v40 = vpack.c.bf16 %v375_v33, %v373_v31  ;;  %v372_v41 = vld [vmem:[%s1832_s1 + $0x3e0] sm:$0xff]  ;;  %v374_v42 = vld [vmem:[%s1832_s1 + $0x3f0] sm:$0xff] }
  0x2d   : > { %955 = vmatpush1.bf16.msra.mxu0 %v954_v23  ;;  %881 = vmatprep.subr.bf16.mxu1 %v880_v60  ;;  %v280_v23 = vld [vmem:[%s1832_s1 + $0x100] sm:$0xff]  ;;  %v377_v43 = vld [vmem:[%s1832_s1 + $0x408] sm:$0xff]  ;;  %v379_v45 = vld [vmem:[%s1832_s1 + $0x418] sm:$0xff]  ;;  %v896_v46 = vpack.c.bf16 %v291_v38, %v289_v37 }
  0x2e   : > { %957 = vmatprep.subr.bf16.mxu0 %v956_v27  ;;  %v974_v27 = vpack.c.bf16 %v366_v18, %v364_v17  ;;  %v890_v32 = vpack.c.bf16 %v282_v24, %v280_v23  ;;  %v288_v47 = vld [vmem:[%s1832_s1 + $0x140] sm:$0xff]  ;;  %v290_v49 = vld [vmem:[%s1832_s1 + $0x150] sm:$0xff]  ;;  %v293_v50 = vld [vmem:[%s1832_s1 + $0x168] sm:$0xff]  ;;  %v984_v56 = vpack.c.bf16 %v379_v45, %v377_v43 }
  0x2f   : > { %v376_v58 = vld [vmem:[%s1832_s1 + $0x400] sm:$0xff]  ;;  %v378_v59 = vld [vmem:[%s1832_s1 + $0x410] sm:$0xff]  ;;  %v381_v60 = vld [vmem:[%s1832_s1 + $0x428] sm:$0xff]  ;;  %v898_v61 = vpack.c.bf16 %v290_v49, %v288_v47 }
  0x30   : > { %883 = vmatpush1.bf16.msra.mxu1 %v882_v7  ;;  %v383_v63 = vld [vmem:[%s1832_s1 + $0x438] sm:$0xff]  ;;  %v297_v48 = vld [vmem:[%s1832_s1 + $0x188] sm:$0xff]  ;;  %v986_v5 = vpack.c.bf16 %v378_v59, %v376_v58  ;;  %v380_v7 = vld [vmem:[%s1832_s1 + $0x420] sm:$0xff] }
  0x31   : > { %959 = vmatpush1.bf16.msra.mxu0 %v958_v36  ;;  %885 = vmatprep.subr.bf16.mxu1 %v884_v9  ;;  %v286_v36 = vld [vmem:[%s1832_s1 + $0x130] sm:$0xff]  ;;  %v299_v51 = vld [vmem:[%s1832_s1 + $0x198] sm:$0xff]  ;;  %v988_v6 = vpack.c.bf16 %v383_v63, %v381_v60  ;;  %v385_v9 = vld [vmem:[%s1832_s1 + $0x448] sm:$0xff] }
  0x32   : > { %961 = vmatprep.subr.bf16.mxu0 %v960_v39  ;;  %v978_v39 = vpack.c.bf16 %v370_v30, %v368_v29  ;;  %v894_v44 = vpack.c.bf16 %v286_v36, %v284_v35  ;;  %v382_v8 = vld [vmem:[%s1832_s1 + $0x430] sm:$0xff]  ;;  %v387_v12 = vld [vmem:[%s1832_s1 + $0x458] sm:$0xff]  ;;  %v904_v13 = vpack.c.bf16 %v299_v51, %v297_v48  ;;  %v301_v17 = vld [vmem:[%s1832_s1 + $0x1a8] sm:$0xff] }
  0x33   : > { %v303_v18 = vld [vmem:[%s1832_s1 + $0x1b8] sm:$0xff]  ;;  %v990_v19 = vpack.c.bf16 %v382_v8, %v380_v7  ;;  %v384_v21 = vld [vmem:[%s1832_s1 + $0x440] sm:$0xff]  ;;  %v389_v23 = vld [vmem:[%s1832_s1 + $0x468] sm:$0xff] }
  0x34   : > { %887 = vmatpush1.bf16.msra.mxu1 %v886_v20  ;;  %v992_v20 = vpack.c.bf16 %v387_v12, %v385_v9  ;;  %v391_v25 = vld [vmem:[%s1832_s1 + $0x478] sm:$0xff]  ;;  %v908_v26 = vpack.c.bf16 %v303_v18, %v301_v17  ;;  %v305_v29 = vld [vmem:[%s1832_s1 + $0x1c8] sm:$0xff]  ;;  %v388_v33 = vld [vmem:[%s1832_s1 + $0x460] sm:$0xff] }
  0x35   : > { %963 = vmatpush1.bf16.msra.mxu0 %v962_v52  ;;  %889 = vmatprep.subr.bf16.mxu1 %v888_v22  ;;  %v295_v52 = vld [vmem:[%s1832_s1 + $0x178] sm:$0xff]  ;;  %v386_v22 = vld [vmem:[%s1832_s1 + $0x450] sm:$0xff]  ;;  %v393_v35 = vld [vmem:[%s1832_s1 + $0x488] sm:$0xff] }
  0x36   : > { %965 = vmatprep.subr.bf16.mxu0 %v964_v53  ;;  %v982_v53 = vpack.c.bf16 %v374_v42, %v372_v41  ;;  %v900_v1 = vpack.c.bf16 %v295_v52, %v293_v50  ;;  %v307_v30 = vld [vmem:[%s1832_s1 + $0x1d8] sm:$0xff]  ;;  %v994_v31 = vpack.c.bf16 %v386_v22, %v384_v21  ;;  %v309_v41 = vld [vmem:[%s1832_s1 + $0x1e8] sm:$0xff]  ;;  %v392_v45 = vld [vmem:[%s1832_s1 + $0x480] sm:$0xff] }
  0x37   : > { %v395_v37 = vld [vmem:[%s1832_s1 + $0x498] sm:$0xff]  ;;  %v912_v38 = vpack.c.bf16 %v307_v30, %v305_v29  ;;  %v397_v47 = vld [vmem:[%s1832_s1 + $0x4a8] sm:$0xff]  ;;  %v310_v54 = vld [vmem:[%s1832_s1 + $0x1f0] sm:$0xff] }
  0x38   : > { %891 = vmatpush1.bf16.msra.mxu1 %v890_v32  ;;  %v996_v32 = vpack.c.bf16 %v391_v25, %v389_v23  ;;  %v311_v42 = vld [vmem:[%s1832_s1 + $0x1f8] sm:$0xff]  ;;  %v396_v58 = vld [vmem:[%s1832_s1 + $0x4a0] sm:$0xff]  ;;  %v398_v59 = vld [vmem:[%s1832_s1 + $0x4b0] sm:$0xff] }
  0x39   : > { %967 = vmatpush1.bf16.msra.mxu0 %v966_v2  ;;  %893 = vmatprep.subr.bf16.mxu1 %v892_v34  ;;  %v292_v2 = vld [vmem:[%s1832_s1 + $0x160] sm:$0xff]  ;;  %v390_v34 = vld [vmem:[%s1832_s1 + $0x470] sm:$0xff]  ;;  %v399_v50 = vld [vmem:[%s1832_s1 + $0x4b8] sm:$0xff]  ;;  %v916_v52 = vpack.c.bf16 %v311_v42, %v309_v41  ;;  %v1006_v0 = vpack.c.bf16 %v398_v59, %v396_v58 }
  0x3a   : > { %969 = vmatprep.subr.bf16.mxu0 %v968_v3  ;;  %v294_v3 = vld [vmem:[%s1832_s1 + $0x170] sm:$0xff]  ;;  %v998_v43 = vpack.c.bf16 %v390_v34, %v388_v33  ;;  %v403_v62 = vld [vmem:[%s1832_s1 + $0x4d8] sm:$0xff]  ;;  %v409_v7 = vld [vmem:[%s1832_s1 + $0x508] sm:$0xff] }
  0x3b   : > { %v902_v10 = vpack.c.bf16 %v294_v3, %v292_v2  ;;  %v402_v2 = vld [vmem:[%s1832_s1 + $0x4d0] sm:$0xff]  ;;  %v405_v3 = vld [vmem:[%s1832_s1 + $0x4e8] sm:$0xff]  ;;  %v407_v48 = vld [vmem:[%s1832_s1 + $0x4f8] sm:$0xff] }
  0x3c   : > { %895 = vmatpush1.bf16.msra.mxu1 %v894_v44  ;;  %v1000_v44 = vpack.c.bf16 %v395_v37, %v393_v35  ;;  %v411_v8 = vld [vmem:[%s1832_s1 + $0x518] sm:$0xff]  ;;  %v413_v12 = vld [vmem:[%s1832_s1 + $0x528] sm:$0xff]  ;;  %v412_v17 = vld [vmem:[%s1832_s1 + $0x520] sm:$0xff] }
  0x3d   : > { %971 = vmatpush1.bf16.msra.mxu0 %v970_v14  ;;  %897 = vmatprep.subr.bf16.mxu1 %v896_v46  ;;  %v296_v14 = vld [vmem:[%s1832_s1 + $0x180] sm:$0xff]  ;;  %v394_v46 = vld [vmem:[%s1832_s1 + $0x490] sm:$0xff]  ;;  %v1016_v9 = vpack.c.bf16 %v411_v8, %v409_v7  ;;  %v421_v25 = vld [vmem:[%s1832_s1 + $0x568] sm:$0xff] }
  0x3e   : > { %973 = vmatprep.subr.bf16.mxu0 %v972_v16  ;;  %v298_v16 = vld [vmem:[%s1832_s1 + $0x190] sm:$0xff]  ;;  %v1002_v55 = vpack.c.bf16 %v394_v46, %v392_v45  ;;  %v416_v23 = vld [vmem:[%s1832_s1 + $0x540] sm:$0xff]  ;;  %v429_v37 = vld [vmem:[%s1832_s1 + $0x5a8] sm:$0xff] }
  0x3f   : > { %v906_v24 = vpack.c.bf16 %v298_v16, %v296_v14  ;;  %v414_v18 = vld [vmem:[%s1832_s1 + $0x530] sm:$0xff]  ;;  %v420_v29 = vld [vmem:[%s1832_s1 + $0x560] sm:$0xff] }
  0x40   : > { %899 = vmatpush1.bf16.msra.mxu1 %v898_v61  ;;  %v401_v61 = vld [vmem:[%s1832_s1 + $0x4c8] sm:$0xff]  ;;  %v1022_v21 = vpack.c.bf16 %v414_v18, %v412_v17  ;;  %v422_v30 = vld [vmem:[%s1832_s1 + $0x570] sm:$0xff]  ;;  %v424_v35 = vld [vmem:[%s1832_s1 + $0x580] sm:$0xff] }
  0x41   : > { %975 = vmatpush1.bf16.msra.mxu0 %v974_v27  ;;  %901 = vmatprep.subr.bf16.mxu1 %v900_v1  ;;  %v300_v27 = vld [vmem:[%s1832_s1 + $0x1a0] sm:$0xff]  ;;  %v1008_v63 = vpack.c.bf16 %v403_v62, %v401_v61  ;;  %v1030_v33 = vpack.c.bf16 %v422_v30, %v420_v29  ;;  %v430_v42 = vld [vmem:[%s1832_s1 + $0x5b0] sm:$0xff] }
  0x42   : > { %977 = vmatprep.subr.bf16.mxu0 %v976_v28  ;;  %v302_v28 = vld [vmem:[%s1832_s1 + $0x1b0] sm:$0xff]  ;;  %v400_v1 = vld [vmem:[%s1832_s1 + $0x4c0] sm:$0xff] }
  0x43   : > { %v910_v36 = vpack.c.bf16 %v302_v28, %v300_v27  ;;  %v1010_v51 = vpack.c.bf16 %v402_v2, %v400_v1  ;;  %v428_v41 = vld [vmem:[%s1832_s1 + $0x5a0] sm:$0xff] }
  0x44   : > { %903 = vmatpush1.bf16.msra.mxu1 %v902_v10  ;;  %v408_v10 = vld [vmem:[%s1832_s1 + $0x500] sm:$0xff]  ;;  %v1038_v45 = vpack.c.bf16 %v430_v42, %v428_v41 }
  0x45   : > { %979 = vmatpush1.bf16.msra.mxu0 %v978_v39  ;;  %905 = vmatprep.subr.bf16.mxu1 %v904_v13  ;;  %v304_v39 = vld [vmem:[%s1832_s1 + $0x1c0] sm:$0xff]  ;;  %v415_v13 = vld [vmem:[%s1832_s1 + $0x538] sm:$0xff] }
  0x46   : > { %981 = vmatprep.subr.bf16.mxu0 %v980_v40  ;;  %v306_v40 = vld [vmem:[%s1832_s1 + $0x1d0] sm:$0xff]  ;;  %v1020_v16 = vpack.c.bf16 %v415_v13, %v413_v12 }
  0x47   : > { %v914_v49 = vpack.c.bf16 %v306_v40, %v304_v39 }
  0x48   : > { %907 = vmatpush1.bf16.msra.mxu1 %v906_v24  ;;  %v418_v24 = vld [vmem:[%s1832_s1 + $0x550] sm:$0xff] }
  0x49   : > { %983 = vmatpush1.bf16.msra.mxu0 %v982_v53  ;;  %909 = vmatprep.subr.bf16.mxu1 %v908_v26  ;;  %v308_v53 = vld [vmem:[%s1832_s1 + $0x1e0] sm:$0xff]  ;;  %v423_v26 = vld [vmem:[%s1832_s1 + $0x578] sm:$0xff]  ;;  %v1026_v27 = vpack.c.bf16 %v418_v24, %v416_v23 }
  0x4a   : > { %985 = vmatprep.subr.bf16.mxu0 %v984_v56  ;;  %v1004_v56 = vpack.c.bf16 %v399_v50, %v397_v47  ;;  %v918_v60 = vpack.c.bf16 %v310_v54, %v308_v53  ;;  %v1028_v28 = vpack.c.bf16 %v423_v26, %v421_v25  ;;  %v432_v47 = vld [vmem:[%s1832_s1 + $0x5c0] sm:$0xff]  ;;  %v437_v50 = vld [vmem:[%s1832_s1 + $0x5e8] sm:$0xff] }
  0x4c   : > { %576 = vmatmul.mubr.f32.vlgmr.msra.gmra.mrb[0].mxu0 %v233_v4  ;;  %911 = vmatpush1.bf16.msra.mxu1 %v910_v36  ;;  %v1012_v4 = vpack.c.bf16 %v407_v48, %v405_v3  ;;  %v426_v36 = vld [vmem:[%s1832_s1 + $0x590] sm:$0xff] }
  0x4d   : > { %987 = vmatpush1.bf16.msra.mxu0 %v986_v5  ;;  %646 = vmatprep.mubr.f32.mxu0 %v245_v11  ;;  %v404_v5 = vld [vmem:[%s1832_s1 + $0x4e0] sm:$0xff]  ;;  %v410_v11 = vld [vmem:[%s1832_s1 + $0x510] sm:$0xff]  ;;  %v1034_v39 = vpack.c.bf16 %v426_v36, %v424_v35 }
  0x4e   : > { %989 = vmatprep.subr.bf16.mxu0 %v988_v6  ;;  %913 = vmatprep.subr.bf16.mxu1 %v912_v38  ;;  %v406_v6 = vld [vmem:[%s1832_s1 + $0x4f0] sm:$0xff]  ;;  %v1018_v14 = vpack.c.bf16 %v410_v11, %v408_v10  ;;  %v431_v38 = vld [vmem:[%s1832_s1 + $0x5b8] sm:$0xff] }
  0x4f   : > { %v1036_v40 = vpack.c.bf16 %v431_v38, %v429_v37 }
  0x50   : > { %915 = vmatpush1.bf16.msra.mxu1 %v914_v49  ;;  %v434_v49 = vld [vmem:[%s1832_s1 + $0x5d0] sm:$0xff] }
  0x51   : > { %991 = vmatpush1.bf16.msra.mxu0 %v990_v19  ;;  %917 = vmatprep.subr.bf16.mxu1 %v916_v52  ;;  %v417_v19 = vld [vmem:[%s1832_s1 + $0x548] sm:$0xff]  ;;  %v439_v52 = vld [vmem:[%s1832_s1 + $0x5f8] sm:$0xff]  ;;  %v1042_v53 = vpack.c.bf16 %v434_v49, %v432_v47 }
  0x52   : > { %993 = vmatprep.subr.bf16.mxu0 %v992_v20  ;;  %v419_v20 = vld [vmem:[%s1832_s1 + $0x558] sm:$0xff]  ;;  %v1044_v54 = vpack.c.bf16 %v439_v52, %v437_v50 }
  0x53   : > { %v1024_v22 = vpack.c.bf16 %v419_v20, %v417_v19 }
  0x54   : > { %919 = vmatpush1.bf16.msra.mxu1 %v918_v60 }
  0x55   : > { %995 = vmatpush1.bf16.msra.mxu0 %v994_v31  ;;  %v425_v31 = vld [vmem:[%s1832_s1 + $0x588] sm:$0xff] }
  0x56   : > { %997 = vmatprep.subr.bf16.mxu0 %v996_v32  ;;  %v427_v32 = vld [vmem:[%s1832_s1 + $0x598] sm:$0xff] }
  0x57   : > { %505 = vmatmul.mubr.f32.vlgmr.msra.gmra.mrb[0].mxu1 %v1319_v57  ;;  %v1014_v57 = vpack.c.bf16 %v406_v6, %v404_v5  ;;  %v1032_v34 = vpack.c.bf16 %v427_v32, %v425_v31 }
  0x59   : > { %999 = vmatpush1.bf16.msra.mxu0 %v998_v43  ;;  %v433_v43 = vld [vmem:[%s1832_s1 + $0x5c8] sm:$0xff] }
  0x5a   : > { %1001 = vmatprep.subr.bf16.mxu0 %v1000_v44  ;;  %v435_v44 = vld [vmem:[%s1832_s1 + $0x5d8] sm:$0xff] }
  0x5b   : > { %v1040_v46 = vpack.c.bf16 %v435_v44, %v433_v43 }
  0x5d   : > { %1003 = vmatpush1.bf16.msra.mxu0 %v1002_v55  ;;  %v436_v55 = vld [vmem:[%s1832_s1 + $0x5e0] sm:$0xff] }
  0x5e   : > { %1005 = vmatprep.subr.bf16.mxu0 %v1004_v56  ;;  %v438_v56 = vld [vmem:[%s1832_s1 + $0x5f0] sm:$0xff] }
  0x5f   : > { %v1046_v58 = vpack.c.bf16 %v438_v56, %v436_v55 }
  0x61   : > { %1007 = vmatpush1.bf16.msra.mxu0 %v1006_v0 }
  0x62   : > { %1009 = vmatprep.subr.bf16.mxu0 %v1008_v63 }
  0x65   : > { %1011 = vmatpush1.bf16.msra.mxu0 %v1010_v51 }
  0x66   : > { %1013 = vmatprep.subr.bf16.mxu0 %v1012_v4 }
  0x69   : > { %1015 = vmatpush1.bf16.msra.mxu0 %v1014_v57 }
  0x6a   : > { %1017 = vmatprep.subr.bf16.mxu0 %v1016_v9 }
  0x6d   : > { %1019 = vmatpush1.bf16.msra.mxu0 %v1018_v14 }
  0x6e   : > { %1021 = vmatprep.subr.bf16.mxu0 %v1020_v16 }
  0x71   : > { %1023 = vmatpush1.bf16.msra.mxu0 %v1022_v21 }
  0x72   : > { %1025 = vmatprep.subr.bf16.mxu0 %v1024_v22 }
  0x75   : > { %1027 = vmatpush1.bf16.msra.mxu0 %v1026_v27 }
  0x76   : > { %1029 = vmatprep.subr.bf16.mxu0 %v1028_v28 }
  0x79   : > { %1031 = vmatpush1.bf16.msra.mxu0 %v1030_v33 }
  0x7a   : > { %1033 = vmatprep.subr.bf16.mxu0 %v1032_v34 }
  0x7d   : > { %1035 = vmatpush1.bf16.msra.mxu0 %v1034_v39 }
  0x7e   : > { %1037 = vmatprep.subr.bf16.mxu0 %v1036_v40 }
  0x81   : > { %1039 = vmatpush1.bf16.msra.mxu0 %v1038_v45 }
  0x82   : > { %1041 = vmatprep.subr.bf16.mxu0 %v1040_v46 }
  0x85   : > { %1043 = vmatpush1.bf16.msra.mxu0 %v1042_v53 }
  0x86   : > { %1045 = vmatprep.subr.bf16.mxu0 %v1044_v54 }
  0x89   : > { %1047 = vmatpush1.bf16.msra.mxu0 %v1046_v58 }
  0x8c   : > { %647 = vmatmul.mubr.f32.vlgmr.msra.gmra.mrb[0].mxu0 %v1361_v15 }
 0x12a   : > { %v506_v59 = vpop.f32.mrb[0].mxu1 }
 0x12b   : > { %v508_v60 = vpop.f32.mrb[1].mxu1 }
 0x15f   : > { %v648_v61 = vpop.f32.mrb[0].mxu0 }
 0x160   : > { %v1048_v62 = vadd.f32 %v648_v61, %v506_v59  ;;  %v650_v0 = vpop.f32.mrb[1].mxu0 }
 0x161   : > { %v1049_v63 = vadd.f32 %v650_v0, %v508_v60 }
 0x162   : > { %653 = vst [vmem:[%s206_s11] sm:$0xff] %v1048_v62  ;;  %v655_v15 = vrot.slane %v1048_v62, 4  ;;  %v667_v1 = vmul.f32 %v1048_v62, %v1048_v62 }
 0x163   : > { %654 = vst [vmem:[%s206_s11 + $0x8] sm:$0xff] %v1049_v63  ;;  %v661_v2 = vrot.slane %v1049_v63, 4  ;;  %v668_v3 = vmul.f32 %v1049_v63, %v1049_v63 }
 0x164   : > { %v656_v48 = vadd.f32 %v1048_v62, %v655_v15  ;;  %v669_v51 = vrot.slane %v667_v1, 4 }
 0x165   : > { %v662_v4 = vadd.f32 %v1049_v63, %v661_v2  ;;  %v675_v5 = vrot.slane %v668_v3, 4 }
 0x166   : > { %v657_v6 = vrot.slane %v656_v48, 2  ;;  %v670_v7 = vadd.f32 %v669_v51, %v667_v1 }
 0x167   : > { %v663_v8 = vrot.slane %v662_v4, 2  ;;  %v676_v57 = vadd.f32 %v675_v5, %v668_v3 }
 0x168   : > { %v658_v9 = vadd.f32 %v657_v6, %v656_v48  ;;  %v671_v10 = vrot.slane %v670_v7, 2 }
 0x169   : > { %v664_v11 = vadd.f32 %v663_v8, %v662_v4  ;;  %v677_v12 = vrot.slane %v676_v57, 2 }
 0x16a   : > { %v659_v13 = vrot.slane %v658_v9, 1  ;;  %v672_v14 = vadd.f32 %v671_v10, %v670_v7 }
 0x16b   : > { %v665_v16 = vrot.slane %v664_v11, 1  ;;  %v678_v17 = vadd.f32 %v677_v12, %v676_v57 }
 0x16c   : > { %v673_v18 = vrot.slane %v672_v14, 1  ;;  %v660_v20 = vadd.f32 %v659_v13, %v658_v9 }
 0x16d   : > { %v679_v19 = vrot.slane %v678_v17, 1  ;;  %v666_v22 = vadd.f32 %v665_v16, %v664_v11 }
 0x16e   : > { %v674_v21 = vadd.f32 %v673_v18, %v672_v14 }
 0x16f   : > { %v680_v23 = vadd.f32 %v679_v19, %v678_v17 }
 0x170   : > { %v682_v24 = vsel %vm681_vm2, %v660_v20, %v674_v21 }
 0x171   : > { %v683_v25 = vsel %vm681_vm2, %v666_v22, %v680_v23 }
 0x172   : > { %v686_v26 = vcombine.low %v682_v24, %v683_v25 }
 0x174   : > { %852 = vst.sshfl [vmem:[%s215_s20] sm:$0x33 pattern:$0x76325410] %v686_v26 }
 0x175 PF: > { %s14_s16 = sadd.s32 1, %s1131_s16   ;;  %s1835_s12 = smov %s1123_s14 }
 0x176   : > { %p11_p7 = scmp.ge.s32.totalorder %s14_s16, 10   ;;  %s1836_s13 = smov %s1127_s15 }
 0x177   : > { %s1837_s14 = smov %s1840_s17  ;;  %s1838_s15 = smov %s1844_s18 }
 0x178   :  { %13 = sbr.rel (!%p11_p7) target bundleno = 3 (0x3), region = 71 }

// kernel: unet_up.10
= control target key start
LH: loop header
LB: loop body
LE: loop exit
PB: predicated region body
PF: predicated region fallthrough
CT: control target
= control target key end

     0   :  { %s531_s15 = smov 0   ;;  %s600_s0 = inlined_call_operand.vmem [shape: f32[64,256], index: 0, kind: input, shape index: {}]   ;;  %s601_s1 = inlined_call_operand.vmem [shape: f32[1,256], index: 1, kind: input, shape index: {}]   ;;  %s602_s2 = inlined_call_operand.vmem [shape: f32[1,256], index: 2, kind: input, shape index: {}]   ;;  %s603_s3 = inlined_call_operand.vmem [shape: f32[64,256], index: 3, kind: input, shape index: {}]   ;;  %s604_s4 = inlined_call_operand.vmem [shape: f32[64,256], index: 4, kind: output, shape index: {}]  }
   0x1 LB: > { %s453_s16 = sadd.s32 4294967295, %s503_s15   ;;  %p457_p0 = scmp.ge.s32.totalorder %s503_s15, 1  ;;  %s503_s15 = sphi %s531_s15, %s14_s15  }
   0x2   : > { %p176_p1 = scmp.lt.s32.totalorder %s503_s15, 5 }
   0x4   : > { %p177_p2 = pnand %p457_p0, %p176_p1 }
   0x5   : > { %s458_s17 = sshll.u32 (!%p177_p2), %s453_s16, 1  ;;  %v237_v0 = vlaneseq (!%p177_p2)  ;;  %v235_v2 = vld [vmem:[%s601_s1] sm:$0x3] (!%p177_p2) }
   0x6   : > { %180 = sbr.rel (%p177_p2) target bundleno = 74 (0x4a), region = 36  ;;  %p211_p3 = scmp.lt.s32.totalorder (!%p177_p2), %s458_s17, 7  ;;  %v251_v3 = vld [vmem:[%s602_s2] sm:$0x3] (!%p177_p2) }
   0x7   : > { %v238_v1 = vshrl.u32 (!%p177_p2), %v237_v0, 7 }
   0x9   : > { %v239_v4 = vsub.s32 (!%p177_p2), 0, %v238_v1  ;;  %v243_v5 = vsub.s32 (!%p177_p2), 1, %v238_v1 }
   0xb   : > { %v240_v6 = vrot.slane (!%p177_p2), %v235_v2, %v239_v4  ;;  %v256_v7 = vrot.slane (!%p177_p2), %v251_v3, %v239_v4  ;;  %v244_v8 = vrot.slane (!%p177_p2), %v235_v2, %v243_v5  ;;  %v260_v12 = vrot.slane (!%p177_p2), %v251_v3, %v243_v5 }
   0xd   : > { %s606_s17 = smov (!%p211_p3, %s458_s17), 7 }
   0xe   : > { %s545_s22 = sshll.u32 %s606_s17, 4 }
   0xf   : > { %s215_s25 = scalar_lea.vmem %s600_s0, %s545_s22  ;;  %s583_s28 = scalar_lea.vmem %s603_s3, %s545_s22 }
  0x10   : > { %v231_v9 = vld [vmem:[%s215_s25] sm:$0xff]  ;;  %v233_v10 = vld [vmem:[%s215_s25 + $0x10] sm:$0xff]  ;;  %v234_v11 = vld [vmem:[%s215_s25 + $0x18] sm:$0xff]  ;;  %s229_s5 = scalar_lea.vmem %s604_s4, %s545_s22 }
  0x11   : > { %v247_v13 = vmul.f32 %v240_v6, %v231_v9  ;;  %v232_v14 = vld [vmem:[%s215_s25 + $0x8] sm:$0xff]  ;;  %v249_v15 = vmul.f32 %v240_v6, %v233_v10  ;;  %v250_v16 = vmul.f32 %v244_v8, %v234_v11 }
  0x12   : > { %v248_v17 = vmul.f32 %v244_v8, %v232_v14 }
  0x13   : > { %v551_v18 = vadd.f32 %v256_v7, %v247_v13  ;;  %v553_v19 = vadd.f32 %v256_v7, %v249_v15  ;;  %v557_v21 = vadd.f32 %v260_v12, %v250_v16 }
  0x14   : > { %v555_v20 = vadd.f32 %v260_v12, %v248_v17 }
  0x15   : > { %v560_v22 = vmul.f32 0.70710677, %v551_v18  ;;  %v563_v23 = vmul.f32 0.70710677, %v553_v19  ;;  %v572_v28 = vmul.f32 0.70710677, %v557_v21 }
  0x16   : > { %v566_v24 = vmul.f32 0.70710677, %v555_v20 }
  0x17   : > { %v279_v25 = vand.u32 2147483647, %v560_v22  ;;  %v281_v26 = vand.u32 2147483647, %v563_v23  ;;  %v282_v34 = vand.u32 2147483647, %v572_v28 }
  0x18   : > { %v280_v27 = vand.u32 2147483647, %v566_v24  ;;  %vm271_vm0 = vcmp.ge.f32.partialorder %v560_v22, 0.0  ;;  %vm272_vm1 = vcmp.ge.f32.partialorder %v566_v24, 0.0  ;;  %vm273_vm2 = vcmp.ge.f32.partialorder %v563_v23, 0.0 }
  0x19   : > { %v283_v29 = vmul.f32 0.3275911, %v279_v25  ;;  %v285_v30 = vmul.f32 0.3275911, %v281_v26  ;;  %v286_v36 = vmul.f32 0.3275911, %v282_v34 }
  0x1a   : > { %v284_v31 = vmul.f32 0.3275911, %v280_v27  ;;  %v331_v38 = vsub.f32 0.0, %v279_v25  ;;  %v332_v39 = vsub.f32 0.0, %v280_v27  ;;  %v333_v41 = vsub.f32 0.0, %v281_v26 }
  0x1b   : > { %v287_v32 = vadd.f32 1.0, %v283_v29  ;;  %v289_v35 = vadd.f32 1.0, %v285_v30  ;;  %v290_v37 = vadd.f32 1.0, %v286_v36  ;;  %v334_v44 = vsub.f32 0.0, %v282_v34 }
  0x1c   : > { %v288_v33 = vadd.f32 1.0, %v284_v31  ;;  %v335_v40 = vmul.f32 %v331_v38, %v279_v25  ;;  %v336_v42 = vmul.f32 %v332_v39, %v280_v27  ;;  %v337_v49 = vmul.f32 %v333_v41, %v281_v26 }
  0x1d   : > { %481 = vrcp.f32 %v287_v32  ;;  %v338_v54 = vmul.f32 %v334_v44, %v282_v34  ;;  %vm274_vm3 = vcmp.ge.f32.partialorder %v572_v28, 0.0 }
  0x1e   : > { %483 = vrcp.f32 %v288_v33  ;;  %v339_v47 = vmul.f32 1.442695, %v335_v40  ;;  %v341_v51 = vmul.f32 1.442695, %v336_v42  ;;  %v343_v59 = vmul.f32 1.442695, %v337_v49 }
  0x1f   : > { %485 = vrcp.f32 %v289_v35  ;;  %v345_v0 = vmul.f32 1.442695, %v338_v54  ;;  %v505_v35 = vmov -1.0   ;;  %v359_v42 = vmul.f32 0.5, %v551_v18  ;;  %v372_v54 = vld [vmem:[%s583_s28 + $0x8] sm:$0xff] }
  0x20   : > { %487 = vrcp.f32 %v290_v37  ;;  %v275_v36 = vsel %vm271_vm0, 1.0, %v505_v35  ;;  %v276_v39 = vsel %vm272_vm1, 1.0, %v505_v35 }
  0x21   : > { %489 = vpow2.f32 %v339_v47  ;;  %v277_v47 = vsel %vm273_vm2, 1.0, %v505_v35 }
  0x22   : > { %491 = vpow2.f32 %v341_v51 }
  0x23   : > { %493 = vpow2.f32 %v343_v59 }
  0x24   : > { %495 = vpow2.f32 %v345_v0 }
  0x27   : > { %v482_v43 = vpop.eup %481 }
  0x28   : > { %v484_v45 = vpop.eup %483  ;;  %v295_v46 = vmul.f32 1.0614054, %v482_v43 }
  0x29   : > { %v296_v48 = vmul.f32 1.0614054, %v484_v45  ;;  %v486_v52 = vpop.eup %485 }
  0x2a   : > { %v299_v50 = vadd.f32 -1.4531521, %v295_v46  ;;  %v297_v56 = vmul.f32 1.0614054, %v486_v52  ;;  %v488_v57 = vpop.eup %487  ;;  %v360_v46 = vmul.f32 0.5, %v555_v20 }
  0x2b   : > { %v300_v53 = vadd.f32 -1.4531521, %v296_v48  ;;  %v298_v62 = vmul.f32 1.0614054, %v488_v57  ;;  %v490_v16 = vpop.eup %489 }
  0x2c   : > { %v303_v55 = vmul.f32 %v482_v43, %v299_v50  ;;  %v301_v61 = vadd.f32 -1.4531521, %v297_v56  ;;  %v492_v25 = vpop.eup %491  ;;  %v371_v50 = vld [vmem:[%s583_s28] sm:$0xff]  ;;  %v361_v56 = vmul.f32 0.5, %v553_v19 }
  0x2d   : > { %v304_v58 = vmul.f32 %v484_v45, %v300_v53  ;;  %v302_v3 = vadd.f32 -1.4531521, %v298_v62  ;;  %v494_v34 = vpop.eup %493  ;;  %v373_v62 = vld [vmem:[%s583_s28 + $0x10] sm:$0xff] }
  0x2e   : > { %v307_v60 = vadd.f32 1.4214138, %v303_v55  ;;  %v305_v2 = vmul.f32 %v486_v52, %v301_v61  ;;  %v496_v41 = vpop.eup %495 }
  0x2f   : > { %v308_v63 = vadd.f32 1.4214138, %v304_v58  ;;  %v306_v7 = vmul.f32 %v488_v57, %v302_v3 }
  0x30   : > { %v311_v1 = vmul.f32 %v482_v43, %v307_v60  ;;  %v309_v6 = vadd.f32 1.4214138, %v305_v2  ;;  %v362_v60 = vmul.f32 0.5, %v557_v21 }
  0x31   : > { %v312_v4 = vmul.f32 %v484_v45, %v308_v63  ;;  %v310_v11 = vadd.f32 1.4214138, %v306_v7 }
  0x32   : > { %v315_v5 = vadd.f32 -0.28449672, %v311_v1  ;;  %v313_v10 = vmul.f32 %v486_v52, %v309_v6  ;;  %v374_v1 = vld [vmem:[%s583_s28 + $0x18] sm:$0xff] }
  0x33   : > { %v316_v8 = vadd.f32 -0.28449672, %v312_v4  ;;  %v314_v15 = vmul.f32 %v488_v57, %v310_v11 }
  0x34   : > { %v319_v9 = vmul.f32 %v482_v43, %v315_v5  ;;  %v317_v14 = vadd.f32 -0.28449672, %v313_v10 }
  0x35   : > { %v320_v12 = vmul.f32 %v484_v45, %v316_v8  ;;  %v318_v29 = vadd.f32 -0.28449672, %v314_v15 }
  0x36   : > { %v323_v13 = vadd.f32 0.2548296, %v319_v9  ;;  %v321_v27 = vmul.f32 %v486_v52, %v317_v14 }
  0x37   : > { %v324_v17 = vadd.f32 0.2548296, %v320_v12  ;;  %v322_v33 = vmul.f32 %v488_v57, %v318_v29 }
  0x38   : > { %v327_v26 = vmul.f32 %v482_v43, %v323_v13  ;;  %v325_v32 = vadd.f32 0.2548296, %v321_v27 }
  0x39   : > { %v328_v30 = vmul.f32 %v484_v45, %v324_v17  ;;  %v326_v22 = vadd.f32 0.2548296, %v322_v33 }
  0x3a   : > { %v347_v31 = vmul.f32 %v490_v16, %v327_v26  ;;  %v329_v40 = vmul.f32 %v486_v52, %v325_v32  ;;  %v278_v52 = vsel %vm274_vm3, 1.0, %v505_v35 }
  0x3b   : > { %v348_v37 = vmul.f32 %v492_v25, %v328_v30  ;;  %v330_v23 = vmul.f32 %v488_v57, %v326_v22 }
  0x3c   : > { %v351_v38 = vsub.f32 1.0, %v347_v31  ;;  %v349_v44 = vmul.f32 %v494_v34, %v329_v40 }
  0x3d   : > { %v352_v43 = vsub.f32 1.0, %v348_v37  ;;  %v350_v49 = vmul.f32 %v496_v41, %v330_v23 }
  0x3e   : > { %v355_v24 = vmul.f32 %v351_v38, %v275_v36  ;;  %v353_v18 = vsub.f32 1.0, %v349_v44 }
  0x3f   : > { %v356_v45 = vmul.f32 %v352_v43, %v276_v39  ;;  %v354_v28 = vsub.f32 1.0, %v350_v49 }
  0x40   : > { %v363_v48 = vadd.f32 1.0, %v355_v24  ;;  %v357_v55 = vmul.f32 %v353_v18, %v277_v47 }
  0x41   : > { %v364_v51 = vadd.f32 1.0, %v356_v45  ;;  %v358_v59 = vmul.f32 %v354_v28, %v278_v52 }
  0x42   : > { %v367_v53 = vmul.f32 %v363_v48, %v359_v42  ;;  %v365_v58 = vadd.f32 1.0, %v357_v55 }
  0x43   : > { %v368_v20 = vmul.f32 %v364_v51, %v360_v46  ;;  %v366_v0 = vadd.f32 1.0, %v358_v59 }
  0x44   : > { %v375_v57 = vadd.f32 %v371_v50, %v367_v53  ;;  %v369_v63 = vmul.f32 %v365_v58, %v361_v56 }
  0x45   : > { %v376_v61 = vadd.f32 %v372_v54, %v368_v20  ;;  %v370_v19 = vmul.f32 %v366_v0, %v362_v60 }
  0x46   : > { %379 = vst [vmem:[%s229_s5] sm:$0xff] %v375_v57  ;;  %v377_v2 = vadd.f32 %v373_v62, %v369_v63 }
  0x47   : > { %380 = vst [vmem:[%s229_s5 + $0x8] sm:$0xff] %v376_v61  ;;  %v378_v3 = vadd.f32 %v374_v1, %v370_v19 }
  0x48   : > { %381 = vst [vmem:[%s229_s5 + $0x10] sm:$0xff] %v377_v2 }
  0x49   : > { %382 = vst [vmem:[%s229_s5 + $0x18] sm:$0xff] %v378_v3 }
  0x4a PF: > { %s14_s15 = sadd.s32 1, %s503_s15  }
  0x4b   : > { %p11_p4 = scmp.ge.s32.totalorder %s14_s15, 6  }
  0x4d   :  { %13 = sbr.rel (!%p11_p4) target bundleno = 1 (0x1), region = 69 }

// kernel: unet_up.9
= control target key start
LH: loop header
LB: loop body
LE: loop exit
PB: predicated region body
PF: predicated region fallthrough
CT: control target
= control target key end

     0   :  { %s1393_s18 = smov 0   ;;  %s1395_s19 = smov 0   ;;  %s2191_s0 = inlined_call_operand.vmem [shape: f32[2,34,256], index: 0, kind: input, shape index: {}]   ;;  %s2192_s1 = inlined_call_operand.vmem [shape: f32[768,256], index: 1, kind: input, shape index: {}]   ;;  %s2193_s2 = inlined_call_operand.vmem [shape: f32[1,256], index: 2, kind: input, shape index: {}]   ;;  %s2194_s3 = inlined_call_operand.vmem [shape: f32[1,256], index: 3, kind: input, shape index: {}]   ;;  %s2195_s4 = inlined_call_operand.vmem [shape: f32[2,32,256], index: 4, kind: output, shape index: {0}]   ;;  %s2196_s5 = inlined_call_operand.vmem [shape: f32[2,4,2,256], index: 5, kind: output, shape index: {1}]  }
   0x1   :  { %s1397_s20 = smov 0   ;;  %s1399_s21 = smov 0  }
   0x2   :  { %s1401_s22 = smov 0  }
   0x3 LB: > { %s25_s23 = sadd.s32 1, %s1352_s20  ;;  %s28_s24 = sadd.s32 1, %s1356_s21  ;;  %s1360_s22 = sphi %s1401_s22, %s16_s22   ;;  %s1356_s21 = sphi %s1399_s21, %s2204_s21   ;;  %s1352_s20 = sphi %s1397_s20, %s2203_s20   ;;  %s1348_s19 = sphi %s1395_s19, %s2202_s19   ;;  %s1344_s18 = sphi %s1393_s18, %s2201_s18  }
   0x4   : > { %p26_p0 = scmp.ge.s32.totalorder %s25_s23, 4  ;;  %p1051_p1 = scmp.ge.s32.totalorder %s1360_s22, 1 }
   0x5   : > { %p206_p2 = scmp.lt.s32.totalorder %s1360_s22, 9 }
   0x6   : > { %s2206_s23 = smov (%p26_p0, %s25_s23), 0  ;;  %s2208_s24 = smov (!%p26_p0, %s28_s24), %s1356_s21 }
   0x7   : > { %p207_p3 = pnand %p1051_p1, %p206_p2  ;;  %p30_p4 = scmp.ge.s32.totalorder %s2208_s24, 2 }
   0x8   : > { %v523_v0 = vld [vmem:[%s2192_s1 + $0x208] sm:$0xff] (!%p207_p3)  ;;  %v525_v1 = vld [vmem:[%s2192_s1 + $0x218] sm:$0xff] (!%p207_p3)  ;;  %v522_v2 = vld [vmem:[%s2192_s1 + $0x200] sm:$0xff] (!%p207_p3)  ;;  %p247_p5 = scmp.lt.s32.totalorder (!%p207_p3), %s1348_s19, 1  ;;  %s1059_s25 = sshll.u32 (!%p207_p3), %s1344_s18, 3  ;;  %v280_v26 = vlaneseq (!%p207_p3)  ;;  %vm440_vm10 = vcmask (!%p207_p3), 1046528  }
   0x9   : > { %s2210_s24 = smov (%p30_p4, %s2208_s24), 0  ;;  %210 = sbr.rel (%p207_p3) target bundleno = 386 (0x182), region = 36 }
   0xa   : > { %v1132_v3 = vpack.c.bf16 (!%p207_p3), %v525_v1, %v523_v0  ;;  %v524_v4 = vld [vmem:[%s2192_s1 + $0x210] sm:$0xff] (!%p207_p3)  ;;  %v527_v5 = vld [vmem:[%s2192_s1 + $0x228] sm:$0xff] (!%p207_p3)  ;;  %v529_v6 = vld [vmem:[%s2192_s1 + $0x238] sm:$0xff] (!%p207_p3)  ;;  %s271_s10 = sshra.s32 (!%p207_p3), %s1059_s25, 3  ;;  %v1501_v33 = vshrl.u32 (!%p207_p3), %v280_v26, 7  ;;  %vm449_vm11 = vcmask (!%p207_p3), 1045504  }
   0xb   : > { %v1134_v7 = vpack.c.bf16 (!%p207_p3), %v524_v4, %v522_v2  ;;  %v1136_v8 = vpack.c.bf16 (!%p207_p3), %v529_v6, %v527_v5  ;;  %v526_v9 = vld [vmem:[%s2192_s1 + $0x220] sm:$0xff] (!%p207_p3)  ;;  %v528_v10 = vld [vmem:[%s2192_s1 + $0x230] sm:$0xff] (!%p207_p3)  ;;  %v531_v11 = vld [vmem:[%s2192_s1 + $0x248] sm:$0xff] (!%p207_p3)  ;;  %s1067_s26 = sshll.u32 (!%p207_p3), %s271_s10, 4  ;;  %p254_p6 = scmp.lt.s32.totalorder (!%p207_p3), %s1344_s18, 3  ;;  %vm891_vm12 = vcmask (!%p207_p3), 1040384  }
   0xc   : > { %1133 = vmatprep.subr.bf16.mxu0 (!%p207_p3), %v1132_v3  ;;  %v533_v12 = vld [vmem:[%s2192_s1 + $0x258] sm:$0xff] (!%p207_p3)  ;;  %v1138_v13 = vpack.c.bf16 (!%p207_p3), %v528_v10, %v526_v9  ;;  %v530_v15 = vld [vmem:[%s2192_s1 + $0x240] sm:$0xff] (!%p207_p3)  ;;  %v532_v16 = vld [vmem:[%s2192_s1 + $0x250] sm:$0xff] (!%p207_p3)  ;;  %v300_v42 = vsub.s32 (!%p207_p3), 1, %v1501_v33  ;;  %v296_v43 = vsub.s32 (!%p207_p3), 0, %v1501_v33 }
   0xd   : > { %1135 = vmatpush1.bf16.msra.mxu0 (!%p207_p3), %v1134_v7  ;;  %v1140_v14 = vpack.c.bf16 (!%p207_p3), %v533_v12, %v531_v11  ;;  %v535_v17 = vld [vmem:[%s2192_s1 + $0x268] sm:$0xff] (!%p207_p3)  ;;  %v537_v18 = vld [vmem:[%s2192_s1 + $0x278] sm:$0xff] (!%p207_p3)  ;;  %v1142_v19 = vpack.c.bf16 (!%p207_p3), %v532_v16, %v530_v15  ;;  %v534_v21 = vld [vmem:[%s2192_s1 + $0x260] sm:$0xff] (!%p207_p3) }
   0xe   : > { %1137 = vmatprep.subr.bf16.mxu0 (!%p207_p3), %v1136_v8  ;;  %v1144_v20 = vpack.c.bf16 (!%p207_p3), %v537_v18, %v535_v17  ;;  %v536_v22 = vld [vmem:[%s2192_s1 + $0x270] sm:$0xff] (!%p207_p3)  ;;  %v539_v23 = vld [vmem:[%s2192_s1 + $0x288] sm:$0xff] (!%p207_p3)  ;;  %v541_v24 = vld [vmem:[%s2192_s1 + $0x298] sm:$0xff] (!%p207_p3) }
   0xf   : > { %v1146_v25 = vpack.c.bf16 (!%p207_p3), %v536_v22, %v534_v21  ;;  %v1148_v27 = vpack.c.bf16 (!%p207_p3), %v541_v24, %v539_v23  ;;  %v538_v28 = vld [vmem:[%s2192_s1 + $0x280] sm:$0xff] (!%p207_p3)  ;;  %v540_v29 = vld [vmem:[%s2192_s1 + $0x290] sm:$0xff] (!%p207_p3)  ;;  %v543_v30 = vld [vmem:[%s2192_s1 + $0x2a8] sm:$0xff] (!%p207_p3) }
  0x10   : > { %s2212_s19 = smov (!%p247_p5, %s1348_s19), 1  ;;  %v545_v31 = vld [vmem:[%s2192_s1 + $0x2b8] sm:$0xff]  ;;  %v1150_v32 = vpack.c.bf16 %v540_v29, %v538_v28  ;;  %v542_v35 = vld [vmem:[%s2192_s1 + $0x2a0] sm:$0xff]  ;;  %v544_v36 = vld [vmem:[%s2192_s1 + $0x2b0] sm:$0xff]  ;;  %s2214_s18 = smov (!%p254_p6, %s1344_s18), 3 }
  0x11   : > { %1139 = vmatpush1.bf16.msra.mxu0 %v1138_v13  ;;  %s1264_s30 = smul.u32 80, %s2212_s19  ;;  %v1152_v34 = vpack.c.bf16 %v545_v31, %v543_v30  ;;  %v547_v37 = vld [vmem:[%s2192_s1 + $0x2c8] sm:$0xff]  ;;  %v549_v38 = vld [vmem:[%s2192_s1 + $0x2d8] sm:$0xff]  ;;  %v1154_v39 = vpack.c.bf16 %v544_v36, %v542_v35  ;;  %v546_v40 = vld [vmem:[%s2192_s1 + $0x2c0] sm:$0xff]  ;;  %s1053_s9 = sshll.u32 %s2214_s18, 1 }
  0x12   : > { %1141 = vmatprep.subr.bf16.mxu0 %v1140_v14  ;;  %v548_v41 = vld [vmem:[%s2192_s1 + $0x2d0] sm:$0xff]  ;;  %v1156_v44 = vpack.c.bf16 %v549_v38, %v547_v37  ;;  %v551_v45 = vld [vmem:[%s2192_s1 + $0x2e8] sm:$0xff]  ;;  %v461_v47 = vld [vmem:[%s2192_s1 + $0x18] sm:$0xff]  ;;  %s1054_s11 = sshll.u32 %s2212_s19, 3 }
  0x13   : > { %s251_s17 = scalar_lea.vmem %s2191_s0, %s1264_s30  ;;  %v459_v46 = vld [vmem:[%s2192_s1 + $0x8] sm:$0xff]  ;;  %v553_v48 = vld [vmem:[%s2192_s1 + $0x2f8] sm:$0xff]  ;;  %v458_v50 = vld [vmem:[%s2192_s1] sm:$0xff]  ;;  %v1158_v56 = vpack.c.bf16 %v548_v41, %v546_v40  ;;  %s2166_s10 = sadd.s32 %s1054_s11, %s1053_s9 }
  0x14   : > { %s275_s30 = scalar_lea.vmem %s251_s17, %s1067_s26  ;;  %v1068_v49 = vpack.c.bf16 %v461_v47, %v459_v46  ;;  %v460_v51 = vld [vmem:[%s2192_s1 + $0x10] sm:$0xff]  ;;  %v292_v55 = vld [vmem:[%s2193_s2] sm:$0x3]  ;;  %v1160_v62 = vpack.c.bf16 %v553_v48, %v551_v45  ;;  %v555_v3 = vld [vmem:[%s2192_s1 + $0x308] sm:$0xff]  ;;  %s1055_s12 = sshll.u32 %s2166_s10, 3 }
  0x15   : > { %1143 = vmatpush1.bf16.msra.mxu0 %v1142_v19  ;;  %v1070_v52 = vpack.c.bf16 %v460_v51, %v458_v50  ;;  %v277_v53 = vld [vmem:[%s275_s30 + $0x8] sm:$0xff]  ;;  %v279_v54 = vld [vmem:[%s275_s30 + $0x18] sm:$0x3]  ;;  %v550_v57 = vld [vmem:[%s2192_s1 + $0x2e0] sm:$0xff]  ;;  %v301_v59 = vrot.slane %v292_v55, %v300_v42  ;;  %v297_v61 = vrot.slane %v292_v55, %v296_v43  ;;  %s260_s15 = scalar_lea.vmem %s2195_s4, %s1055_s12  ;;  %s1058_s18 = sshll.u32 %s2166_s10, 1 }
  0x16   : > { %1145 = vmatprep.subr.bf16.mxu0 %v1144_v20  ;;  %v552_v58 = vld [vmem:[%s2192_s1 + $0x2f0] sm:$0xff]  ;;  %1069 = vmatprep.subr.bf16.mxu1 %v1068_v49  ;;  %v308_v60 = vld [vmem:[%s2194_s3] sm:$0x3]  ;;  %v557_v4 = vld [vmem:[%s2192_s1 + $0x318] sm:$0xff] }
  0x17   : > { %1071 = vmatpush1.bf16.msra.mxu1 %v1070_v52  ;;  %v317_v63 = vrot.slane %v308_v60, %v300_v42  ;;  %v276_v0 = vld [vmem:[%s275_s30] sm:$0xff]  ;;  %v278_v1 = vld [vmem:[%s275_s30 + $0x10] sm:$0x3]  ;;  %v313_v2 = vrot.slane %v308_v60, %v296_v43  ;;  %v305_v5 = vmul.f32 %v301_v59, %v277_v53  ;;  %v307_v6 = vmul.f32 %v301_v59, %v279_v54  ;;  %v463_v8 = vld [vmem:[%s2192_s1 + $0x28] sm:$0xff] }
  0x18   : > { %v304_v7 = vmul.f32 %v297_v61, %v276_v0  ;;  %v1162_v9 = vpack.c.bf16 %v552_v58, %v550_v57  ;;  %v306_v10 = vmul.f32 %v297_v61, %v278_v1  ;;  %v465_v11 = vld [vmem:[%s2192_s1 + $0x38] sm:$0xff]  ;;  %v462_v12 = vld [vmem:[%s2192_s1 + $0x20] sm:$0xff]  ;;  %v464_v13 = vld [vmem:[%s2192_s1 + $0x30] sm:$0xff]  ;;  %v1164_v18 = vpack.c.bf16 %v557_v4, %v555_v3 }
  0x19   : > { %1147 = vmatpush1.bf16.msra.mxu0 %v1146_v25  ;;  %v1574_v14 = vadd.f32 %v317_v63, %v305_v5  ;;  %v1576_v15 = vadd.f32 %v317_v63, %v307_v6  ;;  %v1072_v17 = vpack.c.bf16 %v465_v11, %v463_v8  ;;  %v554_v19 = vld [vmem:[%s2192_s1 + $0x300] sm:$0xff]  ;;  %v556_v20 = vld [vmem:[%s2192_s1 + $0x310] sm:$0xff]  ;;  %v1074_v22 = vpack.c.bf16 %v464_v13, %v462_v12  ;;  %v559_v23 = vld [vmem:[%s2192_s1 + $0x328] sm:$0xff] }
  0x1a   : > { %1149 = vmatprep.subr.bf16.mxu0 %v1148_v27  ;;  %v1578_v16 = vadd.f32 %v313_v2, %v304_v7  ;;  %v1586_v21 = vadd.f32 %v313_v2, %v306_v10  ;;  %v561_v24 = vld [vmem:[%s2192_s1 + $0x338] sm:$0xff]  ;;  %v1166_v29 = vpack.c.bf16 %v556_v20, %v554_v19  ;;  %v560_v35 = vld [vmem:[%s2192_s1 + $0x330] sm:$0xff]  ;;  %v563_v36 = vld [vmem:[%s2192_s1 + $0x348] sm:$0xff] }
  0x1b   : > { %v1595_v25 = vmul.f32 0.70710677, %v1574_v14  ;;  %v1598_v26 = vmul.f32 0.70710677, %v1576_v15  ;;  %1073 = vmatprep.subr.bf16.mxu1 %v1072_v17  ;;  %v565_v37 = vld [vmem:[%s2192_s1 + $0x358] sm:$0xff]  ;;  %v562_v40 = vld [vmem:[%s2192_s1 + $0x340] sm:$0xff] }
  0x1c   : > { %v1601_v27 = vmul.f32 0.70710677, %v1578_v16  ;;  %v1604_v28 = vmul.f32 0.70710677, %v1586_v21  ;;  %1075 = vmatpush1.bf16.msra.mxu1 %v1074_v22  ;;  %v467_v47 = vld [vmem:[%s2192_s1 + $0x48] sm:$0xff]  ;;  %v469_v48 = vld [vmem:[%s2192_s1 + $0x58] sm:$0xff]  ;;  %v1172_v49 = vpack.c.bf16 %v565_v37, %v563_v36 }
  0x1d   : > { %1151 = vmatpush1.bf16.msra.mxu0 %v1150_v32  ;;  %v1607_v30 = vand.u32 2147483647, %v1595_v25  ;;  %v1610_v31 = vand.u32 2147483647, %v1598_v26  ;;  %v1168_v32 = vpack.c.bf16 %v561_v24, %v559_v23  ;;  %v466_v52 = vld [vmem:[%s2192_s1 + $0x40] sm:$0xff]  ;;  %v468_v53 = vld [vmem:[%s2192_s1 + $0x50] sm:$0xff] }
  0x1e   : > { %1153 = vmatprep.subr.bf16.mxu0 %v1152_v34  ;;  %v558_v34 = vld [vmem:[%s2192_s1 + $0x320] sm:$0xff]  ;;  %v1630_v41 = vand.u32 2147483647, %v1601_v27  ;;  %v1633_v42 = vand.u32 2147483647, %v1604_v28  ;;  %v567_v54 = vld [vmem:[%s2192_s1 + $0x368] sm:$0xff]  ;;  %v1078_v63 = vpack.c.bf16 %v468_v53, %v466_v52 }
  0x1f   : > { %v341_v38 = vmul.f32 0.3275911, %v1607_v30  ;;  %v1170_v43 = vpack.c.bf16 %v560_v35, %v558_v34  ;;  %v569_v55 = vld [vmem:[%s2192_s1 + $0x378] sm:$0xff]  ;;  %v471_v58 = vld [vmem:[%s2192_s1 + $0x68] sm:$0xff]  ;;  %v566_v61 = vld [vmem:[%s2192_s1 + $0x360] sm:$0xff]  ;;  %v389_v4 = vsub.f32 0.0, %v1607_v30 }
  0x20   : > { %v340_v50 = vmul.f32 0.3275911, %v1630_v41  ;;  %v342_v51 = vmul.f32 0.3275911, %v1633_v42  ;;  %v473_v59 = vld [vmem:[%s2192_s1 + $0x78] sm:$0xff]  ;;  %v470_v0 = vld [vmem:[%s2192_s1 + $0x60] sm:$0xff]  ;;  %v1176_v2 = vpack.c.bf16 %v569_v55, %v567_v54 }
  0x21   : > { %1155 = vmatpush1.bf16.msra.mxu0 %v1154_v39  ;;  %v343_v39 = vmul.f32 0.3275911, %v1610_v31  ;;  %v345_v45 = vadd.f32 1.0, %v341_v38  ;;  %v472_v1 = vld [vmem:[%s2192_s1 + $0x70] sm:$0xff]  ;;  %v475_v5 = vld [vmem:[%s2192_s1 + $0x88] sm:$0xff]  ;;  %v477_v6 = vld [vmem:[%s2192_s1 + $0x98] sm:$0xff]  ;;  %v1080_v10 = vpack.c.bf16 %v473_v59, %v471_v58  ;;  %v393_v23 = vmul.f32 %v389_v4, %v1607_v30 }
  0x22   : > { %1157 = vmatprep.subr.bf16.mxu0 %v1156_v44  ;;  %v564_v44 = vld [vmem:[%s2192_s1 + $0x350] sm:$0xff]  ;;  %v346_v57 = vadd.f32 1.0, %v342_v51  ;;  %v571_v7 = vld [vmem:[%s2192_s1 + $0x388] sm:$0xff]  ;;  %v573_v8 = vld [vmem:[%s2192_s1 + $0x398] sm:$0xff]  ;;  %v1082_v11 = vpack.c.bf16 %v472_v1, %v470_v0  ;;  %v1084_v17 = vpack.c.bf16 %v477_v6, %v475_v5  ;;  %v388_v30 = vsub.f32 0.0, %v1630_v41 }
  0x23   : > { %v347_v46 = vadd.f32 1.0, %v343_v39  ;;  %1306 = vrcp.f32 %v345_v45  ;;  %v1174_v60 = vpack.c.bf16 %v564_v44, %v562_v40  ;;  %v568_v3 = vld [vmem:[%s2192_s1 + $0x370] sm:$0xff]  ;;  %v570_v13 = vld [vmem:[%s2192_s1 + $0x380] sm:$0xff]  ;;  %v1180_v20 = vpack.c.bf16 %v573_v8, %v571_v7  ;;  %v479_v24 = vld [vmem:[%s2192_s1 + $0xa8] sm:$0xff] }
  0x24   : > { %v1178_v12 = vpack.c.bf16 %v568_v3, %v566_v61  ;;  %v476_v19 = vld [vmem:[%s2192_s1 + $0x90] sm:$0xff]  ;;  %v577_v34 = vld [vmem:[%s2192_s1 + $0x3b8] sm:$0xff]  ;;  %v574_v36 = vld [vmem:[%s2192_s1 + $0x3a0] sm:$0xff]  ;;  %v390_v37 = vsub.f32 0.0, %v1633_v42  ;;  %vm329_vm2 = vcmp.ge.f32.partialorder %v1595_v25, 0.0  ;;  %vm331_vm4 = vcmp.ge.f32.partialorder %v1598_v26, 0.0 }
  0x25   : > { %1159 = vmatpush1.bf16.msra.mxu0 %v1158_v56  ;;  %1308 = vrcp.f32 %v347_v46  ;;  %v344_v56 = vadd.f32 1.0, %v340_v50  ;;  %v572_v22 = vld [vmem:[%s2192_s1 + $0x390] sm:$0xff]  ;;  %v478_v44 = vld [vmem:[%s2192_s1 + $0xa0] sm:$0xff]  ;;  %v483_v50 = vld [vmem:[%s2192_s1 + $0xc8] sm:$0xff]  ;;  %vm328_vm6 = vcmp.ge.f32.partialorder %v1601_v27, 0.0  ;;  %vm330_vm7 = vcmp.ge.f32.partialorder %v1604_v28, 0.0 }
  0x26   : > { %1161 = vmatprep.subr.bf16.mxu0 %v1160_v62  ;;  %v1076_v62 = vpack.c.bf16 %v469_v48, %v467_v47  ;;  %v1182_v40 = vpack.c.bf16 %v572_v22, %v570_v13  ;;  %v480_v45 = vld [vmem:[%s2192_s1 + $0xb0] sm:$0xff]  ;;  %v485_v51 = vld [vmem:[%s2192_s1 + $0xd8] sm:$0xff]  ;;  %v579_v52 = vld [vmem:[%s2192_s1 + $0x3c8] sm:$0xff]  ;;  %v394_v58 = vmul.f32 %v390_v37, %v1633_v42  ;;  %v282_v37 = vadd.s32 8, %v1501_v33 }
  0x27   : > { %1310 = vrcp.f32 %v344_v56  ;;  %v581_v53 = vld [vmem:[%s2192_s1 + $0x3d8] sm:$0xff]  ;;  %v392_v56 = vmul.f32 %v388_v30, %v1630_v41  ;;  %v1090_v59 = vpack.c.bf16 %v480_v45, %v478_v44  ;;  %v1092_v1 = vpack.c.bf16 %v485_v51, %v483_v50  ;;  %v482_v41 = vld [vmem:[%s2192_s1 + $0xc0] sm:$0xff]  ;;  %v484_v42 = vld [vmem:[%s2192_s1 + $0xd0] sm:$0xff] }
  0x28   : > { %1077 = vmatprep.subr.bf16.mxu1 %v1076_v62  ;;  %1312 = vrcp.f32 %v346_v57  ;;  %v578_v62 = vld [vmem:[%s2192_s1 + $0x3c0] sm:$0xff]  ;;  %v1188_v3 = vpack.c.bf16 %v581_v53, %v579_v52  ;;  %v580_v4 = vld [vmem:[%s2192_s1 + $0x3d0] sm:$0xff]  ;;  %v487_v7 = vld [vmem:[%s2192_s1 + $0xe8] sm:$0xff]  ;;  %v1094_v22 = vpack.c.bf16 %v484_v42, %v482_v41  ;;  %v419_v27 = vmul.f32 0.5, %v1576_v15 }
  0x29   : > { %1163 = vmatpush1.bf16.msra.mxu0 %v1162_v9  ;;  %v391_v9 = vsub.f32 0.0, %v1610_v31  ;;  %1079 = vmatpush1.bf16.msra.mxu1 %v1078_v63  ;;  %v1757_v63 = vstv %s1059_s25  ;;  %v489_v8 = vld [vmem:[%s2192_s1 + $0xf8] sm:$0xff]  ;;  %v396_v13 = vmul.f32 1.442695, %v392_v56  ;;  %v490_v56 = vld [vmem:[%s2192_s1 + $0x100] sm:$0xff]  ;;  %v507_v15 = vld [vmem:[%s2192_s1 + $0x188] sm:$0xff]  ;;  %s269_s25 = scalar_lea.vmem %s2196_s5, %s1058_s18 }
  0x2a   : > { %1165 = vmatprep.subr.bf16.mxu0 %v1164_v18  ;;  %1081 = vmatprep.subr.bf16.mxu1 %v1080_v10  ;;  %v474_v18 = vld [vmem:[%s2192_s1 + $0x80] sm:$0xff]  ;;  %v585_v10 = vld [vmem:[%s2192_s1 + $0x3f8] sm:$0xff]  ;;  %v1809_v44 = vadd.s32 %v1757_v63, %v1501_v33 }
  0x2b   : > { %v395_v35 = vmul.f32 %v391_v9, %v1610_v31  ;;  %v1086_v38 = vpack.c.bf16 %v476_v19, %v474_v18  ;;  %v583_v9 = vld [vmem:[%s2192_s1 + $0x3e8] sm:$0xff] }
  0x2c   : > { %v1192_v30 = vpack.c.bf16 %v585_v10, %v583_v9  ;;  %vm286_vm0 = vcmp.ge.s32.totalorder %v1809_v44, 1  ;;  %vm288_vm1 = vcmp.le.s32.totalorder %v1809_v44, 32 }
  0x2d   : > { %1167 = vmatpush1.bf16.msra.mxu0 %v1166_v29  ;;  %v481_v29 = vld [vmem:[%s2192_s1 + $0xb8] sm:$0xff]  ;;  %1083 = vmatpush1.bf16.msra.mxu1 %v1082_v11  ;;  %v1721_v39 = vpop.eup %1306  ;;  %v402_v55 = vmul.f32 1.442695, %v395_v35  ;;  %v488_v35 = vld [vmem:[%s2192_s1 + $0xf0] sm:$0xff]  ;;  %vm1898_vm8 = vmand %vm286_vm0, %vm288_vm1 }
  0x2e   : > { %1169 = vmatprep.subr.bf16.mxu0 %v1168_v32  ;;  %v575_v32 = vld [vmem:[%s2192_s1 + $0x3a8] sm:$0xff]  ;;  %1085 = vmatprep.subr.bf16.mxu1 %v1084_v17  ;;  %v1088_v31 = vpack.c.bf16 %v481_v29, %v479_v24  ;;  %v353_v48 = vmul.f32 1.0614054, %v1721_v39  ;;  %v582_v17 = vld [vmem:[%s2192_s1 + $0x3e0] sm:$0xff] }
  0x2f   : > { %v1732_v46 = vpop.eup %1308  ;;  %v1184_v47 = vpack.c.bf16 %v577_v34, %v575_v32  ;;  %v1096_v32 = vpack.c.bf16 %v489_v8, %v487_v7  ;;  %v486_v34 = vld [vmem:[%s2192_s1 + $0xe0] sm:$0xff] }
  0x30   : > { %v355_v54 = vmul.f32 1.0614054, %v1732_v46  ;;  %v357_v57 = vadd.f32 -1.4531521, %v353_v48  ;;  %v589_v48 = vld [vmem:[%s2192_s1 + $0x418] sm:$0xff]  ;;  %v1098_v52 = vpack.c.bf16 %v488_v35, %v486_v34 }
  0x31   : > { %1171 = vmatpush1.bf16.msra.mxu0 %v1170_v43  ;;  %v576_v43 = vld [vmem:[%s2192_s1 + $0x3b0] sm:$0xff]  ;;  %1087 = vmatpush1.bf16.msra.mxu1 %v1086_v38 }
  0x32   : > { %1173 = vmatprep.subr.bf16.mxu0 %v1172_v49  ;;  %v398_v49 = vmul.f32 1.442695, %v393_v23  ;;  %v1186_v61 = vpack.c.bf16 %v576_v43, %v574_v36  ;;  %v359_v0 = vadd.f32 -1.4531521, %v355_v54  ;;  %1089 = vmatprep.subr.bf16.mxu1 %v1088_v31  ;;  %v361_v5 = vmul.f32 %v1721_v39, %v357_v57  ;;  %v584_v36 = vld [vmem:[%s2192_s1 + $0x3f0] sm:$0xff]  ;;  %v491_v43 = vld [vmem:[%s2192_s1 + $0x108] sm:$0xff] }
  0x33   : > { %v1190_v23 = vpack.c.bf16 %v580_v4, %v578_v62  ;;  %v493_v31 = vld [vmem:[%s2192_s1 + $0x118] sm:$0xff]  ;;  %v1194_v33 = vpack.c.bf16 %v584_v36, %v582_v17  ;;  %v492_v57 = vld [vmem:[%s2192_s1 + $0x110] sm:$0xff]  ;;  %v495_v62 = vld [vmem:[%s2192_s1 + $0x128] sm:$0xff] }
  0x34   : > { %1314 = vpow2.f32 %v398_v49  ;;  %v363_v11 = vmul.f32 %v1732_v46, %v359_v0  ;;  %v365_v18 = vadd.f32 1.4214138, %v361_v5  ;;  %v497_v0 = vld [vmem:[%s2192_s1 + $0x138] sm:$0xff]  ;;  %v499_v17 = vld [vmem:[%s2192_s1 + $0x148] sm:$0xff]  ;;  %v500_v36 = vld [vmem:[%s2192_s1 + $0x150] sm:$0xff] }
  0x35   : > { %1175 = vmatpush1.bf16.msra.mxu0 %v1174_v60  ;;  %v1750_v60 = vpop.eup %1310  ;;  %1316 = vpow2.f32 %v402_v55  ;;  %1091 = vmatpush1.bf16.msra.mxu1 %v1090_v59  ;;  %v1100_v55 = vpack.c.bf16 %v493_v31, %v491_v43  ;;  %v1104_v10 = vpack.c.bf16 %v497_v0, %v495_v62  ;;  %v503_v43 = vld [vmem:[%s2192_s1 + $0x168] sm:$0xff]  ;;  %v505_v31 = vld [vmem:[%s2192_s1 + $0x178] sm:$0xff]  ;;  %v416_v0 = vmul.f32 0.5, %v1578_v16 }
  0x36   : > { %1177 = vmatprep.subr.bf16.mxu0 %v1176_v2  ;;  %v1765_v2 = vpop.eup %1312  ;;  %v352_v6 = vmul.f32 1.0614054, %v1750_v60  ;;  %v367_v24 = vadd.f32 1.4214138, %v363_v11  ;;  %1093 = vmatprep.subr.bf16.mxu1 %v1092_v1  ;;  %v369_v38 = vmul.f32 %v1721_v39, %v365_v18  ;;  %1318 = vpow2.f32 %v396_v13  ;;  %v496_v11 = vld [vmem:[%s2192_s1 + $0x130] sm:$0xff]  ;;  %v501_v18 = vld [vmem:[%s2192_s1 + $0x158] sm:$0xff] }
  0x37   : > { %v1834_v1 = vadd.s32 %v1757_v63, %v282_v37  ;;  %v494_v63 = vld [vmem:[%s2192_s1 + $0x120] sm:$0xff] }
  0x38   : > { %v356_v19 = vadd.f32 -1.4531521, %v352_v6  ;;  %v371_v45 = vmul.f32 %v1732_v46, %v367_v24  ;;  %v373_v50 = vadd.f32 -0.28449672, %v369_v38  ;;  %v1102_v6 = vpack.c.bf16 %v492_v57, %v490_v56  ;;  %v613_v56 = vld [vmem:[%s2192_s1 + $0x4d8] sm:$0xff] }
  0x39   : > { %1179 = vmatpush1.bf16.msra.mxu0 %v1178_v12  ;;  %v354_v12 = vmul.f32 1.0614054, %v1765_v2  ;;  %1095 = vmatpush1.bf16.msra.mxu1 %v1094_v22  ;;  %vm287_vm3 = vcmp.ge.s32.totalorder %v1834_v1, 1  ;;  %vm289_vm5 = vcmp.le.s32.totalorder %v1834_v1, 32  ;;  %v506_v1 = vld [vmem:[%s2192_s1 + $0x180] sm:$0xff] }
  0x3a   : > { %1181 = vmatprep.subr.bf16.mxu0 %v1180_v20  ;;  %v400_v20 = vmul.f32 1.442695, %v394_v58  ;;  %v375_v53 = vadd.f32 -0.28449672, %v371_v45  ;;  %1097 = vmatprep.subr.bf16.mxu1 %v1096_v32  ;;  %v377_v58 = vmul.f32 %v1721_v39, %v373_v50  ;;  %vm1906_vm9 = vmand %vm287_vm3, %vm289_vm5 }
  0x3b   : > { %v358_v29 = vadd.f32 -1.4531521, %v354_v12 }
  0x3c   : > { %1320 = vpow2.f32 %v400_v20  ;;  %v379_v41 = vmul.f32 %v1732_v46, %v375_v53  ;;  %v381_v4 = vadd.f32 0.2548296, %v377_v58  ;;  %v502_v53 = vld [vmem:[%s2192_s1 + $0x160] sm:$0xff] }
  0x3d   : > { %1183 = vmatpush1.bf16.msra.mxu0 %v1182_v40  ;;  %v360_v40 = vmul.f32 %v1750_v60, %v356_v19  ;;  %v362_v49 = vmul.f32 %v1765_v2, %v358_v29  ;;  %1099 = vmatpush1.bf16.msra.mxu1 %v1098_v52  ;;  %v1362_v29 = vmov -1.0  }
  0x3e   : > { %1185 = vmatprep.subr.bf16.mxu0 %v1184_v47  ;;  %v587_v47 = vld [vmem:[%s2192_s1 + $0x408] sm:$0xff]  ;;  %v383_v8 = vadd.f32 0.2548296, %v379_v41  ;;  %1101 = vmatprep.subr.bf16.mxu1 %v1100_v55  ;;  %v385_v12 = vmul.f32 %v1721_v39, %v381_v4  ;;  %v333_v32 = vsel %vm329_vm2, 1.0, %v1362_v29  ;;  %v335_v38 = vsel %vm331_vm4, 1.0, %v1362_v29  ;;  %v509_v55 = vld [vmem:[%s2192_s1 + $0x198] sm:$0xff] }
  0x3f   : > { %v364_v51 = vadd.f32 1.4214138, %v360_v40  ;;  %v366_v54 = vadd.f32 1.4214138, %v362_v49  ;;  %v1196_v59 = vpack.c.bf16 %v589_v48, %v587_v47  ;;  %v417_v47 = vmul.f32 0.5, %v1574_v14  ;;  %v504_v14 = vld [vmem:[%s2192_s1 + $0x170] sm:$0xff] }
  0x40   : > { %v387_v19 = vmul.f32 %v1732_v46, %v383_v8  ;;  %v498_v46 = vld [vmem:[%s2192_s1 + $0x140] sm:$0xff]  ;;  %v1114_v44 = vpack.c.bf16 %v504_v14, %v502_v53  ;;  %v1116_v4 = vpack.c.bf16 %v509_v55, %v507_v15  ;;  %v596_v15 = vld [vmem:[%s2192_s1 + $0x450] sm:$0xff] }
  0x41   : > { %1187 = vmatpush1.bf16.msra.mxu0 %v1186_v61  ;;  %v368_v61 = vmul.f32 %v1750_v60, %v364_v51  ;;  %v370_v42 = vmul.f32 %v1765_v2, %v366_v54  ;;  %1103 = vmatpush1.bf16.msra.mxu1 %v1102_v6  ;;  %v332_v51 = vsel %vm328_vm6, 1.0, %v1362_v29 }
  0x42   : > { %1189 = vmatprep.subr.bf16.mxu0 %v1188_v3  ;;  %v1315_v3 = vpop.eup %1314  ;;  %1105 = vmatprep.subr.bf16.mxu1 %v1104_v10 }
  0x43   : > { %v372_v5 = vadd.f32 -0.28449672, %v368_v61  ;;  %v1317_v7 = vpop.eup %1316  ;;  %v374_v9 = vadd.f32 -0.28449672, %v370_v42  ;;  %v405_v39 = vmul.f32 %v1315_v3, %v385_v12  ;;  %v418_v3 = vmul.f32 0.5, %v1586_v21  ;;  %v513_v21 = vld [vmem:[%s2192_s1 + $0x1b8] sm:$0xff] }
  0x44   : > { %v1319_v24 = vpop.eup %1318  ;;  %v407_v34 = vmul.f32 %v1317_v7, %v387_v19  ;;  %v511_v7 = vld [vmem:[%s2192_s1 + $0x1a8] sm:$0xff]  ;;  %v586_v12 = vld [vmem:[%s2192_s1 + $0x400] sm:$0xff] }
  0x45   : > { %1191 = vmatpush1.bf16.msra.mxu0 %v1190_v23  ;;  %v376_v13 = vmul.f32 %v1750_v60, %v372_v5  ;;  %v378_v20 = vmul.f32 %v1765_v2, %v374_v9  ;;  %v1106_v23 = vpack.c.bf16 %v496_v11, %v494_v63  ;;  %v409_v40 = vsub.f32 1.0, %v405_v39  ;;  %v508_v5 = vld [vmem:[%s2192_s1 + $0x190] sm:$0xff]  ;;  %v591_v19 = vld [vmem:[%s2192_s1 + $0x428] sm:$0xff]  ;;  %v510_v39 = vld [vmem:[%s2192_s1 + $0x1a0] sm:$0xff] }
  0x46   : > { %1193 = vmatprep.subr.bf16.mxu0 %v1192_v30  ;;  %v1108_v30 = vpack.c.bf16 %v501_v18, %v499_v17  ;;  %v1321_v37 = vpop.eup %1320  ;;  %v411_v45 = vsub.f32 1.0, %v407_v34  ;;  %v1118_v17 = vpack.c.bf16 %v508_v5, %v506_v1  ;;  %v517_v34 = vld [vmem:[%s2192_s1 + $0x1d8] sm:$0xff] }
  0x47   : > { %v380_v22 = vadd.f32 0.2548296, %v376_v13  ;;  %v382_v35 = vadd.f32 0.2548296, %v378_v20  ;;  %v413_v48 = vmul.f32 %v409_v40, %v333_v32  ;;  %1107 = vmatpush1.bf16.msra.mxu1 %v1106_v23  ;;  %v588_v13 = vld [vmem:[%s2192_s1 + $0x410] sm:$0xff]  ;;  %v1120_v20 = vpack.c.bf16 %v513_v21, %v511_v7  ;;  %v515_v32 = vld [vmem:[%s2192_s1 + $0x1c8] sm:$0xff] }
  0x48   : > { %v415_v50 = vmul.f32 %v411_v45, %v335_v38  ;;  %1109 = vmatprep.subr.bf16.mxu1 %v1108_v30  ;;  %v1198_v40 = vpack.c.bf16 %v588_v13, %v586_v12  ;;  %v607_v7 = vld [vmem:[%s2192_s1 + $0x4a8] sm:$0xff]  ;;  %v609_v21 = vld [vmem:[%s2192_s1 + $0x4b8] sm:$0xff] }
  0x49   : > { %1195 = vmatpush1.bf16.msra.mxu0 %v1194_v33  ;;  %v384_v25 = vmul.f32 %v1750_v60, %v380_v22  ;;  %v386_v26 = vmul.f32 %v1765_v2, %v382_v35  ;;  %v1110_v60 = vpack.c.bf16 %v500_v36, %v498_v46  ;;  %v1112_v33 = vpack.c.bf16 %v505_v31, %v503_v43  ;;  %v512_v22 = vld [vmem:[%s2192_s1 + $0x1b0] sm:$0xff]  ;;  %v611_v12 = vld [vmem:[%s2192_s1 + $0x4c8] sm:$0xff] }
  0x4a   : > { %1197 = vmatprep.subr.bf16.mxu0 %v1196_v59  ;;  %v421_v28 = vadd.f32 1.0, %v413_v48  ;;  %v334_v2 = vsel %vm330_vm7, 1.0, %v1362_v29  ;;  %v423_v57 = vadd.f32 1.0, %v415_v50  ;;  %v593_v29 = vld [vmem:[%s2192_s1 + $0x438] sm:$0xff]  ;;  %v592_v43 = vld [vmem:[%s2192_s1 + $0x430] sm:$0xff]  ;;  %v1122_v31 = vpack.c.bf16 %v512_v22, %v510_v39  ;;  %v599_v59 = vld [vmem:[%s2192_s1 + $0x468] sm:$0xff] }
  0x4b   : > { %v404_v49 = vmul.f32 %v1319_v24, %v384_v25  ;;  %v406_v52 = vmul.f32 %v1321_v37, %v386_v26  ;;  %1111 = vmatpush1.bf16.msra.mxu1 %v1110_v60  ;;  %v590_v25 = vld [vmem:[%s2192_s1 + $0x420] sm:$0xff]  ;;  %v595_v26 = vld [vmem:[%s2192_s1 + $0x448] sm:$0xff]  ;;  %v1124_v48 = vpack.c.bf16 %v517_v34, %v515_v32  ;;  %v597_v50 = vld [vmem:[%s2192_s1 + $0x458] sm:$0xff]  ;;  %v1220_v13 = vpack.c.bf16 %v613_v56, %v611_v12 }
  0x4c   : > { %v425_v61 = vmul.f32 %v421_v28, %v417_v47  ;;  %v427_v41 = vmul.f32 %v423_v57, %v419_v27  ;;  %1113 = vmatprep.subr.bf16.mxu1 %v1112_v33  ;;  %v1200_v47 = vpack.c.bf16 %v593_v29, %v591_v19  ;;  %v514_v27 = vld [vmem:[%s2192_s1 + $0x1c0] sm:$0xff]  ;;  %v1202_v14 = vpack.c.bf16 %v592_v43, %v590_v25  ;;  %v615_v19 = vld [vmem:[%s2192_s1 + $0x4e8] sm:$0xff]  ;;  %v621_v32 = vld [vmem:[%s2192_s1 + $0x518] sm:$0xff] }
  0x4d   : > { %v408_v54 = vsub.f32 1.0, %v404_v49  ;;  %v410_v58 = vsub.f32 1.0, %v406_v52  ;;  %v516_v49 = vld [vmem:[%s2192_s1 + $0x1d0] sm:$0xff]  ;;  %v521_v52 = vld [vmem:[%s2192_s1 + $0x1f8] sm:$0xff]  ;;  %v594_v28 = vld [vmem:[%s2192_s1 + $0x440] sm:$0xff] }
  0x4e   : > { %v433_v6 = vsel %vm1898_vm8, %v425_v61, 0.0  ;;  %1062 = vmatprep.mubr.msk.f32.mxu1 %vm1898_vm8, %v425_v61  ;;  %v435_v8 = vsel %vm1906_vm9, %v427_v41, 0.0  ;;  %v518_v57 = vld [vmem:[%s2192_s1 + $0x1e0] sm:$0xff]  ;;  %v601_v61 = vld [vmem:[%s2192_s1 + $0x478] sm:$0xff]  ;;  %v619_v29 = vld [vmem:[%s2192_s1 + $0x508] sm:$0xff] }
  0x4f   : > { %v412_v62 = vmul.f32 %v408_v54, %v332_v51  ;;  %v414_v42 = vmul.f32 %v410_v58, %v334_v2  ;;  %v444_v9 = vrot.slane %v433_v6, 1  ;;  %v445_v63 = vrot.slane %v435_v8, 1  ;;  %1115 = vmatpush1.bf16.msra.mxu1 %v1114_v44  ;;  %v519_v51 = vld [vmem:[%s2192_s1 + $0x1e8] sm:$0xff]  ;;  %v520_v58 = vld [vmem:[%s2192_s1 + $0x1f0] sm:$0xff]  ;;  %v598_v41 = vld [vmem:[%s2192_s1 + $0x460] sm:$0xff] }
  0x50   : > { %1117 = vmatprep.subr.bf16.mxu1 %v1116_v4  ;;  %v453_v35 = vrot.slane %v433_v6, 2  ;;  %v454_v36 = vrot.slane %v435_v8, 2  ;;  %v1126_v2 = vpack.c.bf16 %v516_v49, %v514_v27  ;;  %v1204_v54 = vpack.c.bf16 %v597_v50, %v595_v26  ;;  %v605_v4 = vld [vmem:[%s2192_s1 + $0x498] sm:$0xff]  ;;  %v602_v6 = vld [vmem:[%s2192_s1 + $0x480] sm:$0xff]  ;;  %v624_v43 = vld [vmem:[%s2192_s1 + $0x530] sm:$0xff] }
  0x51   : > { %v420_v16 = vadd.f32 1.0, %v412_v62  ;;  %v422_v10 = vadd.f32 1.0, %v414_v42  ;;  %v446_v23 = vsel %vm440_vm10, %v444_v9, %v445_v63  ;;  %v1128_v55 = vpack.c.bf16 %v521_v52, %v519_v51  ;;  %v600_v42 = vld [vmem:[%s2192_s1 + $0x470] sm:$0xff]  ;;  %v622_v25 = vld [vmem:[%s2192_s1 + $0x520] sm:$0xff]  ;;  %v631_v49 = vld [vmem:[%s2192_s1 + $0x568] sm:$0xff] }
  0x52   : > { %785 = vmatprep.mubr.f32.mxu0 %v446_v23  ;;  %v455_v53 = vsel %vm449_vm11, %v453_v35, %v454_v36  ;;  %v1206_v62 = vpack.c.bf16 %v596_v15, %v594_v28  ;;  %v1208_v44 = vpack.c.bf16 %v601_v61, %v599_v59  ;;  %v1210_v1 = vpack.c.bf16 %v600_v42, %v598_v41  ;;  %v608_v63 = vld [vmem:[%s2192_s1 + $0x4b0] sm:$0xff]  ;;  %v614_v23 = vld [vmem:[%s2192_s1 + $0x4e0] sm:$0xff]  ;;  %v623_v36 = vld [vmem:[%s2192_s1 + $0x528] sm:$0xff] }
  0x53   : > { %v1930_v11 = vmul.f32 %v420_v16, %v416_v0  ;;  %v426_v18 = vmul.f32 %v422_v10, %v418_v3  ;;  %1119 = vmatpush1.bf16.msra.mxu1 %v1118_v17  ;;  %v1130_v0 = vpack.c.bf16 %v520_v58, %v518_v57  ;;  %v603_v3 = vld [vmem:[%s2192_s1 + $0x488] sm:$0xff]  ;;  %v604_v16 = vld [vmem:[%s2192_s1 + $0x490] sm:$0xff]  ;;  %v1216_v9 = vpack.c.bf16 %v609_v21, %v607_v7  ;;  %v606_v10 = vld [vmem:[%s2192_s1 + $0x4a0] sm:$0xff] }
  0x54   : > { %1121 = vmatprep.subr.bf16.mxu1 %v1120_v20  ;;  %v1212_v5 = vpack.c.bf16 %v605_v4, %v603_v3  ;;  %v1214_v8 = vpack.c.bf16 %v604_v16, %v602_v6  ;;  %v610_v17 = vld [vmem:[%s2192_s1 + $0x4c0] sm:$0xff]  ;;  %v617_v20 = vld [vmem:[%s2192_s1 + $0x4f8] sm:$0xff]  ;;  %v1228_v35 = vpack.c.bf16 %v621_v32, %v619_v29  ;;  %v628_v27 = vld [vmem:[%s2192_s1 + $0x550] sm:$0xff] }
  0x55   : > { %v432_v24 = vsel %vm1898_vm8, %v1930_v11, 0.0  ;;  %v434_v30 = vsel %vm1906_vm9, %v426_v18, 0.0  ;;  %v612_v18 = vld [vmem:[%s2192_s1 + $0x4d0] sm:$0xff]  ;;  %v1224_v22 = vpack.c.bf16 %v617_v20, %v615_v19  ;;  %v630_v52 = vld [vmem:[%s2192_s1 + $0x560] sm:$0xff]  ;;  %v637_v28 = vld [vmem:[%s2192_s1 + $0x598] sm:$0xff] }
  0x56   : > { %v441_v46 = vrot.slane %v432_v24, 1  ;;  %v450_v37 = vrot.slane %v432_v24, 2  ;;  %v442_v38 = vrot.slane %v434_v30, 1  ;;  %v451_v45 = vrot.slane %v434_v30, 2  ;;  %v616_v24 = vld [vmem:[%s2192_s1 + $0x4f0] sm:$0xff]  ;;  %v618_v30 = vld [vmem:[%s2192_s1 + $0x500] sm:$0xff] }
  0x57   : > { %1123 = vmatpush1.bf16.msra.mxu1 %v1122_v31  ;;  %v1222_v39 = vpack.c.bf16 %v612_v18, %v610_v17  ;;  %v1226_v34 = vpack.c.bf16 %v616_v24, %v614_v23  ;;  %v627_v31 = vld [vmem:[%s2192_s1 + $0x548] sm:$0xff]  ;;  %v634_v15 = vld [vmem:[%s2192_s1 + $0x580] sm:$0xff]  ;;  %v641_v58 = vld [vmem:[%s2192_s1 + $0x5b8] sm:$0xff] }
  0x58   : > { %v443_v60 = vsel %vm440_vm10, %v441_v46, %v442_v38  ;;  %v1988_v33 = vsel %vm449_vm11, %v450_v37, %v451_v45  ;;  %1125 = vmatprep.subr.bf16.mxu1 %v1124_v48  ;;  %v620_v46 = vld [vmem:[%s2192_s1 + $0x510] sm:$0xff]  ;;  %v625_v37 = vld [vmem:[%s2192_s1 + $0x538] sm:$0xff]  ;;  %v626_v48 = vld [vmem:[%s2192_s1 + $0x540] sm:$0xff] }
  0x59   : > { %786 = vmatmul.mubr.f32.vlgmr.msra.gmra.mrb[0].mxu0 %v443_v60  ;;  %v1230_v38 = vpack.c.bf16 %v620_v46, %v618_v30  ;;  %v629_v45 = vld [vmem:[%s2192_s1 + $0x558] sm:$0xff]  ;;  %v1238_v50 = vpack.c.bf16 %v628_v27, %v626_v48  ;;  %v639_v57 = vld [vmem:[%s2192_s1 + $0x5a8] sm:$0xff]  ;;  %v642_v4 = vld [vmem:[%s2192_s1 + $0x5c0] sm:$0xff] }
  0x5a   : > { %1199 = vmatpush1.bf16.msra.mxu0 %v1198_v40  ;;  %856 = vmatprep.mubr.f32.mxu0 %v455_v53  ;;  %v1232_v40 = vpack.c.bf16 %v625_v37, %v623_v36  ;;  %v1236_v26 = vpack.c.bf16 %v629_v45, %v627_v31  ;;  %v633_v60 = vld [vmem:[%s2192_s1 + $0x578] sm:$0xff]  ;;  %v632_v53 = vld [vmem:[%s2192_s1 + $0x570] sm:$0xff]  ;;  %v1248_v61 = vpack.c.bf16 %v641_v58, %v639_v57  ;;  %v646_v21 = vld [vmem:[%s2192_s1 + $0x5e0] sm:$0xff] }
  0x5b   : > { %1201 = vmatprep.subr.bf16.mxu0 %v1200_v47  ;;  %1127 = vmatpush1.bf16.msra.mxu1 %v1126_v2  ;;  %v1234_v47 = vpack.c.bf16 %v624_v43, %v622_v25  ;;  %v1240_v51 = vpack.c.bf16 %v633_v60, %v631_v49  ;;  %v1242_v2 = vpack.c.bf16 %v632_v53, %v630_v52  ;;  %v645_v41 = vld [vmem:[%s2192_s1 + $0x5d8] sm:$0xff] }
  0x5c   : > { %1129 = vmatprep.subr.bf16.mxu1 %v1128_v55  ;;  %v636_v55 = vld [vmem:[%s2192_s1 + $0x590] sm:$0xff]  ;;  %v649_v6 = vld [vmem:[%s2192_s1 + $0x5f8] sm:$0xff] }
  0x5d   : > { %v1246_v59 = vpack.c.bf16 %v636_v55, %v634_v15 }
  0x5e   : > { %1203 = vmatpush1.bf16.msra.mxu0 %v1202_v14  ;;  %v635_v14 = vld [vmem:[%s2192_s1 + $0x588] sm:$0xff] }
  0x5f   : > { %1205 = vmatprep.subr.bf16.mxu0 %v1204_v54  ;;  %1131 = vmatpush1.bf16.msra.mxu1 %v1130_v0  ;;  %v1244_v54 = vpack.c.bf16 %v637_v28, %v635_v14  ;;  %v640_v0 = vld [vmem:[%s2192_s1 + $0x5b0] sm:$0xff] }
  0x62   : > { %1207 = vmatpush1.bf16.msra.mxu0 %v1206_v62  ;;  %1063 = vmatmul.mubr.msk.f32.vlgmr.msra.gmra.mrb[0].mxu1 %vm1898_vm8, %v1930_v11  ;;  %v1218_v11 = vpack.c.bf16 %v608_v63, %v606_v10  ;;  %v638_v62 = vld [vmem:[%s2192_s1 + $0x5a0] sm:$0xff] }
  0x63   : > { %1209 = vmatprep.subr.bf16.mxu0 %v1208_v44  ;;  %v643_v44 = vld [vmem:[%s2192_s1 + $0x5c8] sm:$0xff]  ;;  %v1250_v42 = vpack.c.bf16 %v640_v0, %v638_v62 }
  0x64   : > { %v1252_v3 = vpack.c.bf16 %v645_v41, %v643_v44 }
  0x66   : > { %1211 = vmatpush1.bf16.msra.mxu0 %v1210_v1  ;;  %v644_v1 = vld [vmem:[%s2192_s1 + $0x5d0] sm:$0xff] }
  0x67   : > { %1213 = vmatprep.subr.bf16.mxu0 %v1212_v5  ;;  %v647_v5 = vld [vmem:[%s2192_s1 + $0x5e8] sm:$0xff]  ;;  %v1254_v16 = vpack.c.bf16 %v644_v1, %v642_v4 }
  0x68   : > { %v1256_v7 = vpack.c.bf16 %v649_v6, %v647_v5 }
  0x6a   : > { %1215 = vmatpush1.bf16.msra.mxu0 %v1214_v8  ;;  %v648_v8 = vld [vmem:[%s2192_s1 + $0x5f0] sm:$0xff] }
  0x6b   : > { %1217 = vmatprep.subr.bf16.mxu0 %v1216_v9  ;;  %v1258_v9 = vpack.c.bf16 %v648_v8, %v646_v21 }
  0x6e   : > { %1219 = vmatpush1.bf16.msra.mxu0 %v1218_v11 }
  0x6f   : > { %1221 = vmatprep.subr.bf16.mxu0 %v1220_v13 }
  0x72   : > { %1223 = vmatpush1.bf16.msra.mxu0 %v1222_v39 }
  0x73   : > { %1225 = vmatprep.subr.bf16.mxu0 %v1224_v22 }
  0x76   : > { %1227 = vmatpush1.bf16.msra.mxu0 %v1226_v34 }
  0x77   : > { %1229 = vmatprep.subr.bf16.mxu0 %v1228_v35 }
  0x7a   : > { %1231 = vmatpush1.bf16.msra.mxu0 %v1230_v38 }
  0x7b   : > { %1233 = vmatprep.subr.bf16.mxu0 %v1232_v40 }
  0x7e   : > { %1235 = vmatpush1.bf16.msra.mxu0 %v1234_v47 }
  0x7f   : > { %1237 = vmatprep.subr.bf16.mxu0 %v1236_v26 }
  0x82   : > { %1239 = vmatpush1.bf16.msra.mxu0 %v1238_v50 }
  0x83   : > { %1241 = vmatprep.subr.bf16.mxu0 %v1240_v51 }
  0x86   : > { %1243 = vmatpush1.bf16.msra.mxu0 %v1242_v2 }
  0x87   : > { %1245 = vmatprep.subr.bf16.mxu0 %v1244_v54 }
  0x8a   : > { %1247 = vmatpush1.bf16.msra.mxu0 %v1246_v59 }
  0x8b   : > { %1249 = vmatprep.subr.bf16.mxu0 %v1248_v61 }
  0x8e   : > { %1251 = vmatpush1.bf16.msra.mxu0 %v1250_v42 }
  0x8f   : > { %1253 = vmatprep.subr.bf16.mxu0 %v1252_v3 }
  0x92   : > { %1255 = vmatpush1.bf16.msra.mxu0 %v1254_v16 }
  0x93   : > { %1257 = vmatprep.subr.bf16.mxu0 %v1256_v7 }
  0x96   : > { %1259 = vmatpush1.bf16.msra.mxu0 %v1258_v9 }
  0x99   : > { %857 = vmatmul.mubr.f32.vlgmr.msra.gmra.mrb[0].mxu0 %v1988_v33 }
 0x135   : > { %v716_v10 = vpop.f32.mrb[0].mxu1 }
 0x136   : > { %v718_v63 = vpop.f32.mrb[1].mxu1 }
 0x16c   : > { %v858_v12 = vpop.f32.mrb[0].mxu0 }
 0x16d   : > { %v1260_v56 = vadd.f32 %v858_v12, %v716_v10  ;;  %v860_v11 = vpop.f32.mrb[1].mxu0 }
 0x16e   : > { %v1261_v13 = vadd.f32 %v860_v11, %v718_v63 }
 0x16f   : > { %863 = vst [vmem:[%s260_s15] sm:$0xff] %v1260_v56  ;;  %v865_v33 = vrot.slane %v1260_v56, 4  ;;  %v877_v17 = vmul.f32 %v1260_v56, %v1260_v56 }
 0x170   : > { %864 = vst [vmem:[%s260_s15 + $0x8] sm:$0xff] %v1261_v13  ;;  %v871_v18 = vrot.slane %v1261_v13, 4  ;;  %v878_v19 = vmul.f32 %v1261_v13, %v1261_v13 }
 0x171   : > { %v866_v20 = vadd.f32 %v1260_v56, %v865_v33  ;;  %v879_v39 = vrot.slane %v877_v17, 4 }
 0x172   : > { %v872_v22 = vadd.f32 %v1261_v13, %v871_v18  ;;  %v885_v23 = vrot.slane %v878_v19, 4 }
 0x173   : > { %v867_v24 = vrot.slane %v866_v20, 2  ;;  %v880_v29 = vadd.f32 %v879_v39, %v877_v17 }
 0x174   : > { %v873_v32 = vrot.slane %v872_v22, 2  ;;  %v886_v34 = vadd.f32 %v885_v23, %v878_v19 }
 0x175   : > { %v868_v35 = vadd.f32 %v867_v24, %v866_v20  ;;  %v881_v30 = vrot.slane %v880_v29, 2 }
 0x176   : > { %v874_v46 = vadd.f32 %v873_v32, %v872_v22  ;;  %v887_v36 = vrot.slane %v886_v34, 2 }
 0x177   : > { %v869_v37 = vrot.slane %v868_v35, 1  ;;  %v882_v38 = vadd.f32 %v881_v30, %v880_v29 }
 0x178   : > { %v875_v40 = vrot.slane %v874_v46, 1  ;;  %v888_v25 = vadd.f32 %v887_v36, %v886_v34 }
 0x179   : > { %v883_v43 = vrot.slane %v882_v38, 1  ;;  %v870_v45 = vadd.f32 %v869_v37, %v868_v35 }
 0x17a   : > { %v889_v31 = vrot.slane %v888_v25, 1  ;;  %v876_v26 = vadd.f32 %v875_v40, %v874_v46 }
 0x17b   : > { %v884_v47 = vadd.f32 %v883_v43, %v882_v38 }
 0x17c   : > { %v890_v48 = vadd.f32 %v889_v31, %v888_v25 }
 0x17d   : > { %v892_v27 = vsel %vm891_vm12, %v870_v45, %v884_v47 }
 0x17e   : > { %v893_v49 = vsel %vm891_vm12, %v876_v26, %v890_v48 }
 0x17f   : > { %v896_v60 = vcombine.low %v892_v27, %v893_v49 }
 0x181   : > { %1064 = vst.sshfl [vmem:[%s269_s25] sm:$0x33 pattern:$0x76325410] %v896_v60 }
 0x182 PF: > { %s16_s22 = sadd.s32 1, %s1360_s22   ;;  %s2201_s18 = smov %s1352_s20 }
 0x183   : > { %p13_p7 = scmp.ge.s32.totalorder %s16_s22, 10   ;;  %s2202_s19 = smov %s1356_s21 }
 0x184   : > { %s2203_s20 = smov %s2206_s23  ;;  %s2204_s21 = smov %s2210_s24 }
 0x185   :  { %15 = sbr.rel (!%p13_p7) target bundleno = 3 (0x3), region = 79 }

</bundles_post_ra>
